<compile_context>
chip_gen: v6e
topology: v6e:2x2x1
jax: 0.10.0
libtpu: 0.0.40
codegen_flags: <defaults>
</compile_context>

<pallas_src>
import functools

import jax
import jax.numpy as jnp
from jax.experimental import pallas as pl
from jax.experimental.pallas import tpu as pltpu


_VMEM_LIMIT_BYTES = 48 * 1024 * 1024   # < v7x 64 MiB physical, raises v5e 16 MiB default


def _round_up(x, m):
    return ((x + m - 1) // m) * m


def _pick_row_tile(m, max_tile=256, align=8):
    """Largest divisor of m that is a multiple of `align` and <= max_tile.

    Falls back to the full extent (always legal for the (8,128) rule) when m
    is not a multiple of `align`.  No padding / slicing on the row axis.
    """
    if m <= max_tile or m % align != 0:
        return m
    t = max_tile - (max_tile % align)
    while t >= align:
        if m % t == 0:
            return t
        t -= align
    return m


def _pick_lane_tile(dim, max_tile, align=128):
    """Largest divisor of dim that is a multiple of 128 and <= max_tile
    (full extent when dim is not lane-aligned, e.g. C*ps*ps = 588)."""
    if dim <= max_tile or dim % align != 0:
        return dim
    t = max_tile - (max_tile % align)
    while t >= align:
        if dim % t == 0:
            return t
        t -= align
    return dim


def _cparams(dims):
    return pltpu.CompilerParams(dimension_semantics=dims,
                                vmem_limit_bytes=_VMEM_LIMIT_BYTES)


# --------------------------------------------------------------------------
# Elementwise helpers (run in f32 inside matmul epilogues)
# --------------------------------------------------------------------------

def _erf(x):
    # Abramowitz & Stegun 7.1.26 (max abs err ~1.5e-7) using only
    # exp/mul/add + EUP reciprocal so it lowers cleanly inside Mosaic.
    a1, a2, a3, a4, a5 = (0.254829592, -0.284496736, 1.421413741,
                          -1.453152027, 1.061405429)
    p = 0.3275911
    sgn = jnp.where(x >= 0.0, 1.0, -1.0)
    ax = jnp.abs(x)
    t = pl.reciprocal(1.0 + p * ax, approx=True)   # EUP, hidden under MXU slack
    poly = ((((a5 * t + a4) * t + a3) * t + a2) * t + a1) * t
    return sgn * (1.0 - poly * jnp.exp(-ax * ax))


def _gelu_exact(x):
    # TODO(synk): switch to the tanh-approx GELU (fully EUP-routed) if fc1's
    # epilogue ever shows up as the binding VALU slot after the bf16 move.
    return 0.5 * x * (1.0 + _erf(x * 0.7071067811865476))


# --------------------------------------------------------------------------
# Tiled matmul kernels (bf16 operands, f32 accumulation, fused epilogues)
# --------------------------------------------------------------------------

def _linear_kernel(x_ref, w_ref, b_ref, o_ref, acc_ref, *, n_k):
    """y = x @ w + b (plain; used for the patch embed)."""
    @pl.when(pl.program_id(2) == 0)
    def _():
        acc_ref[...] = jnp.zeros_like(acc_ref)

    acc_ref[...] += jnp.dot(x_ref[...], w_ref[...],
                            preferred_element_type=jnp.float32)

    @pl.when(pl.program_id(2) == n_k - 1)
    def _():
        o_ref[...] = (acc_ref[...] + b_ref[...]).astype(o_ref.dtype)


def _ln_linear_kernel(x_ref, g_ref, bln_ref, w_ref, b_ref, o_ref, *,
                      eps, activation):
    """y = LayerNorm(x) @ w + b (+ optional GELU).  Requires tk == K."""
    x = x_ref[...].astype(jnp.float32)
    mu = jnp.mean(x, axis=-1, keepdims=True)
    xc = x - mu
    var = jnp.mean(xc * xc, axis=-1, keepdims=True)          # biased (PyTorch LN)
    xn = xc * jax.lax.rsqrt(var + eps) * g_ref[...] + bln_ref[...]
    y = jnp.dot(xn.astype(jnp.bfloat16), w_ref[...],
                preferred_element_type=jnp.float32) + b_ref[...]
    if activation == "gelu":
        y = _gelu_exact(y)
    o_ref[...] = y.astype(o_ref.dtype)


def _linear_ls_res_kernel(x_ref, w_ref, b_ref, ls_ref, res_ref, o_ref, acc_ref,
                          *, n_k):
    """y = residual + ls * (x @ w + b)  (attn-proj / fc2 epilogue)."""
    @pl.when(pl.program_id(2) == 0)
    def _():
        acc_ref[...] = jnp.zeros_like(acc_ref)

    acc_ref[...] += jnp.dot(x_ref[...], w_ref[...],
                            preferred_element_type=jnp.float32)

    @pl.when(pl.program_id(2) == n_k - 1)
    def _():
        y = res_ref[...].astype(jnp.float32) + ls_ref[...] * (acc_ref[...] + b_ref[...])
        o_ref[...] = y.astype(o_ref.dtype)


def linear(x, w, b, *, out_dtype=jnp.bfloat16, bm=256, bn=512, bk=1024):
    M, K = x.shape
    _, N = w.shape
    tm = _pick_row_tile(M, bm)
    tn = _pick_lane_tile(N, bn)
    tk = _pick_lane_tile(K, bk)
    n_k = K // tk
    return pl.pallas_call(
        functools.partial(_linear_kernel, n_k=n_k),
        out_shape=jax.ShapeDtypeStruct((M, N), out_dtype),
        grid=(M // tm, N // tn, n_k),
        in_specs=[pl.BlockSpec((tm, tk), lambda i, j, k: (i, k)),
                  pl.BlockSpec((tk, tn), lambda i, j, k: (k, j)),
                  pl.BlockSpec((1, tn), lambda i, j, k: (0, j))],
        out_specs=pl.BlockSpec((tm, tn), lambda i, j, k: (i, j)),
        scratch_shapes=[pltpu.VMEM((tm, tn), jnp.float32)],
        compiler_params=_cparams(("parallel", "parallel", "arbitrary")),
    )(x, w, b.reshape(1, N))


def ln_linear(x, gamma, beta, w, b, *, activation=None, eps=1e-6,
              out_dtype=jnp.bfloat16, bm=256, bn=512):
    """Fused LayerNorm -> matmul (-> GELU).  Uses the full K per block so the
    in-kernel LN sees whole rows; removes the standalone LN HBM round trip."""
    M, K = x.shape
    _, N = w.shape
    tm = _pick_row_tile(M, bm)
    tn = _pick_lane_tile(N, bn)
    return pl.pallas_call(
        functools.partial(_ln_linear_kernel, eps=eps, activation=activation),
        out_shape=jax.ShapeDtypeStruct((M, N), out_dtype),
        grid=(M // tm, N // tn),
        in_specs=[pl.BlockSpec((tm, K), lambda i, j: (i, 0)),
                  pl.BlockSpec((1, K), lambda i, j: (0, 0)),
                  pl.BlockSpec((1, K), lambda i, j: (0, 0)),
                  pl.BlockSpec((K, tn), lambda i, j: (0, j)),
                  pl.BlockSpec((1, tn), lambda i, j: (0, j))],
        out_specs=pl.BlockSpec((tm, tn), lambda i, j: (i, j)),
        compiler_params=_cparams(("parallel", "parallel")),
    )(x, gamma.reshape(1, K), beta.reshape(1, K), w, b.reshape(1, N))


def linear_ls_res(x, w, b, ls, residual, *, out_dtype=jnp.bfloat16,
                  bm=256, bn=512, bk=1024):
    M, K = x.shape
    _, N = w.shape
    tm = _pick_row_tile(M, bm)
    tn = _pick_lane_tile(N, bn)
    tk = _pick_lane_tile(K, bk)
    n_k = K // tk
    return pl.pallas_call(
        functools.partial(_linear_ls_res_kernel, n_k=n_k),
        out_shape=jax.ShapeDtypeStruct((M, N), out_dtype),
        grid=(M // tm, N // tn, n_k),
        in_specs=[pl.BlockSpec((tm, tk), lambda i, j, k: (i, k)),
                  pl.BlockSpec((tk, tn), lambda i, j, k: (k, j)),
                  pl.BlockSpec((1, tn), lambda i, j, k: (0, j)),
                  pl.BlockSpec((1, tn), lambda i, j, k: (0, j)),
                  pl.BlockSpec((tm, tn), lambda i, j, k: (i, j))],
        out_specs=pl.BlockSpec((tm, tn), lambda i, j, k: (i, j)),
        scratch_shapes=[pltpu.VMEM((tm, tn), jnp.float32)],
        compiler_params=_cparams(("parallel", "parallel", "arbitrary")),
    )(x, w, b.reshape(1, N), ls.reshape(1, N), residual)


# --------------------------------------------------------------------------
# Standalone row-tiled LayerNorm (final norm only; block LNs are fused above)
# --------------------------------------------------------------------------

def _layernorm_kernel(x_ref, g_ref, b_ref, o_ref, *, eps):
    x = x_ref[...].astype(jnp.float32)
    mu = jnp.mean(x, axis=-1, keepdims=True)
    xc = x - mu
    var = jnp.mean(xc * xc, axis=-1, keepdims=True)
    o_ref[...] = (xc * jax.lax.rsqrt(var + eps) * g_ref[...]
                  + b_ref[...]).astype(o_ref.dtype)


def layernorm(x, gamma, beta, *, eps=1e-6, out_dtype=jnp.float32, bm=256):
    M, D = x.shape
    tm = _pick_row_tile(M, bm)
    return pl.pallas_call(
        functools.partial(_layernorm_kernel, eps=eps),
        out_shape=jax.ShapeDtypeStruct((M, D), out_dtype),
        grid=(M // tm,),
        in_specs=[pl.BlockSpec((tm, D), lambda i: (i, 0)),
                  pl.BlockSpec((1, D), lambda i: (0, 0)),
                  pl.BlockSpec((1, D), lambda i: (0, 0))],
        out_specs=pl.BlockSpec((tm, D), lambda i: (i, 0)),
        compiler_params=_cparams(("parallel",)),
    )(x, gamma.reshape(1, D), beta.reshape(1, D))


# --------------------------------------------------------------------------
# Attention: one grid step per batch, ALL heads per step, lane-dense output.
# The qkv feature order is [q | k | v] (heads-major inside each), matching
# PyTorch's qkv.reshape(B, N, 3, H, Dh).  The 1/sqrt(Dh) scale is folded into
# the q part of the qkv weight at prepare time.
# --------------------------------------------------------------------------

def _attention_kernel(qkv_ref, o_ref, *, num_heads, head_dim, n_valid):
    D = num_heads * head_dim
    n_keys = qkv_ref.shape[1]
    if n_valid < n_keys:
        key_mask = jax.lax.broadcasted_iota(jnp.int32, (1, n_keys), 1) < n_valid
    outs = []
    for h in range(num_heads):                       # static unroll over heads
        hs = h * head_dim
        q = qkv_ref[0, :, hs:hs + head_dim]                      # (Np, Dh) bf16
        k = qkv_ref[0, :, D + hs:D + hs + head_dim]
        v = qkv_ref[0, :, 2 * D + hs:2 * D + hs + head_dim]
        s = jax.lax.dot_general(q, k, (((1,), (1,)), ((), ())),
                                preferred_element_type=jnp.float32)  # (Np, Np) f32
        if n_valid < n_keys:
            s = jnp.where(key_mask, s, -1e30)        # mask padded key tokens
        s = s - jnp.max(s, axis=-1, keepdims=True)   # softmax stats in f32
        p = jnp.exp(s)
        p = p * pl.reciprocal(jnp.sum(p, axis=-1, keepdims=True), approx=True)
        outs.append(jnp.dot(p.astype(jnp.bfloat16), v,
                            preferred_element_type=jnp.float32))
    out = outs[0] if num_heads == 1 else jnp.concatenate(outs, axis=-1)
    o_ref[0] = out.astype(o_ref.dtype)               # single lane-dense store


def attention(qkv, *, num_heads, n_valid):
    """qkv: (B, Np, 3*D) bf16 -> (B, Np, D) bf16 (heads concatenated)."""
    B, Np, threeD = qkv.shape
    D = threeD // 3
    head_dim = D // num_heads
    # TODO(synk): flash-style KV tiling (second grid axis over key tiles with
    # m/l/acc VMEM scratch) for large Np so VMEM is sequence-length independent.
    return pl.pallas_call(
        functools.partial(_attention_kernel, num_heads=num_heads,
                          head_dim=head_dim, n_valid=n_valid),
        out_shape=jax.ShapeDtypeStruct((B, Np, D), qkv.dtype),
        grid=(B,),
        in_specs=[pl.BlockSpec((1, Np, threeD), lambda b: (b, 0, 0))],
        out_specs=pl.BlockSpec((1, Np, D), lambda b: (b, 0, 0)),
        compiler_params=_cparams(("parallel",)),
    )(qkv)


# --------------------------------------------------------------------------
# Model (DINOv2-style ViT with registers) assembled from the Pallas kernels
# --------------------------------------------------------------------------

def transformer_block(h, p, *, num_heads, n_valid):
    B, Np, D = h.shape
    x2 = h.reshape(B * Np, D)                               # bf16 residual stream

    # ---- attention branch: x = x + ls1 * proj(attn(norm1(x)))
    qkv = ln_linear(x2, p["norm1_g"], p["norm1_b"], p["qkv_w"], p["qkv_b"])
    o = attention(qkv.reshape(B, Np, 3 * D), num_heads=num_heads, n_valid=n_valid)
    x2 = linear_ls_res(o.reshape(B * Np, D), p["proj_w"], p["proj_b"],
                       p["ls1"], x2)

    # ---- MLP branch: x = x + ls2 * fc2(gelu(fc1(norm2(x))))
    h1 = ln_linear(x2, p["norm2_g"], p["norm2_b"], p["fc1_w"], p["fc1_b"],
                   activation="gelu")
    x2 = linear_ls_res(h1, p["fc2_w"], p["fc2_b"], p["ls2"], x2)
    return x2.reshape(B, Np, D)


def dinov2_encoder_forward(x, p, *, patch_size, num_heads):
    """Returns (x_tokens, x_features), mirroring DINOv2Encoder.forward."""
    B, C, H, W = x.shape
    D = p["cls_token"].shape[-1]
    R = p["register_tokens"].shape[1]
    Hp, Wp = H // patch_size, W // patch_size
    P = Hp * Wp

    # 1)+2) image normalization is folded into patch_w/patch_b; the patch-embed
    #       Conv2d(C, D, ps, stride=ps) is a matmul over flattened patches.
    patches = x.reshape(B, C, Hp, patch_size, Wp, patch_size)
    patches = patches.transpose(0, 2, 4, 1, 3, 5).reshape(
        B * P, C * patch_size * patch_size).astype(jnp.bfloat16)
    tok = linear(patches, p["patch_w"], p["patch_b"],
                 out_dtype=jnp.float32).reshape(B, P, D)

    # 3) prepare_tokens_with_masks: [cls | patches] + pos_embed, insert registers
    cls = jnp.broadcast_to(p["cls_token"], (B, 1, D))
    x_tok = jnp.concatenate([cls, tok], axis=1) + p["pos_embed"]     # (B,1+P,D)
    regs = jnp.broadcast_to(p["register_tokens"], (B, R, D))
    x_all = jnp.concatenate([x_tok[:, :1], regs, x_tok[:, 1:]], axis=1)

    # x_tokens = prepare_tokens_with_masks(x)[:, -num_patches:]
    x_tokens = x_tok[:, 1:]                                          # (B, P, D) f32

    # Pad the token count once to a multiple of 16 (bf16 sublane packing);
    # padded key tokens are masked inside attention, padded rows dropped at end.
    N = 1 + R + P
    Np = _round_up(N, 16)
    h = x_all.astype(jnp.bfloat16)
    if Np != N:
        h = jnp.pad(h, ((0, 0), (0, Np - N), (0, 0)))

    # 4) transformer blocks + final norm -> x_norm_patchtokens
    for blk in p["blocks"]:
        h = transformer_block(h, blk, num_heads=num_heads, n_valid=N)
    hn = layernorm(h.reshape(B * Np, D), p["norm_g"], p["norm_b"],
                   out_dtype=jnp.float32).reshape(B, Np, D)
    x_features = hn[:, 1 + R:1 + R + P]          # drop cls + registers (+ pad)

    return x_tokens, x_features


# --------------------------------------------------------------------------
# One-time parameter preparation (outside jit): fold image normalization into
# the patch embed, fold the attention scale into the qkv weight, pre-transpose
# PyTorch [out, in] weights to [in, out], and cast matmul weights to bf16.
# --------------------------------------------------------------------------

def prepare_params(params, *, patch_size, num_heads):
    C = params["img_mean"].shape[0]
    D = params["patch_embed_b"].shape[0]
    head_dim = D // num_heads
    scale = head_dim ** -0.5

    w = params["patch_embed_w"].astype(jnp.float32)          # (D, C, ps, ps)
    inv_std = 1.0 / params["img_std"].reshape(1, C, 1, 1)
    mean = params["img_mean"].reshape(1, C, 1, 1)
    w_n = w * inv_std                                        # w' = w / std
    b_n = params["patch_embed_b"] - jnp.sum(w_n * mean, axis=(1, 2, 3))

    prep = {
        "patch_w": w_n.reshape(D, C * patch_size * patch_size).T.astype(jnp.bfloat16),
        "patch_b": b_n.astype(jnp.float32),
        "cls_token": params["cls_token"],
        "register_tokens": params["register_tokens"],
        "pos_embed": params["pos_embed"],
        "norm_g": params["norm_g"],
        "norm_b": params["norm_b"],
        "blocks": [],
    }
    for blk in params["blocks"]:
        qkv_w = blk["qkv_w"].T.astype(jnp.float32)           # (D, 3D) [in, out]
        qkv_b = blk["qkv_b"].astype(jnp.float32)
        # fold 1/sqrt(head_dim) into the q columns (exact, zero runtime cost)
        qkv_w = qkv_w.at[:, :D].multiply(scale)
        qkv_b = qkv_b.at[:D].multiply(scale)
        prep["blocks"].append({
            "norm1_g": blk["norm1_g"], "norm1_b": blk["norm1_b"],
            "qkv_w": qkv_w.astype(jnp.bfloat16), "qkv_b": qkv_b,
            "proj_w": blk["proj_w"].T.astype(jnp.bfloat16), "proj_b": blk["proj_b"],
            "ls1": blk["ls1_gamma"],
            "norm2_g": blk["norm2_g"], "norm2_b": blk["norm2_b"],
            "fc1_w": blk["fc1_w"].T.astype(jnp.bfloat16), "fc1_b": blk["fc1_b"],
            "fc2_w": blk["fc2_w"].T.astype(jnp.bfloat16), "fc2_b": blk["fc2_b"],
            "ls2": blk["ls2_gamma"],
        })
    return prep


# --------------------------------------------------------------------------
# Deterministic synthetic parameter initialization (PyTorch layouts, f32)
# --------------------------------------------------------------------------

def init_params(key, *, C, D, depth, patch_size, num_patches, num_registers,
                mlp_ratio=4):
    hidden = mlp_ratio * D
    n_keys = 5 + depth * 6
    keys = iter(jax.random.split(key, n_keys))

    def nrm(shape):
        return 0.02 * jax.random.normal(next(keys), shape, jnp.float32)

    params = {
        "img_mean": jnp.array([0.485, 0.456, 0.406], jnp.float32),
        "img_std": jnp.array([0.229, 0.224, 0.225], jnp.float32),
        "patch_embed_w": nrm((D, C, patch_size, patch_size)),
        "patch_embed_b": jnp.zeros((D,), jnp.float32),
        "cls_token": nrm((1, 1, D)),
        "register_tokens": nrm((1, num_registers, D)),
        "pos_embed": nrm((1, 1 + num_patches, D)),
        "norm_g": jnp.ones((D,), jnp.float32),
        "norm_b": jnp.zeros((D,), jnp.float32),
        "blocks": [],
    }
    for _ in range(depth):
        params["blocks"].append({
            "norm1_g": jnp.ones((D,), jnp.float32),
            "norm1_b": jnp.zeros((D,), jnp.float32),
            "qkv_w": nrm((3 * D, D)),            # PyTorch Linear layout [out, in]
            "qkv_b": jnp.zeros((3 * D,), jnp.float32),
            "proj_w": nrm((D, D)),
            "proj_b": jnp.zeros((D,), jnp.float32),
            "ls1_gamma": jnp.full((D,), 1e-5, jnp.float32),
            "norm2_g": jnp.ones((D,), jnp.float32),
            "norm2_b": jnp.zeros((D,), jnp.float32),
            "fc1_w": nrm((hidden, D)),
            "fc1_b": jnp.zeros((hidden,), jnp.float32),
            "fc2_w": nrm((D, hidden)),
            "fc2_b": jnp.zeros((D,), jnp.float32),
            "ls2_gamma": jnp.full((D,), 1e-5, jnp.float32),
        })
    return params


# --------------------------------------------------------------------------

if __name__ == "__main__":
    # Small, DINOv2-consistent configuration:
    #   image 28x28, patch 14 -> 2x2 = 4 patches; 4 register tokens; depth 2;
    #   hidden D=128, 4 heads (head_dim=32), MLP ratio 4.
    B, C, H, W = 2, 3, 28, 28
    patch_size = 14
    D, depth, num_heads, num_registers = 128, 2, 4, 4
    num_patches = (H // patch_size) * (W // patch_size)

    key = jax.random.PRNGKey(0)
    k_params, k_x = jax.random.split(key)
    params = init_params(
        k_params, C=C, D=D, depth=depth, patch_size=patch_size,
        num_patches=num_patches, num_registers=num_registers,
    )
    prep = prepare_params(params, patch_size=patch_size, num_heads=num_heads)
    x = jax.random.uniform(k_x, (B, C, H, W), jnp.float32)   # image in [0,1], NCHW

    fwd = jax.jit(
        functools.partial(
            dinov2_encoder_forward, patch_size=patch_size, num_heads=num_heads
        )
    )
    x_tokens, x_features = fwd(x, prep)
    jax.block_until_ready((x_tokens, x_features))

    assert x_tokens.shape == (B, num_patches, D), x_tokens.shape
    assert x_features.shape == (B, num_patches, D), x_features.shape
    assert jnp.all(jnp.isfinite(x_tokens)) and jnp.all(jnp.isfinite(x_features))
    print("KERNEL_OK")
</pallas_src>

<mosaic_0001>
module attributes {stable_mosaic.version = 11 : i64} {
  func.func @_linear_kernel(%arg0: i32, %arg1: i32, %arg2: i32, %arg3: memref<8x588xbf16, #tpu.memory_space<vmem>>, %arg4: memref<588x128xbf16, #tpu.memory_space<vmem>>, %arg5: memref<1x128xf32, #tpu.memory_space<vmem>>, %arg6: memref<8x128xf32, #tpu.memory_space<vmem>>, %arg7: memref<8x128xf32, #tpu.memory_space<vmem>>) attributes {dimension_semantics = [#tpu.dimension_semantics<parallel>, #tpu.dimension_semantics<parallel>, #tpu.dimension_semantics<arbitrary>], iteration_bounds = array<i64: 1, 1, 1>, scalar_prefetch = 0 : i64, scratch_operands = 1 : i64, tpu.core_type = #tpu.core_type<tc>, window_params = [{transform_indices = @transform_0, window_bounds = array<i64: 8, 588>}, {transform_indices = @transform_1, window_bounds = array<i64: 588, 128>}, {transform_indices = @transform_2, window_bounds = array<i64: 1, 128>}, {transform_indices = @transform_3, window_bounds = array<i64: 8, 128>}]} {
    %c0_i32 = arith.constant 0 : i32
    %0 = arith.cmpi eq, %arg2, %c0_i32 : i32
    %1 = arith.extui %0 : i1 to i32
    %c0_i32_0 = arith.constant 0 : i32
    %2 = arith.cmpi ne, %1, %c0_i32_0 : i32
    scf.if %2 {
      %cst_10 = arith.constant 0.000000e+00 : f32
      %12 = vector.broadcast %cst_10 : f32 to vector<8x128xf32>
      %c0_11 = arith.constant 0 : index
      %c0_12 = arith.constant 0 : index
      %13 = vector.load %arg7[%c0_11, %c0_12] : memref<8x128xf32, #tpu.memory_space<vmem>>, vector<8x128xf32>
      tpu.vector_store %arg7[%c0_11, %c0_12], %12 {strides = array<i32>} : memref<8x128xf32, #tpu.memory_space<vmem>>, vector<8x128xf32>,
    } else {
    }
    %c0 = arith.constant 0 : index
    %c0_1 = arith.constant 0 : index
    %3 = vector.load %arg7[%c0, %c0_1] : memref<8x128xf32, #tpu.memory_space<vmem>>, vector<8x128xf32>
    %c0_2 = arith.constant 0 : index
    %c0_3 = arith.constant 0 : index
    %4 = vector.load %arg3[%c0_2, %c0_3] : memref<8x588xbf16, #tpu.memory_space<vmem>>, vector<8x588xbf16>
    %c0_4 = arith.constant 0 : index
    %c0_5 = arith.constant 0 : index
    %5 = vector.load %arg4[%c0_4, %c0_5] : memref<588x128xbf16, #tpu.memory_space<vmem>>, vector<588x128xbf16>
    %cst = arith.constant dense<0.000000e+00> : vector<8x128xf32>
    %6 = tpu.matmul %4, %5, %cst {dimension_numbers = #tpu.dot_dimension_numbers<[1], [0], [0], [1], [0, 0, 1, 1], [], []>} : vector<8x588xbf16>, vector<588x128xbf16>, vector<8x128xf32> -> vector<8x128xf32>
    %7 = arith.addf %3, %6 : vector<8x128xf32>
    %c0_6 = arith.constant 0 : index
    %c0_7 = arith.constant 0 : index
    %8 = vector.load %arg7[%c0_6, %c0_7] : memref<8x128xf32, #tpu.memory_space<vmem>>, vector<8x128xf32>
    tpu.vector_store %arg7[%c0_6, %c0_7], %7 {strides = array<i32>} : memref<8x128xf32, #tpu.memory_space<vmem>>, vector<8x128xf32>,
    %c0_i32_8 = arith.constant 0 : i32
    %9 = arith.cmpi eq, %arg2, %c0_i32_8 : i32
    %10 = arith.extui %9 : i1 to i32
    %c0_i32_9 = arith.constant 0 : i32
    %11 = arith.cmpi ne, %10, %c0_i32_9 : i32
    scf.if %11 {
      %c0_10 = arith.constant 0 : index
      %c0_11 = arith.constant 0 : index
      %12 = vector.load %arg7[%c0_10, %c0_11] : memref<8x128xf32, #tpu.memory_space<vmem>>, vector<8x128xf32>
      %c0_12 = arith.constant 0 : index
      %c0_13 = arith.constant 0 : index
      %13 = vector.load %arg5[%c0_12, %c0_13] : memref<1x128xf32, #tpu.memory_space<vmem>>, vector<1x128xf32>
      %14 = vector.broadcast %13 : vector<1x128xf32> to vector<8x128xf32>
      %15 = arith.addf %12, %14 : vector<8x128xf32>
      %c0_14 = arith.constant 0 : index
      %c0_15 = arith.constant 0 : index
      %16 = vector.load %arg6[%c0_14, %c0_15] : memref<8x128xf32, #tpu.memory_space<vmem>>, vector<8x128xf32>
      tpu.vector_store %arg6[%c0_14, %c0_15], %15 {strides = array<i32>} : memref<8x128xf32, #tpu.memory_space<vmem>>, vector<8x128xf32>,
    } else {
    }
    return
  }
  func.func @transform_0(%arg0: i32, %arg1: i32, %arg2: i32) -> (i32, i32) {
    %c0_i32 = arith.constant 0 : i32
    return %arg0, %arg2 : i32, i32
  }
  func.func @transform_1(%arg0: i32, %arg1: i32, %arg2: i32) -> (i32, i32) {
    %c0_i32 = arith.constant 0 : i32
    return %arg2, %arg1 : i32, i32
  }
  func.func @transform_2(%arg0: i32, %arg1: i32, %arg2: i32) -> (i32, i32) {
    %c0_i32 = arith.constant 0 : i32
    %c0_i32_0 = arith.constant 0 : i32
    return %c0_i32, %arg1 : i32, i32
  }
  func.func @transform_3(%arg0: i32, %arg1: i32, %arg2: i32) -> (i32, i32) {
    %c0_i32 = arith.constant 0 : i32
    return %arg0, %arg1 : i32, i32
  }
}

module attributes {stable_mosaic.version = 11 : i64} {
  func.func @_linear_ls_res_kernel(%arg0: i32, %arg1: i32, %arg2: i32, %arg3: memref<32x128xbf16, #tpu.memory_space<vmem>>, %arg4: memref<128x128xbf16, #tpu.memory_space<vmem>>, %arg5: memref<1x128xf32, #tpu.memory_space<vmem>>, %arg6: memref<1x128xf32, #tpu.memory_space<vmem>>, %arg7: memref<32x128xbf16, #tpu.memory_space<vmem>>, %arg8: memref<32x128xbf16, #tpu.memory_space<vmem>>, %arg9: memref<32x128xf32, #tpu.memory_space<vmem>>) attributes {dimension_semantics = [#tpu.dimension_semantics<parallel>, #tpu.dimension_semantics<parallel>, #tpu.dimension_semantics<arbitrary>], iteration_bounds = array<i64: 1, 1, 1>, scalar_prefetch = 0 : i64, scratch_operands = 1 : i64, tpu.core_type = #tpu.core_type<tc>, window_params = [{transform_indices = @transform_0, window_bounds = array<i64: 32, 128>}, {transform_indices = @transform_1, window_bounds = array<i64: 128, 128>}, {transform_indices = @transform_2, window_bounds = array<i64: 1, 128>}, {transform_indices = @transform_3, window_bounds = array<i64: 1, 128>}, {transform_indices = @transform_4, window_bounds = array<i64: 32, 128>}, {transform_indices = @transform_5, window_bounds = array<i64: 32, 128>}]} {
    %c0_i32 = arith.constant 0 : i32
    %0 = arith.cmpi eq, %arg2, %c0_i32 : i32
    %1 = arith.extui %0 : i1 to i32
    %c0_i32_0 = arith.constant 0 : i32
    %2 = arith.cmpi ne, %1, %c0_i32_0 : i32
    scf.if %2 {
      %cst_10 = arith.constant 0.000000e+00 : f32
      %12 = vector.broadcast %cst_10 : f32 to vector<32x128xf32>
      %c0_11 = arith.constant 0 : index
      %c0_12 = arith.constant 0 : index
      %13 = vector.load %arg9[%c0_11, %c0_12] : memref<32x128xf32, #tpu.memory_space<vmem>>, vector<32x128xf32>
      tpu.vector_store %arg9[%c0_11, %c0_12], %12 {strides = array<i32>} : memref<32x128xf32, #tpu.memory_space<vmem>>, vector<32x128xf32>,
    } else {
    }
    %c0 = arith.constant 0 : index
    %c0_1 = arith.constant 0 : index
    %3 = vector.load %arg9[%c0, %c0_1] : memref<32x128xf32, #tpu.memory_space<vmem>>, vector<32x128xf32>
    %c0_2 = arith.constant 0 : index
    %c0_3 = arith.constant 0 : index
    %4 = vector.load %arg3[%c0_2, %c0_3] : memref<32x128xbf16, #tpu.memory_space<vmem>>, vector<32x128xbf16>
    %c0_4 = arith.constant 0 : index
    %c0_5 = arith.constant 0 : index
    %5 = vector.load %arg4[%c0_4, %c0_5] : memref<128x128xbf16, #tpu.memory_space<vmem>>, vector<128x128xbf16>
    %cst = arith.constant dense<0.000000e+00> : vector<32x128xf32>
    %6 = tpu.matmul %4, %5, %cst {dimension_numbers = #tpu.dot_dimension_numbers<[1], [0], [0], [1], [0, 0, 1, 1], [], []>} : vector<32x128xbf16>, vector<128x128xbf16>, vector<32x128xf32> -> vector<32x128xf32>
    %7 = arith.addf %3, %6 : vector<32x128xf32>
    %c0_6 = arith.constant 0 : index
    %c0_7 = arith.constant 0 : index
    %8 = vector.load %arg9[%c0_6, %c0_7] : memref<32x128xf32, #tpu.memory_space<vmem>>, vector<32x128xf32>
    tpu.vector_store %arg9[%c0_6, %c0_7], %7 {strides = array<i32>} : memref<32x128xf32, #tpu.memory_space<vmem>>, vector<32x128xf32>,
    %c0_i32_8 = arith.constant 0 : i32
    %9 = arith.cmpi eq, %arg2, %c0_i32_8 : i32
    %10 = arith.extui %9 : i1 to i32
    %c0_i32_9 = arith.constant 0 : i32
    %11 = arith.cmpi ne, %10, %c0_i32_9 : i32
    scf.if %11 {
      %c0_10 = arith.constant 0 : index
      %c0_11 = arith.constant 0 : index
      %12 = vector.load %arg7[%c0_10, %c0_11] : memref<32x128xbf16, #tpu.memory_space<vmem>>, vector<32x128xbf16>
      %13 = arith.extf %12 : vector<32x128xbf16> to vector<32x128xf32>
      %c0_12 = arith.constant 0 : index
      %c0_13 = arith.constant 0 : index
      %14 = vector.load %arg6[%c0_12, %c0_13] : memref<1x128xf32, #tpu.memory_space<vmem>>, vector<1x128xf32>
      %c0_14 = arith.constant 0 : index
      %c0_15 = arith.constant 0 : index
      %15 = vector.load %arg9[%c0_14, %c0_15] : memref<32x128xf32, #tpu.memory_space<vmem>>, vector<32x128xf32>
      %c0_16 = arith.constant 0 : index
      %c0_17 = arith.constant 0 : index
      %16 = vector.load %arg5[%c0_16, %c0_17] : memref<1x128xf32, #tpu.memory_space<vmem>>, vector<1x128xf32>
      %17 = vector.broadcast %16 : vector<1x128xf32> to vector<32x128xf32>
      %18 = arith.addf %15, %17 : vector<32x128xf32>
      %19 = vector.broadcast %14 : vector<1x128xf32> to vector<32x128xf32>
      %20 = arith.mulf %19, %18 : vector<32x128xf32>
      %21 = arith.addf %13, %20 : vector<32x128xf32>
      %22 = arith.truncf %21 : vector<32x128xf32> to vector<32x128xbf16>
      %c0_18 = arith.constant 0 : index
      %c0_19 = arith.constant 0 : index
      %23 = vector.load %arg8[%c0_18, %c0_19] : memref<32x128xbf16, #tpu.memory_space<vmem>>, vector<32x128xbf16>
      tpu.vector_store %arg8[%c0_18, %c0_19], %22 {strides = array<i32>} : memref<32x128xbf16, #tpu.memory_space<vmem>>, vector<32x128xbf16>,
    } else {
    }
    return
  }
  func.func @transform_0(%arg0: i32, %arg1: i32, %arg2: i32) -> (i32, i32) {
    %c0_i32 = arith.constant 0 : i32
    return %arg0, %arg2 : i32, i32
  }
  func.func @transform_1(%arg0: i32, %arg1: i32, %arg2: i32) -> (i32, i32) {
    %c0_i32 = arith.constant 0 : i32
    return %arg2, %arg1 : i32, i32
  }
  func.func @transform_2(%arg0: i32, %arg1: i32, %arg2: i32) -> (i32, i32) {
    %c0_i32 = arith.constant 0 : i32
    %c0_i32_0 = arith.constant 0 : i32
    return %c0_i32, %arg1 : i32, i32
  }
  func.func @transform_3(%arg0: i32, %arg1: i32, %arg2: i32) -> (i32, i32) {
    %c0_i32 = arith.constant 0 : i32
    %c0_i32_0 = arith.constant 0 : i32
    return %c0_i32, %arg1 : i32, i32
  }
  func.func @transform_4(%arg0: i32, %arg1: i32, %arg2: i32) -> (i32, i32) {
    %c0_i32 = arith.constant 0 : i32
    return %arg0, %arg1 : i32, i32
  }
  func.func @transform_5(%arg0: i32, %arg1: i32, %arg2: i32) -> (i32, i32) {
    %c0_i32 = arith.constant 0 : i32
    return %arg0, %arg1 : i32, i32
  }
}

module attributes {stable_mosaic.version = 11 : i64} {
  func.func @_ln_linear_kernel(%arg0: i32, %arg1: i32, %arg2: memref<32x128xbf16, #tpu.memory_space<vmem>>, %arg3: memref<1x128xf32, #tpu.memory_space<vmem>>, %arg4: memref<1x128xf32, #tpu.memory_space<vmem>>, %arg5: memref<128x384xbf16, #tpu.memory_space<vmem>>, %arg6: memref<1x384xf32, #tpu.memory_space<vmem>>, %arg7: memref<32x384xbf16, #tpu.memory_space<vmem>>) attributes {dimension_semantics = [#tpu.dimension_semantics<parallel>, #tpu.dimension_semantics<parallel>], iteration_bounds = array<i64: 1, 1>, scalar_prefetch = 0 : i64, scratch_operands = 0 : i64, tpu.core_type = #tpu.core_type<tc>, window_params = [{transform_indices = @transform_0, window_bounds = array<i64: 32, 128>}, {pipeline_mode = #tpu.pipeline_mode<synchronous>, transform_indices = @transform_1, window_bounds = array<i64: 1, 128>}, {pipeline_mode = #tpu.pipeline_mode<synchronous>, transform_indices = @transform_2, window_bounds = array<i64: 1, 128>}, {transform_indices = @transform_3, window_bounds = array<i64: 128, 384>}, {transform_indices = @transform_4, window_bounds = array<i64: 1, 384>}, {transform_indices = @transform_5, window_bounds = array<i64: 32, 384>}]} {
    %c0 = arith.constant 0 : index
    %c0_0 = arith.constant 0 : index
    %0 = vector.load %arg2[%c0, %c0_0] : memref<32x128xbf16, #tpu.memory_space<vmem>>, vector<32x128xbf16>
    %1 = arith.extf %0 : vector<32x128xbf16> to vector<32x128xf32>
    %cst = arith.constant dense<0.000000e+00> : vector<32xf32>
    %2 = vector.multi_reduction <add>, %1, %cst [1] : vector<32x128xf32> to vector<32xf32>
    %3 = vector.shape_cast %2 : vector<32xf32> to vector<32x1xf32>
    %cst_1 = arith.constant 1.280000e+02 : f32
    %4 = vector.broadcast %cst_1 : f32 to vector<32x1xf32>
    %5 = arith.divf %3, %4 : vector<32x1xf32>
    %6 = vector.broadcast %5 : vector<32x1xf32> to vector<32x128xf32>
    %7 = arith.subf %1, %6 : vector<32x128xf32>
    %8 = arith.mulf %7, %7 : vector<32x128xf32>
    %cst_2 = arith.constant dense<0.000000e+00> : vector<32xf32>
    %9 = vector.multi_reduction <add>, %8, %cst_2 [1] : vector<32x128xf32> to vector<32xf32>
    %10 = vector.shape_cast %9 : vector<32xf32> to vector<32x1xf32>
    %cst_3 = arith.constant 1.280000e+02 : f32
    %11 = vector.broadcast %cst_3 : f32 to vector<32x1xf32>
    %12 = arith.divf %10, %11 : vector<32x1xf32>
    %cst_4 = arith.constant 9.99999997E-7 : f32
    %13 = vector.broadcast %cst_4 : f32 to vector<32x1xf32>
    %14 = arith.addf %12, %13 : vector<32x1xf32>
    %15 = math.rsqrt %14 : vector<32x1xf32>
    %16 = vector.broadcast %15 : vector<32x1xf32> to vector<32x128xf32>
    %17 = arith.mulf %7, %16 : vector<32x128xf32>
    %c0_5 = arith.constant 0 : index
    %c0_6 = arith.constant 0 : index
    %18 = vector.load %arg3[%c0_5, %c0_6] : memref<1x128xf32, #tpu.memory_space<vmem>>, vector<1x128xf32>
    %19 = vector.broadcast %18 : vector<1x128xf32> to vector<32x128xf32>
    %20 = arith.mulf %17, %19 : vector<32x128xf32>
    %c0_7 = arith.constant 0 : index
    %c0_8 = arith.constant 0 : index
    %21 = vector.load %arg4[%c0_7, %c0_8] : memref<1x128xf32, #tpu.memory_space<vmem>>, vector<1x128xf32>
    %22 = vector.broadcast %21 : vector<1x128xf32> to vector<32x128xf32>
    %23 = arith.addf %20, %22 : vector<32x128xf32>
    %24 = arith.truncf %23 : vector<32x128xf32> to vector<32x128xbf16>
    %c0_9 = arith.constant 0 : index
    %c0_10 = arith.constant 0 : index
    %25 = vector.load %arg5[%c0_9, %c0_10] : memref<128x384xbf16, #tpu.memory_space<vmem>>, vector<128x384xbf16>
    %cst_11 = arith.constant dense<0.000000e+00> : vector<32x384xf32>
    %26 = tpu.matmul %24, %25, %cst_11 {dimension_numbers = #tpu.dot_dimension_numbers<[1], [0], [0], [1], [0, 0, 1, 1], [], []>} : vector<32x128xbf16>, vector<128x384xbf16>, vector<32x384xf32> -> vector<32x384xf32>
    %c0_12 = arith.constant 0 : index
    %c0_13 = arith.constant 0 : index
    %27 = vector.load %arg6[%c0_12, %c0_13] : memref<1x384xf32, #tpu.memory_space<vmem>>, vector<1x384xf32>
    %28 = vector.broadcast %27 : vector<1x384xf32> to vector<32x384xf32>
    %29 = arith.addf %26, %28 : vector<32x384xf32>
    %30 = arith.truncf %29 : vector<32x384xf32> to vector<32x384xbf16>
    %c0_14 = arith.constant 0 : index
    %c0_15 = arith.constant 0 : index
    %31 = vector.load %arg7[%c0_14, %c0_15] : memref<32x384xbf16, #tpu.memory_space<vmem>>, vector<32x384xbf16>
    tpu.vector_store %arg7[%c0_14, %c0_15], %30 {strides = array<i32>} : memref<32x384xbf16, #tpu.memory_space<vmem>>, vector<32x384xbf16>,
    return
  }
  func.func @transform_0(%arg0: i32, %arg1: i32) -> (i32, i32) {
    %c0_i32 = arith.constant 0 : i32
    %c0_i32_0 = arith.constant 0 : i32
    return %arg0, %c0_i32 : i32, i32
  }
  func.func @transform_1(%arg0: i32, %arg1: i32) -> (i32, i32) {
    %c0_i32 = arith.constant 0 : i32
    %c0_i32_0 = arith.constant 0 : i32
    %c0_i32_1 = arith.constant 0 : i32
    return %c0_i32, %c0_i32_0 : i32, i32
  }
  func.func @transform_2(%arg0: i32, %arg1: i32) -> (i32, i32) {
    %c0_i32 = arith.constant 0 : i32
    %c0_i32_0 = arith.constant 0 : i32
    %c0_i32_1 = arith.constant 0 : i32
    return %c0_i32, %c0_i32_0 : i32, i32
  }
  func.func @transform_3(%arg0: i32, %arg1: i32) -> (i32, i32) {
    %c0_i32 = arith.constant 0 : i32
    %c0_i32_0 = arith.constant 0 : i32
    return %c0_i32, %arg1 : i32, i32
  }
  func.func @transform_4(%arg0: i32, %arg1: i32) -> (i32, i32) {
    %c0_i32 = arith.constant 0 : i32
    %c0_i32_0 = arith.constant 0 : i32
    return %c0_i32, %arg1 : i32, i32
  }
  func.func @transform_5(%arg0: i32, %arg1: i32) -> (i32, i32) {
    %c0_i32 = arith.constant 0 : i32
    return %arg0, %arg1 : i32, i32
  }
}

module attributes {stable_mosaic.version = 11 : i64} {
  func.func @_attention_kernel(%arg0: i32, %arg1: memref<1x16x384xbf16, #tpu.memory_space<vmem>>, %arg2: memref<1x16x128xbf16, #tpu.memory_space<vmem>>) attributes {dimension_semantics = [#tpu.dimension_semantics<parallel>], iteration_bounds = array<i64: 2>, scalar_prefetch = 0 : i64, scratch_operands = 0 : i64, tpu.core_type = #tpu.core_type<tc>, window_params = [{transform_indices = @transform_0, window_bounds = array<i64: 1, 16, 384>}, {transform_indices = @transform_1, window_bounds = array<i64: 1, 16, 128>}]} {
    %0 = tpu.iota {dimensions = array<i32: 1>} : vector<1x16xi32>
    %c9_i32 = arith.constant 9 : i32
    %1 = vector.broadcast %c9_i32 : i32 to vector<1x16xi32>
    %2 = arith.cmpi slt, %0, %1 : vector<1x16xi32>
    %c0 = arith.constant 0 : index
    %c0_0 = arith.constant 0 : index
    %c0_1 = arith.constant 0 : index
    %3 = vector.load %arg1[%c0, %c0_0, %c0_1] : memref<1x16x384xbf16, #tpu.memory_space<vmem>>, vector<1x16x32xbf16>
    %4 = vector.shape_cast %3 : vector<1x16x32xbf16> to vector<16x32xbf16>
    %c0_2 = arith.constant 0 : index
    %c0_3 = arith.constant 0 : index
    %c128 = arith.constant 128 : index
    %5 = vector.load %arg1[%c0_2, %c0_3, %c128] : memref<1x16x384xbf16, #tpu.memory_space<vmem>>, vector<1x16x32xbf16>
    %6 = vector.shape_cast %5 : vector<1x16x32xbf16> to vector<16x32xbf16>
    %c0_4 = arith.constant 0 : index
    %c0_5 = arith.constant 0 : index
    %c256 = arith.constant 256 : index
    %7 = vector.load %arg1[%c0_4, %c0_5, %c256] : memref<1x16x384xbf16, #tpu.memory_space<vmem>>, vector<1x16x32xbf16>
    %8 = vector.shape_cast %7 : vector<1x16x32xbf16> to vector<16x32xbf16>
    %cst = arith.constant dense<0.000000e+00> : vector<16x16xf32>
    %9 = tpu.matmul %4, %6, %cst {dimension_numbers = #tpu.dot_dimension_numbers<[1], [1], [0], [0], [0, 0, 1, 0], [], []>} : vector<16x32xbf16>, vector<16x32xbf16>, vector<16x16xf32> -> vector<16x16xf32>
    %cst_6 = arith.constant -1.000000e+30 : f32
    %10 = vector.shape_cast %2 : vector<1x16xi1> to vector<1x16xi1>
    %11 = vector.broadcast %10 : vector<1x16xi1> to vector<16x16xi1>
    %12 = vector.broadcast %cst_6 : f32 to vector<16x16xf32>
    %13 = arith.select %11, %9, %12 : vector<16x16xi1>, vector<16x16xf32>
    %cst_7 = arith.constant dense<0xFF800000> : vector<16xf32>
    %14 = vector.multi_reduction <maximumf>, %13, %cst_7 [1] : vector<16x16xf32> to vector<16xf32>
    %15 = vector.shape_cast %14 : vector<16xf32> to vector<16x1xf32>
    %16 = vector.broadcast %15 : vector<16x1xf32> to vector<16x16xf32>
    %17 = arith.subf %13, %16 : vector<16x16xf32>
    %18 = math.exp %17 : vector<16x16xf32>
    %cst_8 = arith.constant dense<0.000000e+00> : vector<16xf32>
    %19 = vector.multi_reduction <add>, %18, %cst_8 [1] : vector<16x16xf32> to vector<16xf32>
    %20 = vector.shape_cast %19 : vector<16xf32> to vector<16x1xf32>
    %21 = tpu.reciprocal %20 {approx = true} : vector<16x1xf32> -> vector<16x1xf32>
    %22 = vector.broadcast %21 : vector<16x1xf32> to vector<16x16xf32>
    %23 = arith.mulf %18, %22 : vector<16x16xf32>
    %24 = arith.truncf %23 : vector<16x16xf32> to vector<16x16xbf16>
    %cst_9 = arith.constant dense<0.000000e+00> : vector<16x32xf32>
    %25 = tpu.matmul %24, %8, %cst_9 {dimension_numbers = #tpu.dot_dimension_numbers<[1], [0], [0], [1], [0, 0, 1, 1], [], []>} : vector<16x16xbf16>, vector<16x32xbf16>, vector<16x32xf32> -> vector<16x32xf32>
    %c0_10 = arith.constant 0 : index
    %c0_11 = arith.constant 0 : index
    %c32 = arith.constant 32 : index
    %26 = vector.load %arg1[%c0_10, %c0_11, %c32] : memref<1x16x384xbf16, #tpu.memory_space<vmem>>, vector<1x16x32xbf16>
    %27 = vector.shape_cast %26 : vector<1x16x32xbf16> to vector<16x32xbf16>
    %c0_12 = arith.constant 0 : index
    %c0_13 = arith.constant 0 : index
    %c160 = arith.constant 160 : index
    %28 = vector.load %arg1[%c0_12, %c0_13, %c160] : memref<1x16x384xbf16, #tpu.memory_space<vmem>>, vector<1x16x32xbf16>
    %29 = vector.shape_cast %28 : vector<1x16x32xbf16> to vector<16x32xbf16>
    %c0_14 = arith.constant 0 : index
    %c0_15 = arith.constant 0 : index
    %c288 = arith.constant 288 : index
    %30 = vector.load %arg1[%c0_14, %c0_15, %c288] : memref<1x16x384xbf16, #tpu.memory_space<vmem>>, vector<1x16x32xbf16>
    %31 = vector.shape_cast %30 : vector<1x16x32xbf16> to vector<16x32xbf16>
    %cst_16 = arith.constant dense<0.000000e+00> : vector<16x16xf32>
    %32 = tpu.matmul %27, %29, %cst_16 {dimension_numbers = #tpu.dot_dimension_numbers<[1], [1], [0], [0], [0, 0, 1, 0], [], []>} : vector<16x32xbf16>, vector<16x32xbf16>, vector<16x16xf32> -> vector<16x16xf32>
    %cst_17 = arith.constant -1.000000e+30 : f32
    %33 = vector.shape_cast %2 : vector<1x16xi1> to vector<1x16xi1>
    %34 = vector.broadcast %33 : vector<1x16xi1> to vector<16x16xi1>
    %35 = vector.broadcast %cst_17 : f32 to vector<16x16xf32>
    %36 = arith.select %34, %32, %35 : vector<16x16xi1>, vector<16x16xf32>
    %cst_18 = arith.constant dense<0xFF800000> : vector<16xf32>
    %37 = vector.multi_reduction <maximumf>, %36, %cst_18 [1] : vector<16x16xf32> to vector<16xf32>
    %38 = vector.shape_cast %37 : vector<16xf32> to vector<16x1xf32>
    %39 = vector.broadcast %38 : vector<16x1xf32> to vector<16x16xf32>
    %40 = arith.subf %36, %39 : vector<16x16xf32>
    %41 = math.exp %40 : vector<16x16xf32>
    %cst_19 = arith.constant dense<0.000000e+00> : vector<16xf32>
    %42 = vector.multi_reduction <add>, %41, %cst_19 [1] : vector<16x16xf32> to vector<16xf32>
    %43 = vector.shape_cast %42 : vector<16xf32> to vector<16x1xf32>
    %44 = tpu.reciprocal %43 {approx = true} : vector<16x1xf32> -> vector<16x1xf32>
    %45 = vector.broadcast %44 : vector<16x1xf32> to vector<16x16xf32>
    %46 = arith.mulf %41, %45 : vector<16x16xf32>
    %47 = arith.truncf %46 : vector<16x16xf32> to vector<16x16xbf16>
    %cst_20 = arith.constant dense<0.000000e+00> : vector<16x32xf32>
    %48 = tpu.matmul %47, %31, %cst_20 {dimension_numbers = #tpu.dot_dimension_numbers<[1], [0], [0], [1], [0, 0, 1, 1], [], []>} : vector<16x16xbf16>, vector<16x32xbf16>, vector<16x32xf32> -> vector<16x32xf32>
    %c0_21 = arith.constant 0 : index
    %c0_22 = arith.constant 0 : index
    %c64 = arith.constant 64 : index
    %49 = vector.load %arg1[%c0_21, %c0_22, %c64] : memref<1x16x384xbf16, #tpu.memory_space<vmem>>, vector<1x16x32xbf16>
    %50 = vector.shape_cast %49 : vector<1x16x32xbf16> to vector<16x32xbf16>
    %c0_23 = arith.constant 0 : index
    %c0_24 = arith.constant 0 : index
    %c192 = arith.constant 192 : index
    %51 = vector.load %arg1[%c0_23, %c0_24, %c192] : memref<1x16x384xbf16, #tpu.memory_space<vmem>>, vector<1x16x32xbf16>
    %52 = vector.shape_cast %51 : vector<1x16x32xbf16> to vector<16x32xbf16>
    %c0_25 = arith.constant 0 : index
    %c0_26 = arith.constant 0 : index
    %c320 = arith.constant 320 : index
    %53 = vector.load %arg1[%c0_25, %c0_26, %c320] : memref<1x16x384xbf16, #tpu.memory_space<vmem>>, vector<1x16x32xbf16>
    %54 = vector.shape_cast %53 : vector<1x16x32xbf16> to vector<16x32xbf16>
    %cst_27 = arith.constant dense<0.000000e+00> : vector<16x16xf32>
    %55 = tpu.matmul %50, %52, %cst_27 {dimension_numbers = #tpu.dot_dimension_numbers<[1], [1], [0], [0], [0, 0, 1, 0], [], []>} : vector<16x32xbf16>, vector<16x32xbf16>, vector<16x16xf32> -> vector<16x16xf32>
    %cst_28 = arith.constant -1.000000e+30 : f32
    %56 = vector.shape_cast %2 : vector<1x16xi1> to vector<1x16xi1>
    %57 = vector.broadcast %56 : vector<1x16xi1> to vector<16x16xi1>
    %58 = vector.broadcast %cst_28 : f32 to vector<16x16xf32>
    %59 = arith.select %57, %55, %58 : vector<16x16xi1>, vector<16x16xf32>
    %cst_29 = arith.constant dense<0xFF800000> : vector<16xf32>
    %60 = vector.multi_reduction <maximumf>, %59, %cst_29 [1] : vector<16x16xf32> to vector<16xf32>
    %61 = vector.shape_cast %60 : vector<16xf32> to vector<16x1xf32>
    %62 = vector.broadcast %61 : vector<16x1xf32> to vector<16x16xf32>
    %63 = arith.subf %59, %62 : vector<16x16xf32>
    %64 = math.exp %63 : vector<16x16xf32>
    %cst_30 = arith.constant dense<0.000000e+00> : vector<16xf32>
    %65 = vector.multi_reduction <add>, %64, %cst_30 [1] : vector<16x16xf32> to vector<16xf32>
    %66 = vector.shape_cast %65 : vector<16xf32> to vector<16x1xf32>
    %67 = tpu.reciprocal %66 {approx = true} : vector<16x1xf32> -> vector<16x1xf32>
    %68 = vector.broadcast %67 : vector<16x1xf32> to vector<16x16xf32>
    %69 = arith.mulf %64, %68 : vector<16x16xf32>
    %70 = arith.truncf %69 : vector<16x16xf32> to vector<16x16xbf16>
    %cst_31 = arith.constant dense<0.000000e+00> : vector<16x32xf32>
    %71 = tpu.matmul %70, %54, %cst_31 {dimension_numbers = #tpu.dot_dimension_numbers<[1], [0], [0], [1], [0, 0, 1, 1], [], []>} : vector<16x16xbf16>, vector<16x32xbf16>, vector<16x32xf32> -> vector<16x32xf32>
    %c0_32 = arith.constant 0 : index
    %c0_33 = arith.constant 0 : index
    %c96 = arith.constant 96 : index
    %72 = vector.load %arg1[%c0_32, %c0_33, %c96] : memref<1x16x384xbf16, #tpu.memory_space<vmem>>, vector<1x16x32xbf16>
    %73 = vector.shape_cast %72 : vector<1x16x32xbf16> to vector<16x32xbf16>
    %c0_34 = arith.constant 0 : index
    %c0_35 = arith.constant 0 : index
    %c224 = arith.constant 224 : index
    %74 = vector.load %arg1[%c0_34, %c0_35, %c224] : memref<1x16x384xbf16, #tpu.memory_space<vmem>>, vector<1x16x32xbf16>
    %75 = vector.shape_cast %74 : vector<1x16x32xbf16> to vector<16x32xbf16>
    %c0_36 = arith.constant 0 : index
    %c0_37 = arith.constant 0 : index
    %c352 = arith.constant 352 : index
    %76 = vector.load %arg1[%c0_36, %c0_37, %c352] : memref<1x16x384xbf16, #tpu.memory_space<vmem>>, vector<1x16x32xbf16>
    %77 = vector.shape_cast %76 : vector<1x16x32xbf16> to vector<16x32xbf16>
    %cst_38 = arith.constant dense<0.000000e+00> : vector<16x16xf32>
    %78 = tpu.matmul %73, %75, %cst_38 {dimension_numbers = #tpu.dot_dimension_numbers<[1], [1], [0], [0], [0, 0, 1, 0], [], []>} : vector<16x32xbf16>, vector<16x32xbf16>, vector<16x16xf32> -> vector<16x16xf32>
    %cst_39 = arith.constant -1.000000e+30 : f32
    %79 = vector.shape_cast %2 : vector<1x16xi1> to vector<1x16xi1>
    %80 = vector.broadcast %79 : vector<1x16xi1> to vector<16x16xi1>
    %81 = vector.broadcast %cst_39 : f32 to vector<16x16xf32>
    %82 = arith.select %80, %78, %81 : vector<16x16xi1>, vector<16x16xf32>
    %cst_40 = arith.constant dense<0xFF800000> : vector<16xf32>
    %83 = vector.multi_reduction <maximumf>, %82, %cst_40 [1] : vector<16x16xf32> to vector<16xf32>
    %84 = vector.shape_cast %83 : vector<16xf32> to vector<16x1xf32>
    %85 = vector.broadcast %84 : vector<16x1xf32> to vector<16x16xf32>
    %86 = arith.subf %82, %85 : vector<16x16xf32>
    %87 = math.exp %86 : vector<16x16xf32>
    %cst_41 = arith.constant dense<0.000000e+00> : vector<16xf32>
    %88 = vector.multi_reduction <add>, %87, %cst_41 [1] : vector<16x16xf32> to vector<16xf32>
    %89 = vector.shape_cast %88 : vector<16xf32> to vector<16x1xf32>
    %90 = tpu.reciprocal %89 {approx = true} : vector<16x1xf32> -> vector<16x1xf32>
    %91 = vector.broadcast %90 : vector<16x1xf32> to vector<16x16xf32>
    %92 = arith.mulf %87, %91 : vector<16x16xf32>
    %93 = arith.truncf %92 : vector<16x16xf32> to vector<16x16xbf16>
    %cst_42 = arith.constant dense<0.000000e+00> : vector<16x32xf32>
    %94 = tpu.matmul %93, %77, %cst_42 {dimension_numbers = #tpu.dot_dimension_numbers<[1], [0], [0], [1], [0, 0, 1, 1], [], []>} : vector<16x16xbf16>, vector<16x32xbf16>, vector<16x32xf32> -> vector<16x32xf32>
    %95 = tpu.concatenate %25, %48, %71, %94 in 1 : vector<16x32xf32>, vector<16x32xf32>, vector<16x32xf32>, vector<16x32xf32> -> vector<16x128xf32>
    %96 = arith.truncf %95 : vector<16x128xf32> to vector<16x128xbf16>
    %c0_43 = arith.constant 0 : index
    %c0_44 = arith.constant 0 : index
    %c0_45 = arith.constant 0 : index
    %97 = vector.load %arg2[%c0_43, %c0_44, %c0_45] : memref<1x16x128xbf16, #tpu.memory_space<vmem>>, vector<1x16x128xbf16>
    %98 = vector.shape_cast %97 : vector<1x16x128xbf16> to vector<16x128xbf16>
    %99 = vector.shape_cast %96 : vector<16x128xbf16> to vector<1x16x128xbf16>
    tpu.vector_store %arg2[%c0_43, %c0_44, %c0_45], %99 {strides = array<i32>} : memref<1x16x128xbf16, #tpu.memory_space<vmem>>, vector<1x16x128xbf16>,
    return
  }
  func.func @transform_0(%arg0: i32) -> (i32, i32, i32) {
    %c0_i32 = arith.constant 0 : i32
    %c0_i32_0 = arith.constant 0 : i32
    %c0_i32_1 = arith.constant 0 : i32
    return %arg0, %c0_i32, %c0_i32_0 : i32, i32, i32
  }
  func.func @transform_1(%arg0: i32) -> (i32, i32, i32) {
    %c0_i32 = arith.constant 0 : i32
    %c0_i32_0 = arith.constant 0 : i32
    %c0_i32_1 = arith.constant 0 : i32
    return %arg0, %c0_i32, %c0_i32_0 : i32, i32, i32
  }
}

module attributes {stable_mosaic.version = 11 : i64} {
  func.func @_ln_linear_kernel(%arg0: i32, %arg1: i32, %arg2: memref<32x128xbf16, #tpu.memory_space<vmem>>, %arg3: memref<1x128xf32, #tpu.memory_space<vmem>>, %arg4: memref<1x128xf32, #tpu.memory_space<vmem>>, %arg5: memref<128x512xbf16, #tpu.memory_space<vmem>>, %arg6: memref<1x512xf32, #tpu.memory_space<vmem>>, %arg7: memref<32x512xbf16, #tpu.memory_space<vmem>>) attributes {dimension_semantics = [#tpu.dimension_semantics<parallel>, #tpu.dimension_semantics<parallel>], iteration_bounds = array<i64: 1, 1>, scalar_prefetch = 0 : i64, scratch_operands = 0 : i64, tpu.core_type = #tpu.core_type<tc>, window_params = [{transform_indices = @transform_0, window_bounds = array<i64: 32, 128>}, {pipeline_mode = #tpu.pipeline_mode<synchronous>, transform_indices = @transform_1, window_bounds = array<i64: 1, 128>}, {pipeline_mode = #tpu.pipeline_mode<synchronous>, transform_indices = @transform_2, window_bounds = array<i64: 1, 128>}, {transform_indices = @transform_3, window_bounds = array<i64: 128, 512>}, {transform_indices = @transform_4, window_bounds = array<i64: 1, 512>}, {transform_indices = @transform_5, window_bounds = array<i64: 32, 512>}]} {
    %c0 = arith.constant 0 : index
    %c0_0 = arith.constant 0 : index
    %0 = vector.load %arg2[%c0, %c0_0] : memref<32x128xbf16, #tpu.memory_space<vmem>>, vector<32x128xbf16>
    %1 = arith.extf %0 : vector<32x128xbf16> to vector<32x128xf32>
    %cst = arith.constant dense<0.000000e+00> : vector<32xf32>
    %2 = vector.multi_reduction <add>, %1, %cst [1] : vector<32x128xf32> to vector<32xf32>
    %3 = vector.shape_cast %2 : vector<32xf32> to vector<32x1xf32>
    %cst_1 = arith.constant 1.280000e+02 : f32
    %4 = vector.broadcast %cst_1 : f32 to vector<32x1xf32>
    %5 = arith.divf %3, %4 : vector<32x1xf32>
    %6 = vector.broadcast %5 : vector<32x1xf32> to vector<32x128xf32>
    %7 = arith.subf %1, %6 : vector<32x128xf32>
    %8 = arith.mulf %7, %7 : vector<32x128xf32>
    %cst_2 = arith.constant dense<0.000000e+00> : vector<32xf32>
    %9 = vector.multi_reduction <add>, %8, %cst_2 [1] : vector<32x128xf32> to vector<32xf32>
    %10 = vector.shape_cast %9 : vector<32xf32> to vector<32x1xf32>
    %cst_3 = arith.constant 1.280000e+02 : f32
    %11 = vector.broadcast %cst_3 : f32 to vector<32x1xf32>
    %12 = arith.divf %10, %11 : vector<32x1xf32>
    %cst_4 = arith.constant 9.99999997E-7 : f32
    %13 = vector.broadcast %cst_4 : f32 to vector<32x1xf32>
    %14 = arith.addf %12, %13 : vector<32x1xf32>
    %15 = math.rsqrt %14 : vector<32x1xf32>
    %16 = vector.broadcast %15 : vector<32x1xf32> to vector<32x128xf32>
    %17 = arith.mulf %7, %16 : vector<32x128xf32>
    %c0_5 = arith.constant 0 : index
    %c0_6 = arith.constant 0 : index
    %18 = vector.load %arg3[%c0_5, %c0_6] : memref<1x128xf32, #tpu.memory_space<vmem>>, vector<1x128xf32>
    %19 = vector.broadcast %18 : vector<1x128xf32> to vector<32x128xf32>
    %20 = arith.mulf %17, %19 : vector<32x128xf32>
    %c0_7 = arith.constant 0 : index
    %c0_8 = arith.constant 0 : index
    %21 = vector.load %arg4[%c0_7, %c0_8] : memref<1x128xf32, #tpu.memory_space<vmem>>, vector<1x128xf32>
    %22 = vector.broadcast %21 : vector<1x128xf32> to vector<32x128xf32>
    %23 = arith.addf %20, %22 : vector<32x128xf32>
    %24 = arith.truncf %23 : vector<32x128xf32> to vector<32x128xbf16>
    %c0_9 = arith.constant 0 : index
    %c0_10 = arith.constant 0 : index
    %25 = vector.load %arg5[%c0_9, %c0_10] : memref<128x512xbf16, #tpu.memory_space<vmem>>, vector<128x512xbf16>
    %cst_11 = arith.constant dense<0.000000e+00> : vector<32x512xf32>
    %26 = tpu.matmul %24, %25, %cst_11 {dimension_numbers = #tpu.dot_dimension_numbers<[1], [0], [0], [1], [0, 0, 1, 1], [], []>} : vector<32x128xbf16>, vector<128x512xbf16>, vector<32x512xf32> -> vector<32x512xf32>
    %c0_12 = arith.constant 0 : index
    %c0_13 = arith.constant 0 : index
    %27 = vector.load %arg6[%c0_12, %c0_13] : memref<1x512xf32, #tpu.memory_space<vmem>>, vector<1x512xf32>
    %28 = vector.broadcast %27 : vector<1x512xf32> to vector<32x512xf32>
    %29 = arith.addf %26, %28 : vector<32x512xf32>
    %cst_14 = arith.constant 5.000000e-01 : f32
    %30 = vector.broadcast %cst_14 : f32 to vector<32x512xf32>
    %31 = arith.mulf %30, %29 : vector<32x512xf32>
    %cst_15 = arith.constant 0.707106769 : f32
    %32 = vector.broadcast %cst_15 : f32 to vector<32x512xf32>
    %33 = arith.mulf %29, %32 : vector<32x512xf32>
    %cst_16 = arith.constant 0.000000e+00 : f32
    %34 = vector.broadcast %cst_16 : f32 to vector<32x512xf32>
    %35 = arith.cmpf oge, %33, %34 : vector<32x512xf32>
    %cst_17 = arith.constant 1.000000e+00 : f32
    %cst_18 = arith.constant -1.000000e+00 : f32
    %36 = vector.broadcast %cst_17 : f32 to vector<32x512xf32>
    %37 = vector.broadcast %cst_18 : f32 to vector<32x512xf32>
    %38 = arith.select %35, %36, %37 : vector<32x512xi1>, vector<32x512xf32>
    %39 = math.absf %33 : vector<32x512xf32>
    %cst_19 = arith.constant 0.327591091 : f32
    %40 = vector.broadcast %cst_19 : f32 to vector<32x512xf32>
    %41 = arith.mulf %40, %39 : vector<32x512xf32>
    %cst_20 = arith.constant 1.000000e+00 : f32
    %42 = vector.broadcast %cst_20 : f32 to vector<32x512xf32>
    %43 = arith.addf %42, %41 : vector<32x512xf32>
    %44 = tpu.reciprocal %43 {approx = true} : vector<32x512xf32> -> vector<32x512xf32>
    %cst_21 = arith.constant 1.06140542 : f32
    %45 = vector.broadcast %cst_21 : f32 to vector<32x512xf32>
    %46 = arith.mulf %45, %44 : vector<32x512xf32>
    %cst_22 = arith.constant -1.45315206 : f32
    %47 = vector.broadcast %cst_22 : f32 to vector<32x512xf32>
    %48 = arith.addf %46, %47 : vector<32x512xf32>
    %49 = arith.mulf %48, %44 : vector<32x512xf32>
    %cst_23 = arith.constant 1.42141378 : f32
    %50 = vector.broadcast %cst_23 : f32 to vector<32x512xf32>
    %51 = arith.addf %49, %50 : vector<32x512xf32>
    %52 = arith.mulf %51, %44 : vector<32x512xf32>
    %cst_24 = arith.constant -0.284496725 : f32
    %53 = vector.broadcast %cst_24 : f32 to vector<32x512xf32>
    %54 = arith.addf %52, %53 : vector<32x512xf32>
    %55 = arith.mulf %54, %44 : vector<32x512xf32>
    %cst_25 = arith.constant 0.254829586 : f32
    %56 = vector.broadcast %cst_25 : f32 to vector<32x512xf32>
    %57 = arith.addf %55, %56 : vector<32x512xf32>
    %58 = arith.mulf %57, %44 : vector<32x512xf32>
    %cst_26 = arith.constant 0.000000e+00 : f32
    %59 = vector.broadcast %cst_26 : f32 to vector<32x512xf32>
    %60 = arith.subf %59, %39 : vector<32x512xf32>
    %61 = arith.mulf %60, %39 : vector<32x512xf32>
    %62 = math.exp %61 : vector<32x512xf32>
    %63 = arith.mulf %58, %62 : vector<32x512xf32>
    %cst_27 = arith.constant 1.000000e+00 : f32
    %64 = vector.broadcast %cst_27 : f32 to vector<32x512xf32>
    %65 = arith.subf %64, %63 : vector<32x512xf32>
    %66 = arith.mulf %38, %65 : vector<32x512xf32>
    %cst_28 = arith.constant 1.000000e+00 : f32
    %67 = vector.broadcast %cst_28 : f32 to vector<32x512xf32>
    %68 = arith.addf %67, %66 : vector<32x512xf32>
    %69 = arith.mulf %31, %68 : vector<32x512xf32>
    %70 = arith.truncf %69 : vector<32x512xf32> to vector<32x512xbf16>
    %c0_29 = arith.constant 0 : index
    %c0_30 = arith.constant 0 : index
    %71 = vector.load %arg7[%c0_29, %c0_30] : memref<32x512xbf16, #tpu.memory_space<vmem>>, vector<32x512xbf16>
    tpu.vector_store %arg7[%c0_29, %c0_30], %70 {strides = array<i32>} : memref<32x512xbf16, #tpu.memory_space<vmem>>, vector<32x512xbf16>,
    return
  }
  func.func @transform_0(%arg0: i32, %arg1: i32) -> (i32, i32) {
    %c0_i32 = arith.constant 0 : i32
    %c0_i32_0 = arith.constant 0 : i32
    return %arg0, %c0_i32 : i32, i32
  }
  func.func @transform_1(%arg0: i32, %arg1: i32) -> (i32, i32) {
    %c0_i32 = arith.constant 0 : i32
    %c0_i32_0 = arith.constant 0 : i32
    %c0_i32_1 = arith.constant 0 : i32
    return %c0_i32, %c0_i32_0 : i32, i32
  }
  func.func @transform_2(%arg0: i32, %arg1: i32) -> (i32, i32) {
    %c0_i32 = arith.constant 0 : i32
    %c0_i32_0 = arith.constant 0 : i32
    %c0_i32_1 = arith.constant 0 : i32
    return %c0_i32, %c0_i32_0 : i32, i32
  }
  func.func @transform_3(%arg0: i32, %arg1: i32) -> (i32, i32) {
    %c0_i32 = arith.constant 0 : i32
    %c0_i32_0 = arith.constant 0 : i32
    return %c0_i32, %arg1 : i32, i32
  }
  func.func @transform_4(%arg0: i32, %arg1: i32) -> (i32, i32) {
    %c0_i32 = arith.constant 0 : i32
    %c0_i32_0 = arith.constant 0 : i32
    return %c0_i32, %arg1 : i32, i32
  }
  func.func @transform_5(%arg0: i32, %arg1: i32) -> (i32, i32) {
    %c0_i32 = arith.constant 0 : i32
    return %arg0, %arg1 : i32, i32
  }
}

module attributes {stable_mosaic.version = 11 : i64} {
  func.func @_linear_ls_res_kernel(%arg0: i32, %arg1: i32, %arg2: i32, %arg3: memref<32x512xbf16, #tpu.memory_space<vmem>>, %arg4: memref<512x128xbf16, #tpu.memory_space<vmem>>, %arg5: memref<1x128xf32, #tpu.memory_space<vmem>>, %arg6: memref<1x128xf32, #tpu.memory_space<vmem>>, %arg7: memref<32x128xbf16, #tpu.memory_space<vmem>>, %arg8: memref<32x128xbf16, #tpu.memory_space<vmem>>, %arg9: memref<32x128xf32, #tpu.memory_space<vmem>>) attributes {dimension_semantics = [#tpu.dimension_semantics<parallel>, #tpu.dimension_semantics<parallel>, #tpu.dimension_semantics<arbitrary>], iteration_bounds = array<i64: 1, 1, 1>, scalar_prefetch = 0 : i64, scratch_operands = 1 : i64, tpu.core_type = #tpu.core_type<tc>, window_params = [{transform_indices = @transform_0, window_bounds = array<i64: 32, 512>}, {transform_indices = @transform_1, window_bounds = array<i64: 512, 128>}, {transform_indices = @transform_2, window_bounds = array<i64: 1, 128>}, {transform_indices = @transform_3, window_bounds = array<i64: 1, 128>}, {transform_indices = @transform_4, window_bounds = array<i64: 32, 128>}, {transform_indices = @transform_5, window_bounds = array<i64: 32, 128>}]} {
    %c0_i32 = arith.constant 0 : i32
    %0 = arith.cmpi eq, %arg2, %c0_i32 : i32
    %1 = arith.extui %0 : i1 to i32
    %c0_i32_0 = arith.constant 0 : i32
    %2 = arith.cmpi ne, %1, %c0_i32_0 : i32
    scf.if %2 {
      %cst_10 = arith.constant 0.000000e+00 : f32
      %12 = vector.broadcast %cst_10 : f32 to vector<32x128xf32>
      %c0_11 = arith.constant 0 : index
      %c0_12 = arith.constant 0 : index
      %13 = vector.load %arg9[%c0_11, %c0_12] : memref<32x128xf32, #tpu.memory_space<vmem>>, vector<32x128xf32>
      tpu.vector_store %arg9[%c0_11, %c0_12], %12 {strides = array<i32>} : memref<32x128xf32, #tpu.memory_space<vmem>>, vector<32x128xf32>,
    } else {
    }
    %c0 = arith.constant 0 : index
    %c0_1 = arith.constant 0 : index
    %3 = vector.load %arg9[%c0, %c0_1] : memref<32x128xf32, #tpu.memory_space<vmem>>, vector<32x128xf32>
    %c0_2 = arith.constant 0 : index
    %c0_3 = arith.constant 0 : index
    %4 = vector.load %arg3[%c0_2, %c0_3] : memref<32x512xbf16, #tpu.memory_space<vmem>>, vector<32x512xbf16>
    %c0_4 = arith.constant 0 : index
    %c0_5 = arith.constant 0 : index
    %5 = vector.load %arg4[%c0_4, %c0_5] : memref<512x128xbf16, #tpu.memory_space<vmem>>, vector<512x128xbf16>
    %cst = arith.constant dense<0.000000e+00> : vector<32x128xf32>
    %6 = tpu.matmul %4, %5, %cst {dimension_numbers = #tpu.dot_dimension_numbers<[1], [0], [0], [1], [0, 0, 1, 1], [], []>} : vector<32x512xbf16>, vector<512x128xbf16>, vector<32x128xf32> -> vector<32x128xf32>
    %7 = arith.addf %3, %6 : vector<32x128xf32>
    %c0_6 = arith.constant 0 : index
    %c0_7 = arith.constant 0 : index
    %8 = vector.load %arg9[%c0_6, %c0_7] : memref<32x128xf32, #tpu.memory_space<vmem>>, vector<32x128xf32>
    tpu.vector_store %arg9[%c0_6, %c0_7], %7 {strides = array<i32>} : memref<32x128xf32, #tpu.memory_space<vmem>>, vector<32x128xf32>,
    %c0_i32_8 = arith.constant 0 : i32
    %9 = arith.cmpi eq, %arg2, %c0_i32_8 : i32
    %10 = arith.extui %9 : i1 to i32
    %c0_i32_9 = arith.constant 0 : i32
    %11 = arith.cmpi ne, %10, %c0_i32_9 : i32
    scf.if %11 {
      %c0_10 = arith.constant 0 : index
      %c0_11 = arith.constant 0 : index
      %12 = vector.load %arg7[%c0_10, %c0_11] : memref<32x128xbf16, #tpu.memory_space<vmem>>, vector<32x128xbf16>
      %13 = arith.extf %12 : vector<32x128xbf16> to vector<32x128xf32>
      %c0_12 = arith.constant 0 : index
      %c0_13 = arith.constant 0 : index
      %14 = vector.load %arg6[%c0_12, %c0_13] : memref<1x128xf32, #tpu.memory_space<vmem>>, vector<1x128xf32>
      %c0_14 = arith.constant 0 : index
      %c0_15 = arith.constant 0 : index
      %15 = vector.load %arg9[%c0_14, %c0_15] : memref<32x128xf32, #tpu.memory_space<vmem>>, vector<32x128xf32>
      %c0_16 = arith.constant 0 : index
      %c0_17 = arith.constant 0 : index
      %16 = vector.load %arg5[%c0_16, %c0_17] : memref<1x128xf32, #tpu.memory_space<vmem>>, vector<1x128xf32>
      %17 = vector.broadcast %16 : vector<1x128xf32> to vector<32x128xf32>
      %18 = arith.addf %15, %17 : vector<32x128xf32>
      %19 = vector.broadcast %14 : vector<1x128xf32> to vector<32x128xf32>
      %20 = arith.mulf %19, %18 : vector<32x128xf32>
      %21 = arith.addf %13, %20 : vector<32x128xf32>
      %22 = arith.truncf %21 : vector<32x128xf32> to vector<32x128xbf16>
      %c0_18 = arith.constant 0 : index
      %c0_19 = arith.constant 0 : index
      %23 = vector.load %arg8[%c0_18, %c0_19] : memref<32x128xbf16, #tpu.memory_space<vmem>>, vector<32x128xbf16>
      tpu.vector_store %arg8[%c0_18, %c0_19], %22 {strides = array<i32>} : memref<32x128xbf16, #tpu.memory_space<vmem>>, vector<32x128xbf16>,
    } else {
    }
    return
  }
  func.func @transform_0(%arg0: i32, %arg1: i32, %arg2: i32) -> (i32, i32) {
    %c0_i32 = arith.constant 0 : i32
    return %arg0, %arg2 : i32, i32
  }
  func.func @transform_1(%arg0: i32, %arg1: i32, %arg2: i32) -> (i32, i32) {
    %c0_i32 = arith.constant 0 : i32
    return %arg2, %arg1 : i32, i32
  }
  func.func @transform_2(%arg0: i32, %arg1: i32, %arg2: i32) -> (i32, i32) {
    %c0_i32 = arith.constant 0 : i32
    %c0_i32_0 = arith.constant 0 : i32
    return %c0_i32, %arg1 : i32, i32
  }
  func.func @transform_3(%arg0: i32, %arg1: i32, %arg2: i32) -> (i32, i32) {
    %c0_i32 = arith.constant 0 : i32
    %c0_i32_0 = arith.constant 0 : i32
    return %c0_i32, %arg1 : i32, i32
  }
  func.func @transform_4(%arg0: i32, %arg1: i32, %arg2: i32) -> (i32, i32) {
    %c0_i32 = arith.constant 0 : i32
    return %arg0, %arg1 : i32, i32
  }
  func.func @transform_5(%arg0: i32, %arg1: i32, %arg2: i32) -> (i32, i32) {
    %c0_i32 = arith.constant 0 : i32
    return %arg0, %arg1 : i32, i32
  }
}

module attributes {stable_mosaic.version = 11 : i64} {
  func.func @_layernorm_kernel(%arg0: i32, %arg1: memref<32x128xbf16, #tpu.memory_space<vmem>>, %arg2: memref<1x128xf32, #tpu.memory_space<vmem>>, %arg3: memref<1x128xf32, #tpu.memory_space<vmem>>, %arg4: memref<32x128xf32, #tpu.memory_space<vmem>>) attributes {dimension_semantics = [#tpu.dimension_semantics<parallel>], iteration_bounds = array<i64: 1>, scalar_prefetch = 0 : i64, scratch_operands = 0 : i64, tpu.core_type = #tpu.core_type<tc>, window_params = [{transform_indices = @transform_0, window_bounds = array<i64: 32, 128>}, {pipeline_mode = #tpu.pipeline_mode<synchronous>, transform_indices = @transform_1, window_bounds = array<i64: 1, 128>}, {pipeline_mode = #tpu.pipeline_mode<synchronous>, transform_indices = @transform_2, window_bounds = array<i64: 1, 128>}, {transform_indices = @transform_3, window_bounds = array<i64: 32, 128>}]} {
    %c0 = arith.constant 0 : index
    %c0_0 = arith.constant 0 : index
    %0 = vector.load %arg1[%c0, %c0_0] : memref<32x128xbf16, #tpu.memory_space<vmem>>, vector<32x128xbf16>
    %1 = arith.extf %0 : vector<32x128xbf16> to vector<32x128xf32>
    %cst = arith.constant dense<0.000000e+00> : vector<32xf32>
    %2 = vector.multi_reduction <add>, %1, %cst [1] : vector<32x128xf32> to vector<32xf32>
    %3 = vector.shape_cast %2 : vector<32xf32> to vector<32x1xf32>
    %cst_1 = arith.constant 1.280000e+02 : f32
    %4 = vector.broadcast %cst_1 : f32 to vector<32x1xf32>
    %5 = arith.divf %3, %4 : vector<32x1xf32>
    %6 = vector.broadcast %5 : vector<32x1xf32> to vector<32x128xf32>
    %7 = arith.subf %1, %6 : vector<32x128xf32>
    %8 = arith.mulf %7, %7 : vector<32x128xf32>
    %cst_2 = arith.constant dense<0.000000e+00> : vector<32xf32>
    %9 = vector.multi_reduction <add>, %8, %cst_2 [1] : vector<32x128xf32> to vector<32xf32>
    %10 = vector.shape_cast %9 : vector<32xf32> to vector<32x1xf32>
    %cst_3 = arith.constant 1.280000e+02 : f32
    %11 = vector.broadcast %cst_3 : f32 to vector<32x1xf32>
    %12 = arith.divf %10, %11 : vector<32x1xf32>
    %cst_4 = arith.constant 9.99999997E-7 : f32
    %13 = vector.broadcast %cst_4 : f32 to vector<32x1xf32>
    %14 = arith.addf %12, %13 : vector<32x1xf32>
    %15 = math.rsqrt %14 : vector<32x1xf32>
    %16 = vector.broadcast %15 : vector<32x1xf32> to vector<32x128xf32>
    %17 = arith.mulf %7, %16 : vector<32x128xf32>
    %c0_5 = arith.constant 0 : index
    %c0_6 = arith.constant 0 : index
    %18 = vector.load %arg2[%c0_5, %c0_6] : memref<1x128xf32, #tpu.memory_space<vmem>>, vector<1x128xf32>
    %19 = vector.broadcast %18 : vector<1x128xf32> to vector<32x128xf32>
    %20 = arith.mulf %17, %19 : vector<32x128xf32>
    %c0_7 = arith.constant 0 : index
    %c0_8 = arith.constant 0 : index
    %21 = vector.load %arg3[%c0_7, %c0_8] : memref<1x128xf32, #tpu.memory_space<vmem>>, vector<1x128xf32>
    %22 = vector.broadcast %21 : vector<1x128xf32> to vector<32x128xf32>
    %23 = arith.addf %20, %22 : vector<32x128xf32>
    %c0_9 = arith.constant 0 : index
    %c0_10 = arith.constant 0 : index
    %24 = vector.load %arg4[%c0_9, %c0_10] : memref<32x128xf32, #tpu.memory_space<vmem>>, vector<32x128xf32>
    tpu.vector_store %arg4[%c0_9, %c0_10], %23 {strides = array<i32>} : memref<32x128xf32, #tpu.memory_space<vmem>>, vector<32x128xf32>,
    return
  }
  func.func @transform_0(%arg0: i32) -> (i32, i32) {
    %c0_i32 = arith.constant 0 : i32
    %c0_i32_0 = arith.constant 0 : i32
    return %arg0, %c0_i32 : i32, i32
  }
  func.func @transform_1(%arg0: i32) -> (i32, i32) {
    %c0_i32 = arith.constant 0 : i32
    %c0_i32_0 = arith.constant 0 : i32
    %c0_i32_1 = arith.constant 0 : i32
    return %c0_i32, %c0_i32_0 : i32, i32
  }
  func.func @transform_2(%arg0: i32) -> (i32, i32) {
    %c0_i32 = arith.constant 0 : i32
    %c0_i32_0 = arith.constant 0 : i32
    %c0_i32_1 = arith.constant 0 : i32
    return %c0_i32, %c0_i32_0 : i32, i32
  }
  func.func @transform_3(%arg0: i32) -> (i32, i32) {
    %c0_i32 = arith.constant 0 : i32
    %c0_i32_0 = arith.constant 0 : i32
    return %arg0, %c0_i32 : i32, i32
  }
}

</mosaic_0001>

<bundles_post_ra>
// kernel: dinov2_encoder_forward.15
= control target key start
LH: loop header
LB: loop body
LE: loop exit
PB: predicated region body
PF: predicated region fallthrough
CT: control target
= control target key end

     0   :  { %s393_s1 = inlined_call_operand.vmem [shape: bf16[128,128], index: 1, kind: input, shape index: {}]   ;;  %s394_s0 = inlined_call_operand.vmem [shape: bf16[32,128], index: 0, kind: input, shape index: {}]   ;;  %s395_s2 = inlined_call_operand.vmem [shape: f32[1,128], index: 2, kind: input, shape index: {}]   ;;  %s396_s3 = inlined_call_operand.vmem [shape: f32[1,128], index: 3, kind: input, shape index: {}]   ;;  %s397_s4 = inlined_call_operand.vmem [shape: bf16[32,128], index: 4, kind: input, shape index: {}]   ;;  %s398_s5 = inlined_call_operand.vmem [shape: bf16[32,128], index: 5, kind: output, shape index: {}]  }
   0x1   :  { %v305_v0 = vld [vmem:[%s393_s1 + $0x38] sm:$0xff]   ;;  %v306_v1 = vld [vmem:[%s393_s1 + $0x30] sm:$0xff]   ;;  %v307_v2 = vld [vmem:[%s393_s1 + $0x28] sm:$0xff]  }
   0x2   :  { %285 = vmatprep.subr.bf16.mxu0 %v305_v0  ;;  %v308_v3 = vld [vmem:[%s393_s1 + $0x20] sm:$0xff]   ;;  %v309_v5 = vld [vmem:[%s393_s1 + $0x18] sm:$0xff]   ;;  %v310_v6 = vld [vmem:[%s393_s1 + $0x10] sm:$0xff]  }
   0x3   :  { %286 = vmatpush3.bf16.msra.mxu0 %v305_v0  ;;  %v313_v4 = vld [vmem:[%s394_s0] sm:$0xff]   ;;  %v311_v7 = vld [vmem:[%s393_s1 + $0x8] sm:$0xff]  }
   0x4   :  { %287 = vmatprep.subr.bf16.mxu0 %v306_v1  ;;  %301 = vmatprep.mubr.bf16.mxu0 %v313_v4  ;;  %v312_v8 = vld [vmem:[%s393_s1] sm:$0xff]   ;;  %v314_v9 = vld [vmem:[%s394_s0 + $0x8] sm:$0xff]  }
   0x5   :  { %v245_v10 = vld [vmem:[%s395_s2] ss:$0 sm:$0xff]  ;;  %v273_v13 = vld [vmem:[%s397_s4 + $0x8] sm:$0xff]  }
   0x6   :  { %v246_v14 = vld [vmem:[%s396_s3] ss:$0 sm:$0xff]  ;;  %v261_v19 = vunpack.c.l.bf16 %v273_v13  ;;  %v262_v21 = vunpack.c.h.bf16 %v273_v13 }
   0x7   :  { %288 = vmatpush3.bf16.msra.mxu0 %v306_v1  ;;  %v256_v16 = vld [vmem:[%s397_s4] sm:$0xff]  }
   0x8   :  { %289 = vmatprep.subr.bf16.mxu0 %v307_v2  ;;  %v257_v23 = vunpack.c.l.bf16 %v256_v16  ;;  %v258_v27 = vunpack.c.h.bf16 %v256_v16 }
   0xb   :  { %290 = vmatpush3.bf16.msra.mxu0 %v307_v2 }
   0xc   :  { %291 = vmatprep.subr.bf16.mxu0 %v308_v3 }
   0xf   :  { %292 = vmatpush3.bf16.msra.mxu0 %v308_v3 }
  0x10   :  { %293 = vmatprep.subr.bf16.mxu0 %v309_v5 }
  0x13   :  { %294 = vmatpush3.bf16.msra.mxu0 %v309_v5 }
  0x14   :  { %295 = vmatprep.subr.bf16.mxu0 %v310_v6 }
  0x17   :  { %296 = vmatpush3.bf16.msra.mxu0 %v310_v6 }
  0x18   :  { %297 = vmatprep.subr.bf16.mxu0 %v311_v7 }
  0x1b   :  { %298 = vmatpush3.bf16.msra.mxu0 %v311_v7 }
  0x1c   :  { %299 = vmatprep.subr.bf16.mxu0 %v312_v8 }
  0x1f   :  { %300 = vmatpush3.bf16.msra.mxu0 %v312_v8 }
  0x22   :  { %302 = vmatmul.mubr.bf16.vlgmr.msra.gmra.mxu0 %v314_v9 }
  0xe2   :  { %v303_v11 = vpop.f32.mrf.mxu0 }
  0xe3   :  { %v195_v12 = vadd.f32 %v303_v11, %v245_v10 }
  0xe4   :  { %v147_v15 = vpop.f32.mrf.mxu0 }
  0xe5   :  { %v193_v17 = vadd.f32 %v245_v10, %v147_v15  ;;  %v205_v20 = vmul.f32 %v246_v14, %v195_v12 }
  0xe6   :  { %v304_v18 = vpop.f32.mrf.mxu0 }
  0xe7   :  { %v196_v22 = vadd.f32 %v304_v18, %v245_v10  ;;  %v203_v25 = vmul.f32 %v246_v14, %v193_v17  ;;  %v209_v29 = vadd.f32 %v261_v19, %v205_v20 }
  0xe8   :  { %v150_v24 = vpop.f32.mrf.mxu0 }
  0xe9   :  { %v206_v26 = vmul.f32 %v246_v14, %v196_v22  ;;  %v194_v28 = vadd.f32 %v245_v10, %v150_v24  ;;  %v207_v32 = vadd.f32 %v257_v23, %v203_v25 }
  0xeb   :  { %v210_v30 = vadd.f32 %v262_v21, %v206_v26  ;;  %v204_v31 = vmul.f32 %v246_v14, %v194_v28 }
  0xed   :  { %v271_v33 = vpack.c.bf16 %v210_v30, %v209_v29  ;;  %v208_v34 = vadd.f32 %v258_v27, %v204_v31 }
  0xef   :  { %274 = vst [vmem:[%s398_s5 + $0x8] sm:$0xff] %v271_v33   ;;  %v266_v35 = vpack.c.bf16 %v208_v34, %v207_v32 }
  0xf1   :  { %267 = vst [vmem:[%s398_s5] sm:$0xff] %v266_v35  }

// kernel: dinov2_encoder_forward.13
= control target key start
LH: loop header
LB: loop body
LE: loop exit
PB: predicated region body
PF: predicated region fallthrough
CT: control target
= control target key end

     0   :  { %v551_v41 = vmov 0   ;;  %s713_s0 = inlined_call_operand.vmem [shape: bf16[32,128], index: 0, kind: input, shape index: {}]   ;;  %s714_s3 = inlined_call_operand.vmem [shape: bf16[128,384], index: 3, kind: input, shape index: {}]   ;;  %s715_s1 = inlined_call_operand.vmem [shape: f32[1,128], index: 1, kind: input, shape index: {}]   ;;  %s716_s2 = inlined_call_operand.vmem [shape: f32[1,128], index: 2, kind: input, shape index: {}]   ;;  %s717_s4 = inlined_call_operand.vmem [shape: f32[1,384], index: 4, kind: input, shape index: {}]   ;;  %s718_s5 = inlined_call_operand.vmem [shape: bf16[32,384], index: 5, kind: output, shape index: {}]  }
   0x1   :  { %v472_v0 = vld [vmem:[%s713_s0] sm:$0xff]   ;;  %v479_v1 = vld [vmem:[%s713_s0 + $0x8] sm:$0xff]   ;;  %v516_v25 = vld [vmem:[%s714_s3 + $0xb0] ss:$12 sps:$4 sm:$0xff]   ;;  %307 = vmatprep.mubr.bf16.mxu0 %v551_v41 }
   0x2   :  { %v473_v2 = vunpack.c.l.bf16 %v472_v0  ;;  %v477_v3 = vunpack.c.l.bf16 %v479_v1  ;;  %v474_v4 = vunpack.c.h.bf16 %v472_v0  ;;  %v478_v5 = vunpack.c.h.bf16 %v479_v1  ;;  %v511_v6 = vld [vmem:[%s714_s3 + $0xac] ss:$12 sps:$4 sm:$0xff]   ;;  %v513_v7 = vld [vmem:[%s714_s3 + $0xa8] ss:$12 sps:$4 sm:$0xff]   ;;  %v517_v26 = vld [vmem:[%s714_s3 + $0x90] ss:$12 sps:$4 sm:$0xff]   ;;  %490 = vmatprep.subr.bf16.mxu1 %v516_v25 }
   0x3   :  { %275 = vmatprep.subr.bf16.mxu0 %v511_v6  ;;  %v514_v24 = vld [vmem:[%s714_s3 + $0x94] ss:$12 sps:$4 sm:$0xff]   ;;  %491 = vmatpush3.bf16.msra.mxu1 %v516_v25  ;;  %v518_v27 = vld [vmem:[%s714_s3 + $0x7c] ss:$12 sps:$4 sm:$0xff]   ;;  %v520_v28 = vld [vmem:[%s714_s3 + $0x98] ss:$12 sps:$4 sm:$0xff]  }
   0x4   :  { %29 = vadd.xlane.f32.xlu0 %v473_v2  ;;  %33 = vadd.xlane.f32.xlu1 %v477_v3  ;;  %v521_v29 = vld [vmem:[%s714_s3 + $0x78] ss:$12 sps:$4 sm:$0xff]   ;;  %v524_v31 = vld [vmem:[%s714_s3 + $0x80] ss:$12 sps:$4 sm:$0xff]   ;;  %v528_v34 = vld [vmem:[%s714_s3 + $0x68] ss:$12 sps:$4 sm:$0xff]  }
   0x5   :  { %276 = vmatpush1.bf16.msra.mxu0 %v513_v7  ;;  %492 = vmatprep.subr.bf16.mxu1 %v520_v28  ;;  %v522_v30 = vld [vmem:[%s714_s3 + $0x64] ss:$12 sps:$4 sm:$0xff]   ;;  %v525_v32 = vld [vmem:[%s714_s3 + $0x60] ss:$12 sps:$4 sm:$0xff]   ;;  %v529_v35 = vld [vmem:[%s714_s3 + $0x48] ss:$12 sps:$4 sm:$0xff]  }
   0x6   :  { %277 = vmatprep.subr.bf16.mxu0 %v514_v24  ;;  %v526_v33 = vld [vmem:[%s714_s3 + $0x4c] ss:$12 sps:$4 sm:$0xff]   ;;  %v530_v36 = vld [vmem:[%s714_s3 + $0x34] ss:$12 sps:$4 sm:$0xff]   ;;  %v532_v37 = vld [vmem:[%s714_s3 + $0x50] ss:$12 sps:$4 sm:$0xff]  }
   0x7   :  { %493 = vmatpush3.bf16.msra.mxu1 %v520_v28  ;;  %v533_v38 = vld [vmem:[%s714_s3 + $0x30] ss:$12 sps:$4 sm:$0xff]   ;;  %v536_v40 = vld [vmem:[%s714_s3 + $0x38] ss:$12 sps:$4 sm:$0xff]   ;;  %v540_v44 = vld [vmem:[%s714_s3 + $0x20] ss:$12 sps:$4 sm:$0xff]  }
   0x8   :  { %31 = vadd.xlane.f32.xlu0 %v474_v4  ;;  %35 = vadd.xlane.f32.xlu1 %v478_v5  ;;  %v534_v39 = vld [vmem:[%s714_s3 + $0x1c] ss:$12 sps:$4 sm:$0xff]   ;;  %v537_v42 = vld [vmem:[%s714_s3 + $0x18] ss:$12 sps:$4 sm:$0xff]   ;;  %v541_v45 = vld [vmem:[%s714_s3] ss:$12 sps:$4 sm:$0xff]  }
   0x9   :  { %278 = vmatpush1.bf16.msra.mxu0 %v517_v26  ;;  %494 = vmatprep.subr.bf16.mxu1 %v524_v31  ;;  %v538_v43 = vld [vmem:[%s714_s3 + $0x4] ss:$12 sps:$4 sm:$0xff]   ;;  %v542_v46 = vld [vmem:[%s714_s3 + $0x8] ss:$12 sps:$4 sm:$0xff]   ;;  %v429_v61 = vld [vmem:[%s715_s1] ss:$0 sm:$0xff] }
   0xa   :  { %279 = vmatprep.subr.bf16.mxu0 %v518_v27 }
   0xb   :  { %495 = vmatpush3.bf16.msra.mxu1 %v524_v31 }
   0xc   :  { %496 = vmatprep.subr.bf16.mxu1 %v528_v34 }
   0xd   :  { %280 = vmatpush1.bf16.msra.mxu0 %v521_v29 }
   0xe   :  { %281 = vmatprep.subr.bf16.mxu0 %v522_v30 }
   0xf   :  { %497 = vmatpush3.bf16.msra.mxu1 %v528_v34 }
  0x10   :  { %498 = vmatprep.subr.bf16.mxu1 %v532_v37 }
  0x11   :  { %282 = vmatpush1.bf16.msra.mxu0 %v525_v32 }
  0x12   :  { %283 = vmatprep.subr.bf16.mxu0 %v526_v33 }
  0x13   :  { %499 = vmatpush3.bf16.msra.mxu1 %v532_v37 }
  0x14   :  { %500 = vmatprep.subr.bf16.mxu1 %v536_v40 }
  0x15   :  { %284 = vmatpush1.bf16.msra.mxu0 %v529_v35 }
  0x16   :  { %285 = vmatprep.subr.bf16.mxu0 %v530_v36 }
  0x17   :  { %501 = vmatpush3.bf16.msra.mxu1 %v536_v40 }
  0x18   :  { %502 = vmatprep.subr.bf16.mxu1 %v540_v44 }
  0x19   :  { %286 = vmatpush1.bf16.msra.mxu0 %v533_v38 }
  0x1a   :  { %287 = vmatprep.subr.bf16.mxu0 %v534_v39 }
  0x1b   :  { %503 = vmatpush3.bf16.msra.mxu1 %v540_v44 }
  0x1c   :  { %504 = vmatprep.subr.bf16.mxu1 %v542_v46 }
  0x1d   :  { %288 = vmatpush1.bf16.msra.mxu0 %v537_v42 }
  0x1e   :  { %289 = vmatprep.subr.bf16.mxu0 %v538_v43 }
  0x1f   :  { %505 = vmatpush3.bf16.msra.mxu1 %v542_v46 }
  0x21   :  { %290 = vmatpush1.bf16.msra.mxu0 %v541_v45 }
  0x8d   :  { %v30_v8 = vpop.xlane.xlu0 %29  ;;  %v34_v9 = vpop.xlane.xlu1 %33 }
  0x8e   :  { %v38_v10 = vmul.f32 0.0078125, %v30_v8  ;;  %v40_v11 = vmul.f32 0.0078125, %v34_v9 }
  0x90   :  { %v594_v12 = vsub.f32 %v473_v2, %v38_v10  ;;  %v596_v13 = vsub.f32 %v477_v3, %v40_v11  ;;  %v430_v2 = vld [vmem:[%s716_s2] ss:$0 sm:$0xff] }
  0x91   :  { %v32_v14 = vpop.xlane.xlu0 %31  ;;  %v36_v15 = vpop.xlane.xlu1 %35 }
  0x92   :  { %v39_v16 = vmul.f32 0.0078125, %v32_v14  ;;  %v46_v17 = vmul.f32 %v594_v12, %v594_v12  ;;  %v41_v18 = vmul.f32 0.0078125, %v36_v15  ;;  %v48_v21 = vmul.f32 %v596_v13, %v596_v13 }
  0x94   :  { %v600_v19 = vsub.f32 %v474_v4, %v39_v16  ;;  %50 = vadd.xlane.f32.xlu0 %v46_v17  ;;  %v602_v20 = vsub.f32 %v478_v5, %v41_v18  ;;  %v132_v16 = vlaneseq }
  0x96   :  { %v47_v22 = vmul.f32 %v600_v19, %v600_v19  ;;  %v49_v23 = vmul.f32 %v602_v20, %v602_v20  ;;  %v133_v17 = vshrl.u32 %v132_v16, 7 }
  0x98   :  { %54 = vadd.xlane.f32.xlu0 %v48_v21  ;;  %52 = vadd.xlane.f32.xlu1 %v47_v22  ;;  %v138_v18 = vsub.s32 1, %v133_v17 }
  0x9c   :  { %56 = vadd.xlane.f32.xlu1 %v49_v23 }
 0x11d   :  { %v51_v47 = vpop.xlane.xlu0 %50 }
 0x11e   :  { %v58_v48 = vmul.f32 0.0078125, %v51_v47 }
 0x120   :  { %v62_v49 = vadd.f32 1e-06, %v58_v48 }
 0x121   :  { %v53_v50 = vpop.xlane.xlu1 %52  ;;  %v55_v51 = vpop.xlane.xlu0 %54 }
 0x122   :  { %543 = vrsqrt.f32 %v62_v49  ;;  %v59_v52 = vmul.f32 0.0078125, %v53_v50  ;;  %v60_v53 = vmul.f32 0.0078125, %v55_v51 }
 0x124   :  { %v63_v54 = vadd.f32 1e-06, %v59_v52  ;;  %v64_v55 = vadd.f32 1e-06, %v60_v53 }
 0x125   :  { %v57_v56 = vpop.xlane.xlu1 %56 }
 0x126   :  { %545 = vrsqrt.f32 %v63_v54  ;;  %v61_v57 = vmul.f32 0.0078125, %v57_v56 }
 0x127   :  { %547 = vrsqrt.f32 %v64_v55 }
 0x128   :  { %v65_v58 = vadd.f32 1e-06, %v61_v57 }
 0x12a   :  { %549 = vrsqrt.f32 %v65_v58 }
 0x12f   :  { %v544_v59 = vpop.eup %543 }
 0x130   :  { %v70_v60 = vmul.f32 %v544_v59, %v594_v12 }
 0x132   :  { %v81_v1 = vmul.f32 %v429_v61, %v70_v60 }
 0x133   :  { %v546_v62 = vpop.eup %545 }
 0x134   :  { %v548_v63 = vpop.eup %547  ;;  %v71_v0 = vmul.f32 %v546_v62, %v600_v19  ;;  %v92_v6 = vadd.f32 %v430_v2, %v81_v1  ;;  %v130_v19 = vld [vmem:[%s717_s4] sm:$0x7] }
 0x135   :  { %v72_v3 = vmul.f32 %v548_v63, %v596_v13  ;;  %v134_v13 = vsub.s32 0, %v133_v17  ;;  %v139_v22 = vrot.slane %v130_v19, %v138_v18 }
 0x136   :  { %v82_v4 = vmul.f32 %v429_v61, %v71_v0 }
 0x137   :  { %v550_v5 = vpop.eup %549  ;;  %v83_v9 = vmul.f32 %v429_v61, %v72_v3  ;;  %v135_v21 = vrot.slane %v130_v19, %v134_v13 }
 0x138   :  { %v93_v7 = vadd.f32 %v430_v2, %v82_v4  ;;  %v73_v8 = vmul.f32 %v550_v5, %v602_v20  ;;  %v142_v20 = vsub.s32 2, %v133_v17 }
 0x139   :  { %v94_v12 = vadd.f32 %v430_v2, %v83_v9 }
 0x13a   :  { %v96_v10 = vpack.c.bf16 %v93_v7, %v92_v6  ;;  %v84_v11 = vmul.f32 %v429_v61, %v73_v8  ;;  %v143_v24 = vrot.slane %v130_v19, %v142_v20 }
 0x13c   :  { %308 = vmatmul.mubr.bf16.vlgmr.msra.gmra.mxu0 %v96_v10  ;;  %506 = vmatprep.mubr.bf16.mxu1 %v96_v10  ;;  %v95_v14 = vadd.f32 %v430_v2, %v84_v11 }
 0x13d   :  { %317 = vmatprep.mubr.bf16.mxu0 %v551_v41 }
 0x13e   :  { %v97_v15 = vpack.c.bf16 %v95_v14, %v94_v12 }
 0x140   :  { %507 = vmatmul.mubr.bf16.vlgmr.msra.gmra.mxu1 %v97_v15 }
 0x144   :  { %318 = vmatmul.mubr.bf16.gmra.mxu0 %v97_v15 }
 0x1fc   :  { %v309_v23 = vpop.f32.mrf.mxu0 }
 0x1fd   :  { %v310_v26 = vadd.f32 %v309_v23, %v135_v21 }
 0x1fe   :  { %v311_v25 = vpop.f32.mrf.mxu0 }
 0x1ff   :  { %v312_v27 = vadd.f32 %v311_v25, %v139_v22 }
 0x200   :  { %v313_v28 = vpop.f32.mrf.mxu0  ;;  %v508_v29 = vpop.f32.mrf.mxu1 }
 0x201   :  { %v463_v30 = vpack.c.bf16 %v312_v27, %v310_v26  ;;  %v371_v31 = vadd.f32 %v508_v29, %v143_v24  ;;  %v314_v34 = vadd.f32 %v313_v28, %v135_v21 }
 0x202   :  { %v315_v32 = vpop.f32.mrf.mxu0  ;;  %v362_v33 = vpop.f32.mrf.mxu1 }
 0x203   :  { %417 = vst [vmem:[%s718_s5] sm:$0xff] %v463_v30  ;;  %v468_v35 = vpack.c.bf16 %v371_v31, %v371_v31  ;;  %v316_v36 = vadd.f32 %v315_v32, %v139_v22  ;;  %v363_v37 = vadd.f32 %v362_v33, %v143_v24 }
 0x204   :  { %v319_v38 = vpop.f32.mrf.mxu0  ;;  %v509_v39 = vpop.f32.mrf.mxu1 }
 0x205   :  { %422 = vst [vmem:[%s718_s5 + $0x20] sm:$0xf] %v468_v35  ;;  %v465_v40 = vpack.c.bf16 %v316_v36, %v314_v34  ;;  %v464_v41 = vpack.c.bf16 %v363_v37, %v363_v37  ;;  %v374_v42 = vadd.f32 %v509_v39, %v143_v24  ;;  %v320_v45 = vadd.f32 %v319_v38, %v135_v21 }
 0x206   :  { %v321_v43 = vpop.f32.mrf.mxu0  ;;  %v365_v44 = vpop.f32.mrf.mxu1 }
 0x207   :  { %419 = vst [vmem:[%s718_s5 + $0xc] sm:$0xff] %v465_v40  ;;  %418 = vst [vmem:[%s718_s5 + $0x8] sm:$0xf] %v464_v41  ;;  %v470_v46 = vpack.c.bf16 %v374_v42, %v374_v42  ;;  %v322_v47 = vadd.f32 %v321_v43, %v139_v22  ;;  %v366_v48 = vadd.f32 %v365_v44, %v143_v24 }
 0x208   :  { %v323_v49 = vpop.f32.mrf.mxu0 }
 0x209   :  { %424 = vst [vmem:[%s718_s5 + $0x2c] sm:$0xf] %v470_v46  ;;  %v467_v50 = vpack.c.bf16 %v322_v47, %v320_v45  ;;  %v466_v51 = vpack.c.bf16 %v366_v48, %v366_v48  ;;  %v324_v53 = vadd.f32 %v323_v49, %v135_v21 }
 0x20a   :  { %v325_v52 = vpop.f32.mrf.mxu0 }
 0x20b   :  { %421 = vst [vmem:[%s718_s5 + $0x18] sm:$0xff] %v467_v50  ;;  %420 = vst [vmem:[%s718_s5 + $0x14] sm:$0xf] %v466_v51  ;;  %v326_v54 = vadd.f32 %v325_v52, %v139_v22 }
 0x20d   :  { %v469_v55 = vpack.c.bf16 %v326_v54, %v324_v53 }
 0x20f   :  { %423 = vst [vmem:[%s718_s5 + $0x24] sm:$0xff] %v469_v55 }

// kernel: dinov2_encoder_forward.12
= control target key start
LH: loop header
LB: loop body
LE: loop exit
PB: predicated region body
PF: predicated region fallthrough
CT: control target
= control target key end

     0   :  { %v635_v36 = vmov 0.0   ;;  %vm340_vm0 = vcmask 1045504   ;;  %vm636_vm1 = vmmov 0   ;;  %vm336_vm2 = vcmask 621568   ;;  %s783_s1 = inlined_call_operand.vmem [shape: bf16[588,128], index: 1, kind: input, shape index: {}]   ;;  %s784_s0 = inlined_call_operand.vmem [shape: bf16[8,588], index: 0, kind: input, shape index: {}]   ;;  %s785_s2 = inlined_call_operand.vmem [shape: f32[1,128], index: 2, kind: input, shape index: {}]   ;;  %s786_s3 = inlined_call_operand.vmem [shape: f32[8,128], index: 3, kind: output, shape index: {}]  }
   0x1   :  { %v593_v0 = vld [vmem:[%s783_s1 + $0x78] sm:$0xff]   ;;  %v597_v4 = vld [vmem:[%s783_s1 + $0x70] sm:$0xff]   ;;  %v601_v8 = vld [vmem:[%s783_s1 + $0x68] sm:$0xff]  }
   0x2   :  { %v594_v1 = vld [vmem:[%s783_s1 + $0xf8] sm:$0xff]   ;;  %527 = vmatprep.subr.bf16.mxu0 %v593_v0  ;;  %v598_v5 = vld [vmem:[%s783_s1 + $0xf0] sm:$0xff]   ;;  %v602_v9 = vld [vmem:[%s783_s1 + $0xe8] sm:$0xff]  }
   0x3   :  { %v595_v2 = vld [vmem:[%s783_s1 + $0x38] sm:$0xff]   ;;  %549 = vmatprep.subr.bf16.mxu1 %v594_v1  ;;  %v599_v6 = vld [vmem:[%s783_s1 + $0x30] sm:$0xff]   ;;  %v603_v10 = vld [vmem:[%s783_s1 + $0x28] sm:$0xff]  }
   0x4   :  { %v596_v3 = vld [vmem:[%s783_s1 + $0xb8] sm:$0xff]   ;;  %528 = vmatpush3.bf16.msra.mxu0 %v595_v2  ;;  %v600_v7 = vld [vmem:[%s783_s1 + $0xb0] sm:$0xff]   ;;  %v604_v11 = vld [vmem:[%s783_s1 + $0xa8] sm:$0xff]  }
   0x5   :  { %550 = vmatpush3.bf16.msra.mxu1 %v596_v3  ;;  %529 = vmatprep.subr.bf16.mxu0 %v597_v4  ;;  %v605_v12 = vld [vmem:[%s783_s1 + $0x60] sm:$0xff]   ;;  %v609_v16 = vld [vmem:[%s783_s1 + $0x58] sm:$0xff]   ;;  %v613_v20 = vld [vmem:[%s783_s1 + $0x50] sm:$0xff]  }
   0x6   :  { %551 = vmatprep.subr.bf16.mxu1 %v598_v5  ;;  %v606_v13 = vld [vmem:[%s783_s1 + $0xe0] sm:$0xff]   ;;  %v610_v17 = vld [vmem:[%s783_s1 + $0xd8] sm:$0xff]   ;;  %v614_v21 = vld [vmem:[%s783_s1 + $0xd0] sm:$0xff]  }
   0x7   :  { %v607_v14 = vld [vmem:[%s783_s1 + $0x20] sm:$0xff]   ;;  %v611_v18 = vld [vmem:[%s783_s1 + $0x18] sm:$0xff]   ;;  %v615_v22 = vld [vmem:[%s783_s1 + $0x10] sm:$0xff]  }
   0x8   :  { %530 = vmatpush3.bf16.msra.mxu0 %v599_v6  ;;  %v608_v15 = vld [vmem:[%s783_s1 + $0xa0] sm:$0xff]   ;;  %v612_v19 = vld [vmem:[%s783_s1 + $0x98] sm:$0xff]   ;;  %v616_v23 = vld [vmem:[%s783_s1 + $0x90] sm:$0xff]  }
   0x9   :  { %552 = vmatpush3.bf16.msra.mxu1 %v600_v7  ;;  %531 = vmatprep.subr.bf16.mxu0 %v601_v8  ;;  %v617_v24 = vld [vmem:[%s783_s1 + $0x48] sm:$0xff]   ;;  %v621_v28 = vld [vmem:[%s783_s1 + $0x40] sm:$0xff]   ;;  %v631_v41 = vld [vmem:[%s783_s1 + $0x118] sm:$0xff]  }
   0xa   :  { %553 = vmatprep.subr.bf16.mxu1 %v602_v9  ;;  %v618_v25 = vld [vmem:[%s783_s1 + $0xc8] sm:$0xff]   ;;  %v622_v29 = vld [vmem:[%s783_s1 + $0xc0] sm:$0xff]   ;;  %v632_v42 = vld [vmem:[%s783_s1 + $0x110] sm:$0xff]  }
   0xb   :  { %v619_v26 = vld [vmem:[%s783_s1 + $0x8] sm:$0xff]   ;;  %v623_v30 = vld [vmem:[%s783_s1] sm:$0xff]   ;;  %v627_v45 = vld [vmem:[%s784_s0 + $0x10] ss:$0 sps:$4 sm:$0xff]  }
   0xc   :  { %532 = vmatpush3.bf16.msra.mxu0 %v603_v10  ;;  %v620_v27 = vld [vmem:[%s783_s1 + $0x88] sm:$0xff]   ;;  %v624_v31 = vld [vmem:[%s783_s1 + $0x80] sm:$0xff]  }
   0xd   :  { %554 = vmatpush3.bf16.msra.mxu1 %v604_v11  ;;  %533 = vmatprep.subr.bf16.mxu0 %v605_v12  ;;  %v21_v32 = vld [vmem:[%s784_s0] sm:$0xff]  ;;  %v22_v35 = vld [vmem:[%s784_s0 + $0x8] sm:$0xff] }
   0xe   :  { %555 = vmatprep.subr.bf16.mxu1 %v606_v13  ;;  %v483_v33 = vcombine.low %v21_v32, %v21_v32  ;;  %v484_v34 = vcombine.high %v21_v32, %v21_v32  ;;  %v485_v37 = vcombine.low %v22_v35, %v22_v35  ;;  %v486_v38 = vcombine.high %v22_v35, %v22_v35  ;;  %v630_v39 = vld [vmem:[%s783_s1 + $0x120] sm:$0x3f]   ;;  %v633_v43 = vld [vmem:[%s783_s1 + $0x108] sm:$0xff]  }
   0xf   :  { %v342_v40 = vsel %vm340_vm0, %v630_v39, 0  ;;  %v634_v44 = vld [vmem:[%s783_s1 + $0x100] sm:$0xff]  }
  0x10   :  { %534 = vmatpush3.bf16.msra.mxu0 %v607_v14  ;;  %376 = vmatprep.mubr.bf16.mxu0 %v484_v34  ;;  %v526_v58 = vld [vmem:[%s785_s2] ss:$0 sm:$0xff] }
  0x11   :  { %556 = vmatpush3.bf16.msra.mxu1 %v608_v15  ;;  %535 = vmatprep.subr.bf16.mxu0 %v609_v16 }
  0x12   :  { %557 = vmatprep.subr.bf16.mxu1 %v610_v17  ;;  %416 = vmatprep.mubr.bf16.mxu1 %v486_v38 }
  0x14   :  { %536 = vmatpush3.bf16.msra.mxu0 %v611_v18 }
  0x15   :  { %558 = vmatpush3.bf16.msra.mxu1 %v612_v19  ;;  %537 = vmatprep.subr.bf16.mxu0 %v613_v20 }
  0x16   :  { %559 = vmatprep.subr.bf16.mxu1 %v614_v21 }
  0x18   :  { %538 = vmatpush3.bf16.msra.mxu0 %v615_v22 }
  0x19   :  { %560 = vmatpush3.bf16.msra.mxu1 %v616_v23  ;;  %539 = vmatprep.subr.bf16.mxu0 %v617_v24 }
  0x1a   :  { %561 = vmatprep.subr.bf16.mxu1 %v618_v25 }
  0x1c   :  { %540 = vmatpush3.bf16.msra.mxu0 %v619_v26 }
  0x1d   :  { %562 = vmatpush3.bf16.msra.mxu1 %v620_v27  ;;  %541 = vmatprep.subr.bf16.mxu0 %v621_v28 }
  0x1e   :  { %563 = vmatprep.subr.bf16.mxu1 %v622_v29 }
  0x20   :  { %542 = vmatpush3.bf16.msra.mxu0 %v623_v30 }
  0x21   :  { %564 = vmatpush3.bf16.msra.mxu1 %v624_v31  ;;  %577 = vmatprep.subr.bf16.mxu0 %v635_v36 }
  0x23   :  { %377 = vmatmul.mubr.bf16.vlgmr.msra.gmra.mxu0 %v483_v33 }
  0x24   :  { %417 = vmatmul.mubr.bf16.vlgmr.msra.gmra.mxu1 %v485_v37  ;;  %578 = vmatpush3.bf16.msra.mxu0 %v342_v40 }
  0x25   :  { %579 = vmatprep.subr.bf16.mxu0 %v635_v36  ;;  %587 = vmatprep.mubr.msk.bf16.mxu0 %vm636_vm1, %v635_v36 }
  0x28   :  { %580 = vmatpush3.bf16.msra.mxu0 %v631_v41 }
  0x29   :  { %581 = vmatprep.subr.bf16.mxu0 %v635_v36 }
  0x2c   :  { %582 = vmatpush3.bf16.msra.mxu0 %v632_v42 }
  0x2d   :  { %583 = vmatprep.subr.bf16.mxu0 %v635_v36 }
  0x30   :  { %584 = vmatpush3.bf16.msra.mxu0 %v633_v43 }
  0x31   :  { %585 = vmatprep.subr.bf16.mxu0 %v635_v36 }
  0x34   :  { %586 = vmatpush3.bf16.msra.mxu0 %v634_v44 }
  0x37   :  { %588 = vmatmul.mubr.msk.bf16.vlgmr.msra.gmra.mxu0 %vm336_vm2, %v627_v45 }
  0xe3   :  { %v543_v46 = vpop.f32.mrf.mxu0 }
  0xe4   :  { %v565_v47 = vpop.f32.mrf.mxu1 }
  0xe5   :  { %v544_v48 = vpop.f32.mrf.mxu0 }
  0xe6   :  { %v566_v49 = vpop.f32.mrf.mxu1  ;;  %v545_v54 = vadd.f32 %v544_v48, %v543_v46 }
  0xe7   :  { %v546_v50 = vpop.f32.mrf.mxu0  ;;  %v567_v55 = vadd.f32 %v566_v49, %v565_v47 }
  0xe8   :  { %v568_v51 = vpop.f32.mrf.mxu1 }
  0xe9   :  { %v547_v52 = vpop.f32.mrf.mxu0  ;;  %v419_v56 = vadd.f32 %v567_v55, %v545_v54 }
  0xea   :  { %v569_v53 = vpop.f32.mrf.mxu1 }
  0xf7   :  { %v458_v57 = vpop.f32.mrf.mxu0 }
  0xf8   :  { %v459_v59 = vadd.f32 %v458_v57, %v419_v56 }
  0xf9   :  { %v589_v60 = vpop.f32.mrf.mxu0 }
  0xfa   :  { %v477_v61 = vadd.f32 %v526_v58, %v459_v59 }
  0xfb   :  { %v461_v62 = vpop.f32.mrf.mxu0 }
  0xfc   :  { %478 = vst [vmem:[%s786_s3] sm:$0xff] %v477_v61 }
  0xfd   :  { %v590_v63 = vpop.f32.mrf.mxu0 }

// kernel: dinov2_encoder_forward.14
= control target key start
LH: loop header
LB: loop body
LE: loop exit
PB: predicated region body
PF: predicated region fallthrough
CT: control target
= control target key end

     0   :  { %s911_s6 = smov 0   ;;  %s1034_s0 = inlined_call_operand.vmem [shape: bf16[2,16,384], index: 0, kind: input, shape index: {}]   ;;  %s1035_s1 = inlined_call_operand.vmem [shape: bf16[2,16,128], index: 1, kind: output, shape index: {}]  }
   0x1 LB: > { %s729_s7 = sadd.s32 4294967295, %s894_s6   ;;  %p733_p0 = scmp.ge.s32.totalorder %s894_s6, 1  ;;  %s894_s6 = sphi %s911_s6, %s11_s6  }
   0x2   : > { %p87_p1 = scmp.lt.s32.totalorder %s894_s6, 3 }
   0x4   : > { %p88_p2 = pnand %p733_p0, %p87_p1 }
   0x5   : > { %p107_p3 = scmp.lt.s32.totalorder (!%p88_p2), %s729_s7, 1  ;;  %s898_s12 = smov (!%p88_p2), 96  }
   0x6   : > { %91 = sbr.rel (%p88_p2) target bundleno = 1437 (0x59d), region = 24  ;;  %s899_s13 = smov (!%p88_p2), 32  }
   0x7   : > { %s900_s14 = smov (!%p88_p2), 64  }
   0xb   : > { %v896_v0 = vmov 0.0   ;;  %vm897_vm0 = vmmov 0   ;;  %s1037_s7 = smov (!%p107_p3, %s729_s7), 1  ;;  %vm137_vm1 = vcmask 261120   ;;  %v118_v4 = vlaneseq }
   0xc   : > { %776 = vmatprep.subr.bf16.mxu0 %v896_v0  ;;  %778 = vmatprep.mubr.msk.bf16.mxu0 %vm897_vm0, %v896_v0  ;;  %s824_s8 = smul.u32 24, %s1037_s7  ;;  %vm189_vm3 = vcmask 130048   ;;  %vm658_vm4 = vcmask 523264   ;;  %s752_s15 = sshll.u32 %s1037_s7, 3  ;;  %vm661_vm5 = vcmask 785408  }
   0xd   : > { %782 = vmatprep.subr.bf16.mxu1 %v896_v0  ;;  %784 = vmatprep.mubr.msk.bf16.mxu1 %vm897_vm0, %v896_v0  ;;  %v940_v5 = vand.u32 127, %v118_v4  ;;  %s116_s18 = scalar_lea.vmem %s1035_s1, %s752_s15 }
   0xe   : > { %s931_s11 = scalar_lea.vmem %s1034_s0, %s824_s8 }
   0xf   : > { %v853_v1 = vld [vmem:[%s931_s11 + $0x4] ss:$12 sps:$4 sm:$0xff]   ;;  %v854_v3 = vld [vmem:[%s931_s11] ss:$12 sps:$4 sm:$0xff]   ;;  %vm120_vm2 = vcmp.lt.s32.totalorder %v940_v5, 9 }
  0x10   : > { %v142_v2 = vsel %vm137_vm1, %v853_v1, 0  ;;  %v954_v24 = vld [vmem:[%s931_s11 + $0x8] ss:$12 sps:$4 sm:$0xff]  }
  0x11   : > { %777 = vmatpush3.bf16.xpose.msra.mxu0 %v142_v2  ;;  %783 = vmatpush3.bf16.msra.mxu1 %v954_v24 }
  0x12   : > { %794 = vmatprep.subr.bf16.mxu0 %v896_v0  ;;  %788 = vmatprep.subr.bf16.mxu1 %v896_v0 }
  0x18   : > { %779 = vmatmul.mubr.msk.bf16.vlgmr.msra.gmra.mxu0 %vm137_vm1, %v854_v3 }
  0x19   : > { %796 = vmatprep.mubr.msk.bf16.mxu0 %vm897_vm0, %v896_v0 }
  0xd8   : > { %v178_v6 = vpop.f32.mrf.mxu0 }
  0xd9   : > { %v187_v7 = vsel %vm120_vm2, %v178_v6, -1e+30 }
  0xda   : > { %v780_v8 = vpop.f32.mrf.mxu0  ;;  %v190_v9 = vsel %vm189_vm3, %v187_v7, -inf }
  0xdb   : > { %191 = vmax.xlane.f32.xlu0 %v190_v9 }
  0xdc   : > { %v181_v10 = vpop.f32.mrf.mxu0 }
  0xdd   : > { %v188_v11 = vsel %vm120_vm2, %v181_v10, -1e+30 }
  0xde   : > { %v781_v12 = vpop.f32.mrf.mxu0  ;;  %v193_v13 = vsel %vm189_vm3, %v188_v11, -inf }
  0xdf   : > { %194 = vmax.xlane.f32.xlu0 %v193_v13 }
  0xf5   : > { %265 = vrot.lane.b32.xlu0 %v853_v1, %s898_s12 }
  0xf9   : > { %511 = vrot.lane.b32.xlu0 %v853_v1, %s899_s13 }
 0x164   : > { %v192_v14 = vpop.xlane.xlu0 %191 }
 0x165   : > { %v196_v15 = vsub.f32 %v187_v7, %v192_v14 }
 0x167   : > { %v198_v16 = vmul.f32 1.442695, %v196_v15 }
 0x168   : > { %v195_v17 = vpop.xlane.xlu0 %194 }
 0x169   : > { %856 = vpow2.f32 %v198_v16  ;;  %v197_v18 = vsub.f32 %v188_v11, %v195_v17 }
 0x16b   : > { %v200_v19 = vmul.f32 1.442695, %v197_v18 }
 0x16c   : > { %v266_v29 = vpop.permute.xlu0 %265 }
 0x16d   : > { %858 = vpow2.f32 %v200_v19  ;;  %v271_v33 = vsel %vm137_vm1, %v266_v29, 0 }
 0x170   : > { %v512_v37 = vpop.permute.xlu0 %511 }
 0x171   : > { %v517_v39 = vsel %vm137_vm1, %v512_v37, 0 }
 0x176   : > { %v857_v20 = vpop.eup %856 }
 0x177   : > { %v202_v21 = vsel %vm189_vm3, %v857_v20, 0.0 }
 0x178   : > { %203 = vadd.xlane.f32.xlu1 %v202_v21 }
 0x17a   : > { %v859_v22 = vpop.eup %858 }
 0x17b   : > { %v205_v23 = vsel %vm189_vm3, %v859_v22, 0.0 }
 0x17c   : > { %206 = vadd.xlane.f32.xlu1 %v205_v23 }
 0x18d   : > { %263 = vrot.lane.b32.xlu1 %v854_v3, %s898_s12 }
 0x191   : > { %388 = vrot.lane.b32.xlu1 %v853_v1, %s900_s14 }
 0x195   : > { %386 = vrot.lane.b32.xlu1 %v854_v3, %s900_s14 }
 0x199   : > { %509 = vrot.lane.b32.xlu1 %v854_v3, %s899_s13 }
 0x201   : > { %v204_v25 = vpop.xlane.xlu1 %203 }
 0x202   : > { %860 = vrcp.f32 %v204_v25 }
 0x205   : > { %v207_v26 = vpop.xlane.xlu1 %206 }
 0x206   : > { %862 = vrcp.f32 %v207_v26 }
 0x209   : > { %v264_v32 = vpop.permute.xlu1 %263 }
 0x20d   : > { %v389_v35 = vpop.permute.xlu1 %388 }
 0x20e   : > { %v394_v36 = vsel %vm137_vm1, %v389_v35, 0 }
 0x20f   : > { %v861_v27 = vpop.eup %860 }
 0x210   : > { %v210_v30 = vmul.f32 %v861_v27, %v857_v20 }
 0x211   : > { %v387_v38 = vpop.permute.xlu1 %386 }
 0x213   : > { %v863_v28 = vpop.eup %862 }
 0x214   : > { %v211_v31 = vmul.f32 %v863_v28, %v859_v22 }
 0x215   : > { %v510_v40 = vpop.permute.xlu1 %509 }
 0x216   : > { %v212_v34 = vpack.c.bf16 %v211_v31, %v210_v30 }
 0x218   : > { %785 = vmatmul.mubr.msk.bf16.vlgmr.msra.gmra.mxu1 %vm189_vm3, %v212_v34 }
 0x219   : > { %789 = vmatpush3.bf16.xpose.msra.mxu1 %v271_v33  ;;  %790 = vmatprep.mubr.msk.bf16.mxu1 %vm897_vm0, %v896_v0 }
 0x21a   : > { %800 = vmatprep.subr.bf16.mxu1 %v896_v0 }
 0x220   : > { %791 = vmatmul.mubr.msk.bf16.vlgmr.msra.gmra.mxu1 %vm137_vm1, %v264_v32 }
 0x221   : > { %801 = vmatpush3.bf16.xpose.msra.mxu1 %v394_v36  ;;  %802 = vmatprep.mubr.msk.bf16.mxu1 %vm897_vm0, %v896_v0 }
 0x222   : > { %812 = vmatprep.subr.bf16.mxu1 %v896_v0 }
 0x228   : > { %803 = vmatmul.mubr.msk.bf16.vlgmr.msra.gmra.mxu1 %vm137_vm1, %v387_v38 }
 0x229   : > { %813 = vmatpush3.bf16.xpose.msra.mxu1 %v517_v39  ;;  %814 = vmatprep.mubr.msk.bf16.mxu1 %vm897_vm0, %v896_v0 }
 0x230   : > { %815 = vmatmul.mubr.msk.bf16.vlgmr.msra.gmra.mxu1 %vm137_vm1, %v510_v40 }
 0x2d8   : > { %v977_v41 = vpop.f32.mrf.mxu1 }
 0x2da   : > { %v786_v42 = vpop.f32.mrf.mxu1 }
 0x2dc   : > { %v979_v43 = vpop.f32.mrf.mxu1 }
 0x2de   : > { %v787_v44 = vpop.f32.mrf.mxu1 }
 0x2e0   : > { %v307_v45 = vpop.f32.mrf.mxu1 }
 0x2e1   : > { %v314_v46 = vsel %vm120_vm2, %v307_v45, -1e+30 }
 0x2e2   : > { %v792_v47 = vpop.f32.mrf.mxu1  ;;  %v316_v48 = vsel %vm189_vm3, %v314_v46, -inf }
 0x2e3   : > { %317 = vmax.xlane.f32.xlu0 %v316_v48 }
 0x2e4   : > { %v310_v49 = vpop.f32.mrf.mxu1 }
 0x2e5   : > { %v315_v50 = vsel %vm120_vm2, %v310_v49, -1e+30 }
 0x2e6   : > { %v793_v51 = vpop.f32.mrf.mxu1  ;;  %v319_v52 = vsel %vm189_vm3, %v315_v50, -inf }
 0x2e7   : > { %320 = vmax.xlane.f32.xlu1 %v319_v52 }
 0x2e8   : > { %v430_v53 = vpop.f32.mrf.mxu1 }
 0x2e9   : > { %v437_v54 = vsel %vm120_vm2, %v430_v53, -1e+30 }
 0x2ea   : > { %v804_v55 = vpop.f32.mrf.mxu1  ;;  %v439_v56 = vsel %vm189_vm3, %v437_v54, -inf }
 0x2eb   : > { %440 = vmax.xlane.f32.xlu0 %v439_v56 }
 0x2ec   : > { %v433_v57 = vpop.f32.mrf.mxu1 }
 0x2ed   : > { %v438_v58 = vsel %vm120_vm2, %v433_v57, -1e+30 }
 0x2ee   : > { %v805_v59 = vpop.f32.mrf.mxu1  ;;  %v442_v60 = vsel %vm189_vm3, %v438_v58, -inf }
 0x2ef   : > { %443 = vmax.xlane.f32.xlu0 %v442_v60 }
 0x2f0   : > { %v553_v61 = vpop.f32.mrf.mxu1 }
 0x2f1   : > { %v560_v62 = vsel %vm120_vm2, %v553_v61, -1e+30 }
 0x2f2   : > { %v816_v63 = vpop.f32.mrf.mxu1  ;;  %v562_v1 = vsel %vm189_vm3, %v560_v62, -inf }
 0x2f3   : > { %563 = vmax.xlane.f32.xlu0 %v562_v1 }
 0x2f4   : > { %v556_v2 = vpop.f32.mrf.mxu1 }
 0x2f5   : > { %v561_v3 = vsel %vm120_vm2, %v556_v2, -1e+30 }
 0x2f6   : > { %v565_v4 = vsel %vm189_vm3, %v561_v3, -inf  ;;  %v817_v6 = vpop.f32.mrf.mxu1 }
 0x2f7   : > { %566 = vmax.xlane.f32.xlu1 %v565_v4 }
 0x36c   : > { %v318_v7 = vpop.xlane.xlu0 %317 }
 0x36d   : > { %v322_v8 = vsub.f32 %v314_v46, %v318_v7 }
 0x36f   : > { %v324_v9 = vmul.f32 1.442695, %v322_v8 }
 0x370   : > { %v321_v10 = vpop.xlane.xlu1 %320 }
 0x371   : > { %864 = vpow2.f32 %v324_v9  ;;  %v323_v11 = vsub.f32 %v315_v50, %v321_v10 }
 0x373   : > { %v326_v12 = vmul.f32 1.442695, %v323_v11 }
 0x374   : > { %v441_v13 = vpop.xlane.xlu0 %440 }
 0x375   : > { %866 = vpow2.f32 %v326_v12  ;;  %v445_v14 = vsub.f32 %v437_v54, %v441_v13 }
 0x377   : > { %v447_v15 = vmul.f32 1.442695, %v445_v14 }
 0x378   : > { %v444_v16 = vpop.xlane.xlu0 %443 }
 0x379   : > { %868 = vpow2.f32 %v447_v15  ;;  %v446_v17 = vsub.f32 %v438_v58, %v444_v16 }
 0x37b   : > { %v449_v5 = vmul.f32 1.442695, %v446_v17 }
 0x37c   : > { %v564_v18 = vpop.xlane.xlu0 %563 }
 0x37d   : > { %870 = vpow2.f32 %v449_v5  ;;  %v568_v19 = vsub.f32 %v560_v62, %v564_v18 }
 0x37e   : > { %v865_v20 = vpop.eup %864 }
 0x37f   : > { %v570_v21 = vmul.f32 1.442695, %v568_v19  ;;  %v328_v22 = vsel %vm189_vm3, %v865_v20, 0.0 }
 0x380   : > { %329 = vadd.xlane.f32.xlu0 %v328_v22  ;;  %v567_v32 = vpop.xlane.xlu1 %566 }
 0x381   : > { %872 = vpow2.f32 %v570_v21  ;;  %v569_v33 = vsub.f32 %v561_v3, %v567_v32 }
 0x382   : > { %v867_v23 = vpop.eup %866 }
 0x383   : > { %v331_v25 = vsel %vm189_vm3, %v867_v23, 0.0  ;;  %v572_v34 = vmul.f32 1.442695, %v569_v33 }
 0x384   : > { %332 = vadd.xlane.f32.xlu1 %v331_v25 }
 0x385   : > { %874 = vpow2.f32 %v572_v34 }
 0x386   : > { %v869_v26 = vpop.eup %868 }
 0x387   : > { %v451_v27 = vsel %vm189_vm3, %v869_v26, 0.0 }
 0x388   : > { %452 = vadd.xlane.f32.xlu0 %v451_v27 }
 0x38a   : > { %v871_v28 = vpop.eup %870 }
 0x38b   : > { %v454_v29 = vsel %vm189_vm3, %v871_v28, 0.0 }
 0x38c   : > { %455 = vadd.xlane.f32.xlu1 %v454_v29 }
 0x38e   : > { %v873_v30 = vpop.eup %872 }
 0x38f   : > { %v574_v31 = vsel %vm189_vm3, %v873_v30, 0.0 }
 0x390   : > { %575 = vadd.xlane.f32.xlu0 %v574_v31 }
 0x392   : > { %v875_v35 = vpop.eup %874 }
 0x393   : > { %v577_v36 = vsel %vm189_vm3, %v875_v35, 0.0 }
 0x39d   : > { %462 = vrot.lane.b32.xlu1 %v954_v24, %s900_s14 }
 0x3a6   : > { %339 = vrot.lane.b32.xlu0 %v954_v24, %s898_s12 }
 0x3c1   : > { %578 = vadd.xlane.f32.xlu1 %v577_v36 }
 0x3d2   : > { %585 = vrot.lane.b32.xlu1 %v954_v24, %s899_s13 }
 0x409   : > { %v330_v37 = vpop.xlane.xlu0 %329 }
 0x40a   : > { %876 = vrcp.f32 %v330_v37 }
 0x40d   : > { %v333_v38 = vpop.xlane.xlu1 %332 }
 0x40e   : > { %878 = vrcp.f32 %v333_v38 }
 0x411   : > { %v453_v39 = vpop.xlane.xlu0 %452 }
 0x412   : > { %880 = vrcp.f32 %v453_v39 }
 0x415   : > { %v456_v40 = vpop.xlane.xlu1 %455 }
 0x416   : > { %882 = vrcp.f32 %v456_v40 }
 0x417   : > { %v877_v42 = vpop.eup %876 }
 0x418   : > { %v336_v46 = vmul.f32 %v877_v42, %v865_v20 }
 0x419   : > { %v576_v44 = vpop.xlane.xlu0 %575  ;;  %v463_v24 = vpop.permute.xlu1 %462 }
 0x41a   : > { %884 = vrcp.f32 %v576_v44 }
 0x41b   : > { %v879_v45 = vpop.eup %878 }
 0x41c   : > { %v337_v47 = vmul.f32 %v879_v45, %v867_v23 }
 0x41d   : > { %v340_v48 = vpop.permute.xlu0 %339 }
 0x41e   : > { %795 = vmatpush3.bf16.msra.mxu0 %v340_v48  ;;  %v338_v49 = vpack.c.bf16 %v337_v47, %v336_v46 }
 0x41f   : > { %806 = vmatprep.subr.bf16.mxu0 %v896_v0  ;;  %v881_v50 = vpop.eup %880 }
 0x420   : > { %v459_v52 = vmul.f32 %v881_v50, %v869_v26 }
 0x421   : > { %797 = vmatmul.mubr.msk.bf16.vlgmr.msra.gmra.mxu0 %vm189_vm3, %v338_v49 }
 0x422   : > { %807 = vmatpush3.bf16.msra.mxu0 %v463_v24  ;;  %808 = vmatprep.mubr.msk.bf16.mxu0 %vm897_vm0, %v896_v0 }
 0x423   : > { %v883_v51 = vpop.eup %882  ;;  %818 = vmatprep.subr.bf16.mxu0 %v896_v0 }
 0x424   : > { %v460_v53 = vmul.f32 %v883_v51, %v871_v28 }
 0x426   : > { %v461_v54 = vpack.c.bf16 %v460_v53, %v459_v52 }
 0x427   : > { %v885_v57 = vpop.eup %884 }
 0x428   : > { %v582_v59 = vmul.f32 %v885_v57, %v873_v30 }
 0x429   : > { %809 = vmatmul.mubr.msk.bf16.vlgmr.msra.gmra.mxu0 %vm189_vm3, %v461_v54 }
 0x42a   : > { %820 = vmatprep.mubr.msk.bf16.mxu0 %vm897_vm0, %v896_v0 }
 0x44a   : > { %v579_v55 = vpop.xlane.xlu1 %578 }
 0x44b   : > { %886 = vrcp.f32 %v579_v55 }
 0x44e   : > { %v586_v56 = vpop.permute.xlu1 %585 }
 0x44f   : > { %819 = vmatpush3.bf16.msra.mxu0 %v586_v56 }
 0x458   : > { %v887_v58 = vpop.eup %886 }
 0x459   : > { %v583_v60 = vmul.f32 %v887_v58, %v875_v35 }
 0x45b   : > { %v584_v61 = vpack.c.bf16 %v583_v60, %v582_v59 }
 0x45d   : > { %821 = vmatmul.mubr.msk.bf16.vlgmr.msra.gmra.mxu0 %vm189_vm3, %v584_v61 }
 0x4e1   : > { %v379_v62 = vpop.f32.mrf.mxu0 }
 0x4e3   : > { %v798_v63 = vpop.f32.mrf.mxu0 }
 0x4e5   : > { %v382_v1 = vpop.f32.mrf.mxu0 }
 0x4e6   : > { %v838_v2 = vpack.i.bf16 %v382_v1, %v379_v62 }
 0x4e7   : > { %v799_v3 = vpop.f32.mrf.mxu0 }
 0x4e8   : > { %839 = vrot.lane.b32.xlu1 %v838_v2, %s899_s13 }
 0x4e9   : > { %v502_v0 = vpop.f32.mrf.mxu0 }
 0x4eb   : > { %v810_v4 = vpop.f32.mrf.mxu0 }
 0x4ed   : > { %v505_v6 = vpop.f32.mrf.mxu0 }
 0x4ee   : > { %v843_v7 = vpack.i.bf16 %v505_v6, %v502_v0 }
 0x4ef   : > { %v811_v8 = vpop.f32.mrf.mxu0 }
 0x4f0   : > { %844 = vrot.lane.b32.xlu0 %v843_v7, %s900_s14 }
 0x51d   : > { %v625_v9 = vpop.f32.mrf.mxu0 }
 0x51f   : > { %v822_v10 = vpop.f32.mrf.mxu0 }
 0x521   : > { %v628_v11 = vpop.f32.mrf.mxu0 }
 0x522   : > { %v848_v12 = vpack.i.bf16 %v628_v11, %v625_v9 }
 0x523   : > { %v823_v13 = vpop.f32.mrf.mxu0 }
 0x524   : > { %849 = vrot.lane.b32.xlu1 %v848_v12, %s898_s12 }
 0x55a   : > { %v840_v14 = vpop.permute.xlu1 %839 }
 0x55b   : > { %v842_v16 = vunpack.i.h.bf16 %v840_v14  ;;  %v841_v17 = vunpack.i.l.bf16 %v840_v14 }
 0x55d   : > { %v657_v20 = vsel %vm137_vm1, %v979_v43, %v842_v16  ;;  %v656_v21 = vsel %vm137_vm1, %v977_v41, %v841_v17 }
 0x562   : > { %v845_v15 = vpop.permute.xlu0 %844 }
 0x563   : > { %v847_v5 = vunpack.i.h.bf16 %v845_v15  ;;  %v846_v18 = vunpack.i.l.bf16 %v845_v15 }
 0x565   : > { %v660_v25 = vsel %vm658_vm4, %v657_v20, %v847_v5  ;;  %v659_v26 = vsel %vm658_vm4, %v656_v21, %v846_v18 }
 0x596   : > { %v850_v19 = vpop.permute.xlu1 %849 }
 0x597   : > { %v852_v22 = vunpack.i.h.bf16 %v850_v19  ;;  %v851_v23 = vunpack.i.l.bf16 %v850_v19 }
 0x599   : > { %v663_v27 = vsel %vm661_vm5, %v660_v25, %v852_v22  ;;  %v662_v28 = vsel %vm661_vm5, %v659_v26, %v851_v23 }
 0x59a   : > { %v758_v29 = vpack.c.bf16 %v663_v27, %v662_v28 }
 0x59c   : > { %759 = vst [vmem:[%s116_s18] sm:$0xff] %v758_v29  }
 0x59d PF: > { %s11_s6 = sadd.s32 1, %s894_s6  }
 0x59e   : > { %p8_p4 = scmp.ge.s32.totalorder %s11_s6, 4  }
 0x5a0   :  { %10 = sbr.rel (!%p8_p4) target bundleno = 1 (0x1), region = 54 }

// kernel: dinov2_encoder_forward.23
= control target key start
LH: loop header
LB: loop body
LE: loop exit
PB: predicated region body
PF: predicated region fallthrough
CT: control target
= control target key end

     0   :  { %s160_s0 = inlined_call_operand.vmem [shape: bf16[32,128], index: 0, kind: input, shape index: {}]   ;;  %s161_s1 = inlined_call_operand.vmem [shape: f32[1,128], index: 1, kind: input, shape index: {}]   ;;  %s162_s2 = inlined_call_operand.vmem [shape: f32[1,128], index: 2, kind: input, shape index: {}]   ;;  %s163_s3 = inlined_call_operand.vmem [shape: f32[32,128], index: 3, kind: output, shape index: {}]  }
   0x1   :  { %v100_v0 = vld [vmem:[%s160_s0] sm:$0xff]   ;;  %v107_v1 = vld [vmem:[%s160_s0 + $0x8] sm:$0xff]  }
   0x2   :  { %v101_v2 = vunpack.c.l.bf16 %v100_v0  ;;  %v105_v3 = vunpack.c.l.bf16 %v107_v1  ;;  %v102_v4 = vunpack.c.h.bf16 %v100_v0  ;;  %v106_v5 = vunpack.c.h.bf16 %v107_v1  ;;  %v97_v35 = vld [vmem:[%s161_s1] ss:$0 sm:$0xff] }
   0x3   :  { %v98_v37 = vld [vmem:[%s162_s2] ss:$0 sm:$0xff] }
   0x4   :  { %22 = vadd.xlane.f32.xlu0 %v101_v2  ;;  %26 = vadd.xlane.f32.xlu1 %v105_v3 }
   0x8   :  { %24 = vadd.xlane.f32.xlu0 %v102_v4  ;;  %28 = vadd.xlane.f32.xlu1 %v106_v5 }
  0x8d   :  { %v23_v6 = vpop.xlane.xlu0 %22  ;;  %v27_v7 = vpop.xlane.xlu1 %26 }
  0x8e   :  { %v31_v8 = vmul.f32 0.0078125, %v23_v6  ;;  %v33_v9 = vmul.f32 0.0078125, %v27_v7 }
  0x90   :  { %v35_v10 = vsub.f32 %v101_v2, %v31_v8  ;;  %v37_v11 = vsub.f32 %v105_v3, %v33_v9 }
  0x91   :  { %v25_v12 = vpop.xlane.xlu0 %24  ;;  %v29_v13 = vpop.xlane.xlu1 %28 }
  0x92   :  { %v32_v14 = vmul.f32 0.0078125, %v25_v12  ;;  %v39_v15 = vmul.f32 %v35_v10, %v35_v10  ;;  %v34_v16 = vmul.f32 0.0078125, %v29_v13  ;;  %v41_v19 = vmul.f32 %v37_v11, %v37_v11 }
  0x94   :  { %v36_v17 = vsub.f32 %v102_v4, %v32_v14  ;;  %43 = vadd.xlane.f32.xlu0 %v39_v15  ;;  %v38_v18 = vsub.f32 %v106_v5, %v34_v16 }
  0x96   :  { %v40_v20 = vmul.f32 %v36_v17, %v36_v17  ;;  %v42_v21 = vmul.f32 %v38_v18, %v38_v18 }
  0x98   :  { %47 = vadd.xlane.f32.xlu0 %v41_v19  ;;  %45 = vadd.xlane.f32.xlu1 %v40_v20 }
  0x9c   :  { %49 = vadd.xlane.f32.xlu1 %v42_v21 }
 0x11d   :  { %v44_v22 = vpop.xlane.xlu0 %43 }
 0x11e   :  { %v51_v23 = vmul.f32 0.0078125, %v44_v22 }
 0x120   :  { %v55_v24 = vadd.f32 1e-06, %v51_v23 }
 0x121   :  { %v46_v25 = vpop.xlane.xlu1 %45  ;;  %v48_v26 = vpop.xlane.xlu0 %47 }
 0x122   :  { %108 = vrsqrt.f32 %v55_v24  ;;  %v52_v27 = vmul.f32 0.0078125, %v46_v25  ;;  %v53_v28 = vmul.f32 0.0078125, %v48_v26 }
 0x124   :  { %v56_v29 = vadd.f32 1e-06, %v52_v27  ;;  %v57_v30 = vadd.f32 1e-06, %v53_v28 }
 0x125   :  { %v50_v31 = vpop.xlane.xlu1 %49 }
 0x126   :  { %110 = vrsqrt.f32 %v56_v29  ;;  %v54_v32 = vmul.f32 0.0078125, %v50_v31 }
 0x127   :  { %112 = vrsqrt.f32 %v57_v30 }
 0x128   :  { %v58_v33 = vadd.f32 1e-06, %v54_v32 }
 0x12a   :  { %114 = vrsqrt.f32 %v58_v33 }
 0x12f   :  { %v109_v34 = vpop.eup %108 }
 0x130   :  { %v63_v36 = vmul.f32 %v109_v34, %v35_v10 }
 0x132   :  { %v74_v38 = vmul.f32 %v97_v35, %v63_v36 }
 0x133   :  { %v111_v39 = vpop.eup %110 }
 0x134   :  { %v113_v40 = vpop.eup %112  ;;  %v85_v41 = vadd.f32 %v98_v37, %v74_v38  ;;  %v64_v42 = vmul.f32 %v111_v39, %v36_v17 }
 0x135   :  { %v65_v43 = vmul.f32 %v113_v40, %v37_v11 }
 0x136   :  { %89 = vst [vmem:[%s163_s3] sm:$0xff] %v85_v41  ;;  %v75_v44 = vmul.f32 %v97_v35, %v64_v42 }
 0x137   :  { %v115_v45 = vpop.eup %114  ;;  %v76_v46 = vmul.f32 %v97_v35, %v65_v43 }
 0x138   :  { %v86_v47 = vadd.f32 %v98_v37, %v75_v44  ;;  %v66_v48 = vmul.f32 %v115_v45, %v38_v18 }
 0x139   :  { %v87_v49 = vadd.f32 %v98_v37, %v76_v46 }
 0x13a   :  { %90 = vst [vmem:[%s163_s3 + $0x8] sm:$0xff] %v86_v47  ;;  %v77_v50 = vmul.f32 %v97_v35, %v66_v48 }
 0x13b   :  { %91 = vst [vmem:[%s163_s3 + $0x10] sm:$0xff] %v87_v49 }
 0x13c   :  { %v88_v51 = vadd.f32 %v98_v37, %v77_v50 }
 0x13e   :  { %92 = vst [vmem:[%s163_s3 + $0x18] sm:$0xff] %v88_v51 }

// kernel: dinov2_encoder_forward.17
= control target key start
LH: loop header
LB: loop body
LE: loop exit
PB: predicated region body
PF: predicated region fallthrough
CT: control target
= control target key end

     0   :  { %s846_s1 = inlined_call_operand.vmem [shape: bf16[512,128], index: 1, kind: input, shape index: {}]   ;;  %s847_s0 = inlined_call_operand.vmem [shape: bf16[32,512], index: 0, kind: input, shape index: {}]   ;;  %s848_s2 = inlined_call_operand.vmem [shape: f32[1,128], index: 2, kind: input, shape index: {}]   ;;  %s849_s4 = inlined_call_operand.vmem [shape: bf16[32,128], index: 4, kind: input, shape index: {}]   ;;  %s850_s3 = inlined_call_operand.vmem [shape: f32[1,128], index: 3, kind: input, shape index: {}]   ;;  %s851_s5 = inlined_call_operand.vmem [shape: bf16[32,128], index: 5, kind: output, shape index: {}]  }
   0x1   :  { %v634_v0 = vld [vmem:[%s846_s1 + $0x78] sm:$0xff]   ;;  %v638_v4 = vld [vmem:[%s846_s1 + $0x70] sm:$0xff]   ;;  %v642_v8 = vld [vmem:[%s846_s1 + $0x68] sm:$0xff]  }
   0x2   :  { %v635_v1 = vld [vmem:[%s846_s1 + $0xf8] sm:$0xff]   ;;  %578 = vmatprep.subr.bf16.mxu0 %v634_v0  ;;  %v639_v5 = vld [vmem:[%s846_s1 + $0xf0] sm:$0xff]   ;;  %v643_v9 = vld [vmem:[%s846_s1 + $0xe8] sm:$0xff]  }
   0x3   :  { %v636_v2 = vld [vmem:[%s846_s1 + $0x38] sm:$0xff]   ;;  %606 = vmatprep.subr.bf16.mxu1 %v635_v1  ;;  %v640_v6 = vld [vmem:[%s846_s1 + $0x30] sm:$0xff]   ;;  %v644_v10 = vld [vmem:[%s846_s1 + $0x28] sm:$0xff]  }
   0x4   :  { %v637_v3 = vld [vmem:[%s846_s1 + $0xb8] sm:$0xff]   ;;  %579 = vmatpush3.bf16.msra.mxu0 %v636_v2  ;;  %v641_v7 = vld [vmem:[%s846_s1 + $0xb0] sm:$0xff]   ;;  %v645_v11 = vld [vmem:[%s846_s1 + $0xa8] sm:$0xff]  }
   0x5   :  { %607 = vmatpush3.bf16.msra.mxu1 %v637_v3  ;;  %580 = vmatprep.subr.bf16.mxu0 %v638_v4  ;;  %v646_v12 = vld [vmem:[%s846_s1 + $0x60] sm:$0xff]   ;;  %v650_v16 = vld [vmem:[%s846_s1 + $0x58] sm:$0xff]   ;;  %v654_v20 = vld [vmem:[%s846_s1 + $0x50] sm:$0xff]  }
   0x6   :  { %608 = vmatprep.subr.bf16.mxu1 %v639_v5  ;;  %v647_v13 = vld [vmem:[%s846_s1 + $0xe0] sm:$0xff]   ;;  %v651_v17 = vld [vmem:[%s846_s1 + $0xd8] sm:$0xff]   ;;  %v655_v21 = vld [vmem:[%s846_s1 + $0xd0] sm:$0xff]  }
   0x7   :  { %v648_v14 = vld [vmem:[%s846_s1 + $0x20] sm:$0xff]   ;;  %v652_v18 = vld [vmem:[%s846_s1 + $0x18] sm:$0xff]   ;;  %v656_v22 = vld [vmem:[%s846_s1 + $0x10] sm:$0xff]  }
   0x8   :  { %581 = vmatpush3.bf16.msra.mxu0 %v640_v6  ;;  %v649_v15 = vld [vmem:[%s846_s1 + $0xa0] sm:$0xff]   ;;  %v653_v19 = vld [vmem:[%s846_s1 + $0x98] sm:$0xff]   ;;  %v657_v23 = vld [vmem:[%s846_s1 + $0x90] sm:$0xff]  }
   0x9   :  { %609 = vmatpush3.bf16.msra.mxu1 %v641_v7  ;;  %582 = vmatprep.subr.bf16.mxu0 %v642_v8  ;;  %v658_v24 = vld [vmem:[%s846_s1 + $0x48] sm:$0xff]   ;;  %v662_v28 = vld [vmem:[%s846_s1 + $0x40] sm:$0xff]  }
   0xa   :  { %610 = vmatprep.subr.bf16.mxu1 %v643_v9  ;;  %v659_v25 = vld [vmem:[%s846_s1 + $0xc8] sm:$0xff]   ;;  %v663_v29 = vld [vmem:[%s846_s1 + $0xc0] sm:$0xff]  }
   0xb   :  { %v660_v26 = vld [vmem:[%s846_s1 + $0x8] sm:$0xff]   ;;  %v664_v30 = vld [vmem:[%s846_s1] sm:$0xff]  }
   0xc   :  { %583 = vmatpush3.bf16.msra.mxu0 %v644_v10  ;;  %v661_v27 = vld [vmem:[%s846_s1 + $0x88] sm:$0xff]   ;;  %v665_v31 = vld [vmem:[%s846_s1 + $0x80] sm:$0xff]  }
   0xd   :  { %611 = vmatpush3.bf16.msra.mxu1 %v645_v11  ;;  %584 = vmatprep.subr.bf16.mxu0 %v646_v12  ;;  %v666_v32 = vld [vmem:[%s847_s0] ss:$16 sps:$4 sm:$0xff]   ;;  %v668_v33 = vld [vmem:[%s847_s0 + $0x4] ss:$16 sps:$4 sm:$0xff]   ;;  %v669_v34 = vld [vmem:[%s847_s0 + $0x8] ss:$16 sps:$4 sm:$0xff]  }
   0xe   :  { %612 = vmatprep.subr.bf16.mxu1 %v647_v13  ;;  %v671_v35 = vld [vmem:[%s847_s0 + $0xc] ss:$16 sps:$4 sm:$0xff]   ;;  %369 = vmatprep.mubr.bf16.mxu0 %v668_v33  ;;  %v672_v36 = vld [vmem:[%s847_s0 + $0x24] ss:$16 sps:$4 sm:$0xff]   ;;  %v676_v38 = vld [vmem:[%s847_s0 + $0x20] ss:$16 sps:$4 sm:$0xff]  }
   0xf   :  { %418 = vmatprep.mubr.bf16.mxu1 %v671_v35  ;;  %v674_v37 = vld [vmem:[%s847_s0 + $0x2c] ss:$16 sps:$4 sm:$0xff]   ;;  %v677_v39 = vld [vmem:[%s847_s0 + $0x28] ss:$16 sps:$4 sm:$0xff]   ;;  %v548_v47 = vld [vmem:[%s848_s2] ss:$0 sm:$0xff] }
  0x10   :  { %585 = vmatpush3.bf16.msra.mxu0 %v648_v14  ;;  %v559_v53 = vld [vmem:[%s849_s4] sm:$0xff]  }
  0x11   :  { %613 = vmatpush3.bf16.msra.mxu1 %v649_v15  ;;  %586 = vmatprep.subr.bf16.mxu0 %v650_v16  ;;  %v549_v57 = vld [vmem:[%s850_s3] ss:$0 sm:$0xff]  ;;  %v560_v61 = vunpack.c.l.bf16 %v559_v53  ;;  %v561_v1 = vunpack.c.h.bf16 %v559_v53  ;;  %v576_v15 = vld [vmem:[%s849_s4 + $0x8] sm:$0xff]  }
  0x12   :  { %614 = vmatprep.subr.bf16.mxu1 %v651_v17 }
  0x14   :  { %587 = vmatpush3.bf16.msra.mxu0 %v652_v18  ;;  %v564_v18 = vunpack.c.l.bf16 %v576_v15 }
  0x15   :  { %615 = vmatpush3.bf16.msra.mxu1 %v653_v19  ;;  %588 = vmatprep.subr.bf16.mxu0 %v654_v20  ;;  %v565_v20 = vunpack.c.h.bf16 %v576_v15 }
  0x16   :  { %616 = vmatprep.subr.bf16.mxu1 %v655_v21 }
  0x18   :  { %589 = vmatpush3.bf16.msra.mxu0 %v656_v22 }
  0x19   :  { %617 = vmatpush3.bf16.msra.mxu1 %v657_v23  ;;  %590 = vmatprep.subr.bf16.mxu0 %v658_v24 }
  0x1a   :  { %618 = vmatprep.subr.bf16.mxu1 %v659_v25 }
  0x1c   :  { %591 = vmatpush3.bf16.msra.mxu0 %v660_v26 }
  0x1d   :  { %619 = vmatpush3.bf16.msra.mxu1 %v661_v27  ;;  %592 = vmatprep.subr.bf16.mxu0 %v662_v28 }
  0x1e   :  { %620 = vmatprep.subr.bf16.mxu1 %v663_v29 }
  0x20   :  { %593 = vmatpush3.bf16.msra.mxu0 %v664_v30 }
  0x21   :  { %621 = vmatpush3.bf16.msra.mxu1 %v665_v31 }
  0x23   :  { %370 = vmatmul.mubr.bf16.vlgmr.msra.gmra.mxu0 %v666_v32 }
  0x24   :  { %419 = vmatmul.mubr.bf16.vlgmr.msra.gmra.mxu1 %v669_v34  ;;  %377 = vmatprep.mubr.bf16.mxu0 %v672_v36 }
  0x25   :  { %426 = vmatprep.mubr.bf16.mxu1 %v674_v37 }
  0x2b   :  { %378 = vmatmul.mubr.bf16.gmra.mxu0 %v676_v38 }
  0x2c   :  { %427 = vmatmul.mubr.bf16.gmra.mxu1 %v677_v39 }
  0xe3   :  { %v594_v40 = vpop.f32.mrf.mxu0 }
  0xe4   :  { %v622_v41 = vpop.f32.mrf.mxu1 }
  0xe5   :  { %v595_v42 = vpop.f32.mrf.mxu0 }
  0xe6   :  { %v596_v43 = vadd.f32 %v595_v42, %v594_v40  ;;  %v623_v44 = vpop.f32.mrf.mxu1 }
  0xe7   :  { %v624_v45 = vadd.f32 %v623_v44, %v622_v41  ;;  %v597_v46 = vpop.f32.mrf.mxu0 }
  0xe8   :  { %v625_v48 = vpop.f32.mrf.mxu1 }
  0xe9   :  { %v421_v49 = vadd.f32 %v624_v45, %v596_v43  ;;  %v598_v50 = vpop.f32.mrf.mxu0 }
  0xea   :  { %v599_v51 = vadd.f32 %v598_v50, %v597_v46  ;;  %v626_v52 = vpop.f32.mrf.mxu1 }
  0xeb   :  { %v466_v54 = vadd.f32 %v548_v47, %v421_v49  ;;  %v627_v55 = vadd.f32 %v626_v52, %v625_v48  ;;  %v600_v56 = vpop.f32.mrf.mxu0 }
  0xec   :  { %v628_v58 = vpop.f32.mrf.mxu1 }
  0xed   :  { %v424_v59 = vadd.f32 %v627_v55, %v599_v51  ;;  %v601_v60 = vpop.f32.mrf.mxu0  ;;  %v476_v0 = vmul.f32 %v549_v57, %v466_v54 }
  0xee   :  { %v602_v62 = vadd.f32 %v601_v60, %v600_v56  ;;  %v629_v63 = vpop.f32.mrf.mxu1 }
  0xef   :  { %v467_v2 = vadd.f32 %v548_v47, %v424_v59  ;;  %v630_v3 = vadd.f32 %v629_v63, %v628_v58  ;;  %v603_v4 = vpop.f32.mrf.mxu0  ;;  %v480_v11 = vadd.f32 %v560_v61, %v476_v0 }
  0xf0   :  { %v631_v5 = vpop.f32.mrf.mxu1 }
  0xf1   :  { %v477_v6 = vmul.f32 %v549_v57, %v467_v2  ;;  %v429_v7 = vadd.f32 %v630_v3, %v602_v62  ;;  %v604_v8 = vpop.f32.mrf.mxu0 }
  0xf2   :  { %v605_v9 = vadd.f32 %v604_v8, %v603_v4  ;;  %v632_v10 = vpop.f32.mrf.mxu1 }
  0xf3   :  { %v481_v12 = vadd.f32 %v561_v1, %v477_v6  ;;  %v468_v13 = vadd.f32 %v548_v47, %v429_v7  ;;  %v633_v14 = vadd.f32 %v632_v10, %v631_v5 }
  0xf5   :  { %v569_v16 = vpack.c.bf16 %v481_v12, %v480_v11  ;;  %v432_v17 = vadd.f32 %v633_v14, %v605_v9  ;;  %v478_v19 = vmul.f32 %v549_v57, %v468_v13 }
  0xf7   :  { %570 = vst [vmem:[%s851_s5] sm:$0xff] %v569_v16   ;;  %v469_v21 = vadd.f32 %v548_v47, %v432_v17  ;;  %v482_v23 = vadd.f32 %v564_v18, %v478_v19 }
  0xf9   :  { %v479_v22 = vmul.f32 %v549_v57, %v469_v21 }
  0xfb   :  { %v483_v24 = vadd.f32 %v565_v20, %v479_v22 }
  0xfd   :  { %v574_v25 = vpack.c.bf16 %v483_v24, %v482_v23 }
  0xff   :  { %577 = vst [vmem:[%s851_s5 + $0x8] sm:$0xff] %v574_v25  }

// kernel: dinov2_encoder_forward.16
= control target key start
LH: loop header
LB: loop body
LE: loop exit
PB: predicated region body
PF: predicated region fallthrough
CT: control target
= control target key end

     0   :  { %v1075_v48 = vmov 0   ;;  %s1566_s0 = inlined_call_operand.vmem [shape: bf16[32,128], index: 0, kind: input, shape index: {}]   ;;  %s1567_s3 = inlined_call_operand.vmem [shape: bf16[128,512], index: 3, kind: input, shape index: {}]   ;;  %s1568_s1 = inlined_call_operand.vmem [shape: f32[1,128], index: 1, kind: input, shape index: {}]   ;;  %s1569_s2 = inlined_call_operand.vmem [shape: f32[1,128], index: 2, kind: input, shape index: {}]   ;;  %s1570_s4 = inlined_call_operand.vmem [shape: f32[1,512], index: 4, kind: input, shape index: {}]   ;;  %s1571_s5 = inlined_call_operand.vmem [shape: bf16[32,512], index: 5, kind: output, shape index: {}]  }
   0x1   :  { %v945_v0 = vld [vmem:[%s1566_s0] sm:$0xff]   ;;  %v952_v1 = vld [vmem:[%s1566_s0 + $0x8] sm:$0xff]   ;;  %344 = vmatprep.mubr.bf16.mxu0 %v1075_v48  ;;  %397 = vmatprep.mubr.bf16.mxu1 %v1075_v48 }
   0x2   :  { %v946_v2 = vunpack.c.l.bf16 %v945_v0  ;;  %v950_v3 = vunpack.c.l.bf16 %v952_v1  ;;  %v947_v4 = vunpack.c.h.bf16 %v945_v0  ;;  %v951_v5 = vunpack.c.h.bf16 %v952_v1  ;;  %v955_v6 = vld [vmem:[%s1567_s3 + $0xe4] ss:$16 sps:$4 sm:$0xff]   ;;  %v957_v7 = vld [vmem:[%s1567_s3 + $0xec] ss:$16 sps:$4 sm:$0xff]   ;;  %v959_v8 = vld [vmem:[%s1567_s3 + $0xe0] ss:$16 sps:$4 sm:$0xff]  }
   0x3   :  { %312 = vmatprep.subr.bf16.mxu0 %v955_v6  ;;  %v960_v9 = vld [vmem:[%s1567_s3 + $0xe8] ss:$16 sps:$4 sm:$0xff]   ;;  %365 = vmatprep.subr.bf16.mxu1 %v957_v7  ;;  %v961_v26 = vld [vmem:[%s1567_s3 + $0xc4] ss:$16 sps:$4 sm:$0xff]   ;;  %v963_v27 = vld [vmem:[%s1567_s3 + $0xcc] ss:$16 sps:$4 sm:$0xff]  }
   0x4   :  { %29 = vadd.xlane.f32.xlu0 %v946_v2  ;;  %33 = vadd.xlane.f32.xlu1 %v950_v3  ;;  %v965_v28 = vld [vmem:[%s1567_s3 + $0xc0] ss:$16 sps:$4 sm:$0xff]   ;;  %v966_v29 = vld [vmem:[%s1567_s3 + $0xc8] ss:$16 sps:$4 sm:$0xff]   ;;  %v967_v30 = vld [vmem:[%s1567_s3 + $0xa4] ss:$16 sps:$4 sm:$0xff]  }
   0x5   :  { %313 = vmatpush1.bf16.msra.mxu0 %v959_v8  ;;  %366 = vmatpush1.bf16.msra.mxu1 %v960_v9  ;;  %v969_v31 = vld [vmem:[%s1567_s3 + $0xac] ss:$16 sps:$4 sm:$0xff]   ;;  %v971_v32 = vld [vmem:[%s1567_s3 + $0xa0] ss:$16 sps:$4 sm:$0xff]   ;;  %v972_v33 = vld [vmem:[%s1567_s3 + $0xa8] ss:$16 sps:$4 sm:$0xff]  }
   0x6   :  { %314 = vmatprep.subr.bf16.mxu0 %v961_v26  ;;  %367 = vmatprep.subr.bf16.mxu1 %v963_v27  ;;  %v973_v34 = vld [vmem:[%s1567_s3 + $0x84] ss:$16 sps:$4 sm:$0xff]   ;;  %v975_v35 = vld [vmem:[%s1567_s3 + $0x8c] ss:$16 sps:$4 sm:$0xff]   ;;  %v977_v36 = vld [vmem:[%s1567_s3 + $0x80] ss:$16 sps:$4 sm:$0xff]  }
   0x7   :  { %v978_v37 = vld [vmem:[%s1567_s3 + $0x88] ss:$16 sps:$4 sm:$0xff]   ;;  %v979_v38 = vld [vmem:[%s1567_s3 + $0x64] ss:$16 sps:$4 sm:$0xff]   ;;  %v981_v39 = vld [vmem:[%s1567_s3 + $0x6c] ss:$16 sps:$4 sm:$0xff]  }
   0x8   :  { %31 = vadd.xlane.f32.xlu0 %v947_v4  ;;  %35 = vadd.xlane.f32.xlu1 %v951_v5  ;;  %v983_v40 = vld [vmem:[%s1567_s3 + $0x60] ss:$16 sps:$4 sm:$0xff]   ;;  %v984_v41 = vld [vmem:[%s1567_s3 + $0x68] ss:$16 sps:$4 sm:$0xff]   ;;  %v985_v42 = vld [vmem:[%s1567_s3 + $0x44] ss:$16 sps:$4 sm:$0xff]  }
   0x9   :  { %315 = vmatpush1.bf16.msra.mxu0 %v965_v28  ;;  %368 = vmatpush1.bf16.msra.mxu1 %v966_v29  ;;  %v987_v43 = vld [vmem:[%s1567_s3 + $0x4c] ss:$16 sps:$4 sm:$0xff]   ;;  %v989_v44 = vld [vmem:[%s1567_s3 + $0x40] ss:$16 sps:$4 sm:$0xff]   ;;  %v990_v45 = vld [vmem:[%s1567_s3 + $0x48] ss:$16 sps:$4 sm:$0xff]  }
   0xa   :  { %316 = vmatprep.subr.bf16.mxu0 %v967_v30  ;;  %369 = vmatprep.subr.bf16.mxu1 %v969_v31  ;;  %v991_v46 = vld [vmem:[%s1567_s3 + $0x24] ss:$16 sps:$4 sm:$0xff]   ;;  %v993_v47 = vld [vmem:[%s1567_s3 + $0x2c] ss:$16 sps:$4 sm:$0xff]   ;;  %v995_v49 = vld [vmem:[%s1567_s3 + $0x20] ss:$16 sps:$4 sm:$0xff]  }
   0xb   :  { %v996_v50 = vld [vmem:[%s1567_s3 + $0x28] ss:$16 sps:$4 sm:$0xff]   ;;  %v997_v51 = vld [vmem:[%s1567_s3 + $0x4] ss:$16 sps:$4 sm:$0xff]   ;;  %v999_v52 = vld [vmem:[%s1567_s3 + $0xc] ss:$16 sps:$4 sm:$0xff]  }
   0xc   :  { %v1001_v53 = vld [vmem:[%s1567_s3] ss:$16 sps:$4 sm:$0xff]   ;;  %v1002_v54 = vld [vmem:[%s1567_s3 + $0x8] ss:$16 sps:$4 sm:$0xff]  }
   0xd   :  { %317 = vmatpush1.bf16.msra.mxu0 %v971_v32  ;;  %370 = vmatpush1.bf16.msra.mxu1 %v972_v33 }
   0xe   :  { %318 = vmatprep.subr.bf16.mxu0 %v973_v34  ;;  %371 = vmatprep.subr.bf16.mxu1 %v975_v35 }
  0x11   :  { %319 = vmatpush1.bf16.msra.mxu0 %v977_v36  ;;  %372 = vmatpush1.bf16.msra.mxu1 %v978_v37 }
  0x12   :  { %320 = vmatprep.subr.bf16.mxu0 %v979_v38  ;;  %373 = vmatprep.subr.bf16.mxu1 %v981_v39 }
  0x15   :  { %321 = vmatpush1.bf16.msra.mxu0 %v983_v40  ;;  %374 = vmatpush1.bf16.msra.mxu1 %v984_v41 }
  0x16   :  { %322 = vmatprep.subr.bf16.mxu0 %v985_v42  ;;  %375 = vmatprep.subr.bf16.mxu1 %v987_v43 }
  0x19   :  { %323 = vmatpush1.bf16.msra.mxu0 %v989_v44  ;;  %376 = vmatpush1.bf16.msra.mxu1 %v990_v45 }
  0x1a   :  { %324 = vmatprep.subr.bf16.mxu0 %v991_v46  ;;  %377 = vmatprep.subr.bf16.mxu1 %v993_v47 }
  0x1d   :  { %325 = vmatpush1.bf16.msra.mxu0 %v995_v49  ;;  %378 = vmatpush1.bf16.msra.mxu1 %v996_v50 }
  0x1e   :  { %326 = vmatprep.subr.bf16.mxu0 %v997_v51  ;;  %379 = vmatprep.subr.bf16.mxu1 %v999_v52 }
  0x21   :  { %327 = vmatpush1.bf16.msra.mxu0 %v1001_v53  ;;  %380 = vmatpush1.bf16.msra.mxu1 %v1002_v54 }
  0x8d   :  { %v30_v10 = vpop.xlane.xlu0 %29  ;;  %v34_v11 = vpop.xlane.xlu1 %33 }
  0x8e   :  { %v38_v12 = vmul.f32 0.0078125, %v30_v10  ;;  %v40_v13 = vmul.f32 0.0078125, %v34_v11  ;;  %v895_v10 = vld [vmem:[%s1569_s2] ss:$0 sm:$0xff] }
  0x90   :  { %v1125_v14 = vsub.f32 %v946_v2, %v38_v12  ;;  %v1127_v15 = vsub.f32 %v950_v3, %v40_v13 }
  0x91   :  { %v32_v16 = vpop.xlane.xlu0 %31  ;;  %v36_v17 = vpop.xlane.xlu1 %35 }
  0x92   :  { %v39_v18 = vmul.f32 0.0078125, %v32_v16  ;;  %v46_v19 = vmul.f32 %v1125_v14, %v1125_v14  ;;  %v41_v20 = vmul.f32 0.0078125, %v36_v17  ;;  %v48_v23 = vmul.f32 %v1127_v15, %v1127_v15 }
  0x94   :  { %v1131_v21 = vsub.f32 %v947_v4, %v39_v18  ;;  %50 = vadd.xlane.f32.xlu0 %v46_v19  ;;  %v1133_v22 = vsub.f32 %v951_v5, %v41_v20  ;;  %v894_v5 = vld [vmem:[%s1568_s1] ss:$0 sm:$0xff] }
  0x96   :  { %v47_v24 = vmul.f32 %v1131_v21, %v1131_v21  ;;  %v49_v25 = vmul.f32 %v1133_v22, %v1133_v22 }
  0x98   :  { %54 = vadd.xlane.f32.xlu0 %v48_v23  ;;  %52 = vadd.xlane.f32.xlu1 %v47_v24 }
  0x9c   :  { %56 = vadd.xlane.f32.xlu1 %v49_v25  ;;  %v132_v25 = vlaneseq }
  0x9e   :  { %v133_v26 = vshrl.u32 %v132_v25, 7 }
  0xa0   :  { %v134_v27 = vsub.s32 0, %v133_v26  ;;  %v142_v28 = vsub.s32 2, %v133_v26  ;;  %v146_v29 = vsub.s32 3, %v133_v26 }
 0x11d   :  { %v51_v55 = vpop.xlane.xlu0 %50 }
 0x11e   :  { %v58_v56 = vmul.f32 0.0078125, %v51_v55 }
 0x120   :  { %v62_v57 = vadd.f32 1e-06, %v58_v56 }
 0x121   :  { %v53_v58 = vpop.xlane.xlu1 %52  ;;  %v55_v59 = vpop.xlane.xlu0 %54 }
 0x122   :  { %1003 = vrsqrt.f32 %v62_v57  ;;  %v59_v60 = vmul.f32 0.0078125, %v53_v58  ;;  %v60_v61 = vmul.f32 0.0078125, %v55_v59 }
 0x124   :  { %v63_v62 = vadd.f32 1e-06, %v59_v60  ;;  %v64_v63 = vadd.f32 1e-06, %v60_v61 }
 0x125   :  { %v57_v0 = vpop.xlane.xlu1 %56 }
 0x126   :  { %1005 = vrsqrt.f32 %v63_v62  ;;  %v61_v1 = vmul.f32 0.0078125, %v57_v0 }
 0x127   :  { %1007 = vrsqrt.f32 %v64_v63 }
 0x128   :  { %v65_v2 = vadd.f32 1e-06, %v61_v1 }
 0x12a   :  { %1009 = vrsqrt.f32 %v65_v2 }
 0x12f   :  { %v1004_v3 = vpop.eup %1003 }
 0x130   :  { %v70_v4 = vmul.f32 %v1004_v3, %v1125_v14 }
 0x132   :  { %v81_v8 = vmul.f32 %v894_v5, %v70_v4 }
 0x133   :  { %v1006_v6 = vpop.eup %1005 }
 0x134   :  { %v71_v7 = vmul.f32 %v1006_v6, %v1131_v21  ;;  %v1008_v9 = vpop.eup %1007  ;;  %v92_v13 = vadd.f32 %v895_v10, %v81_v8 }
 0x135   :  { %v72_v17 = vmul.f32 %v1008_v9, %v1127_v15  ;;  %v130_v15 = vld [vmem:[%s1570_s4] sm:$0xf]  ;;  %v1076_v9 = vmov -1.0  }
 0x136   :  { %v82_v11 = vmul.f32 %v894_v5, %v71_v7  ;;  %v1238_v30 = vrot.slane %v130_v15, %v134_v27  ;;  %v1240_v31 = vrot.slane %v130_v15, %v142_v28  ;;  %v1244_v35 = vrot.slane %v130_v15, %v146_v29 }
 0x137   :  { %v1010_v12 = vpop.eup %1009  ;;  %v83_v20 = vmul.f32 %v894_v5, %v72_v17 }
 0x138   :  { %v93_v16 = vadd.f32 %v895_v10, %v82_v11  ;;  %v73_v14 = vmul.f32 %v1010_v12, %v1133_v22  ;;  %v138_v22 = vsub.s32 1, %v133_v26 }
 0x139   :  { %v94_v23 = vadd.f32 %v895_v10, %v83_v20 }
 0x13a   :  { %v96_v18 = vpack.c.bf16 %v93_v16, %v92_v13  ;;  %v84_v19 = vmul.f32 %v894_v5, %v73_v14  ;;  %v1242_v34 = vrot.slane %v130_v15, %v138_v22 }
 0x13c   :  { %345 = vmatmul.mubr.bf16.vlgmr.msra.gmra.mxu0 %v96_v18  ;;  %398 = vmatmul.mubr.bf16.vlgmr.msra.gmra.mxu1 %v96_v18  ;;  %v95_v21 = vadd.f32 %v895_v10, %v84_v19 }
 0x13d   :  { %354 = vmatprep.mubr.bf16.mxu0 %v1075_v48  ;;  %407 = vmatprep.mubr.bf16.mxu1 %v1075_v48 }
 0x13e   :  { %v97_v24 = vpack.c.bf16 %v95_v21, %v94_v23 }
 0x144   :  { %355 = vmatmul.mubr.bf16.gmra.mxu0 %v97_v24  ;;  %408 = vmatmul.mubr.bf16.gmra.mxu1 %v97_v24 }
 0x1fc   :  { %v346_v32 = vpop.f32.mrf.mxu0  ;;  %v399_v33 = vpop.f32.mrf.mxu1 }
 0x1fd   :  { %v347_v36 = vadd.f32 %v346_v32, %v1238_v30  ;;  %v400_v37 = vadd.f32 %v399_v33, %v1240_v31 }
 0x1fe   :  { %v348_v38 = vpop.f32.mrf.mxu0  ;;  %v401_v39 = vpop.f32.mrf.mxu1 }
 0x1ff   :  { %v434_v40 = vmul.f32 0.70710677, %v347_v36  ;;  %v436_v41 = vmul.f32 0.70710677, %v400_v37  ;;  %v349_v42 = vadd.f32 %v348_v38, %v1242_v34  ;;  %v402_v43 = vadd.f32 %v401_v39, %v1244_v35 }
 0x200   :  { %v350_v47 = vpop.f32.mrf.mxu0  ;;  %v403_v55 = vpop.f32.mrf.mxu1  ;;  %v1275_v8 = vmul.f32 0.5, %v347_v36  ;;  %v1280_v11 = vmul.f32 0.5, %v400_v37 }
 0x201   :  { %v482_v44 = vand.u32 2147483647, %v434_v40  ;;  %v484_v45 = vand.u32 2147483647, %v436_v41  ;;  %v1250_v46 = vmul.f32 0.70710677, %v349_v42  ;;  %v1257_v60 = vadd.f32 %v350_v47, %v1238_v30 }
 0x202   :  { %v1253_v51 = vmul.f32 0.70710677, %v402_v43  ;;  %v352_v56 = vpop.f32.mrf.mxu0  ;;  %v1260_v61 = vadd.f32 %v403_v55, %v1240_v31  ;;  %vm450_vm0 = vcmp.ge.f32.partialorder %v434_v40, 0.0  ;;  %vm452_vm1 = vcmp.ge.f32.partialorder %v436_v41, 0.0  ;;  %v405_v7 = vpop.f32.mrf.mxu1 }
 0x203   :  { %v498_v48 = vmul.f32 0.3275911, %v482_v44  ;;  %v500_v49 = vmul.f32 0.3275911, %v484_v45  ;;  %v483_v50 = vand.u32 2147483647, %v1250_v46  ;;  %v1263_v62 = vadd.f32 %v352_v56, %v1242_v34 }
 0x204   :  { %v485_v58 = vand.u32 2147483647, %v1253_v51  ;;  %v690_v59 = vsub.f32 0.0, %v482_v44  ;;  %v692_v0 = vsub.f32 0.0, %v484_v45  ;;  %v1266_v1 = vmul.f32 0.70710677, %v1257_v60  ;;  %v356_v26 = vpop.f32.mrf.mxu0 }
 0x205   :  { %v514_v52 = vadd.f32 1.0, %v498_v48  ;;  %v516_v53 = vadd.f32 1.0, %v500_v49  ;;  %v499_v54 = vmul.f32 0.3275911, %v483_v50  ;;  %v1269_v3 = vmul.f32 0.70710677, %v1260_v61 }
 0x206   :  { %v501_v63 = vmul.f32 0.3275911, %v485_v58  ;;  %v706_v4 = vmul.f32 %v690_v59, %v482_v44  ;;  %v486_v5 = vand.u32 2147483647, %v1266_v1  ;;  %v1273_v6 = vmul.f32 0.70710677, %v1263_v62 }
 0x207   :  { %1011 = vrcp.f32 %v514_v52  ;;  %v515_v57 = vadd.f32 1.0, %v499_v54  ;;  %v1278_v10 = vsel %vm450_vm0, 1.0, %v1076_v9  ;;  %v708_v12 = vmul.f32 %v692_v0, %v484_v45 }
 0x208   :  { %1013 = vrcp.f32 %v516_v53  ;;  %v517_v2 = vadd.f32 1.0, %v501_v63  ;;  %v691_v13 = vsub.f32 0.0, %v483_v50  ;;  %v502_v16 = vmul.f32 0.3275911, %v486_v5 }
 0x209   :  { %1015 = vrcp.f32 %v515_v57  ;;  %v488_v17 = vand.u32 2147483647, %v1269_v3  ;;  %v1284_v14 = vsel %vm452_vm1, 1.0, %v1076_v9  ;;  %v1286_v18 = vmul.f32 0.5, %v349_v42 }
 0x20a   :  { %1017 = vrcp.f32 %v517_v2  ;;  %v487_v19 = vand.u32 2147483647, %v1273_v6  ;;  %v1290_v20 = vadd.f32 %v405_v7, %v1244_v35  ;;  %v722_v21 = vmul.f32 1.442695, %v706_v4 }
 0x20b   :  { %v693_v23 = vsub.f32 0.0, %v485_v58  ;;  %v518_v24 = vadd.f32 1.0, %v502_v16  ;;  %v504_v25 = vmul.f32 0.3275911, %v488_v17  ;;  %vm451_vm2 = vcmp.ge.f32.partialorder %v1250_v46, 0.0 }
 0x20c   :  { %v1293_v27 = vmul.f32 0.5, %v402_v43  ;;  %v694_v28 = vsub.f32 0.0, %v486_v5  ;;  %v503_v15 = vmul.f32 0.3275911, %v487_v19  ;;  %v726_v22 = vmul.f32 1.442695, %v708_v12 }
 0x20d   :  { %v707_v29 = vmul.f32 %v691_v13, %v483_v50  ;;  %1019 = vrcp.f32 %v518_v24  ;;  %v520_v32 = vadd.f32 1.0, %v504_v25  ;;  %v696_v36 = vsub.f32 0.0, %v488_v17  ;;  %v409_v24 = vpop.f32.mrf.mxu1 }
 0x20e   :  { %v519_v37 = vadd.f32 1.0, %v503_v15  ;;  %v1298_v38 = vmul.f32 0.70710677, %v1290_v20  ;;  %v1301_v39 = vadd.f32 %v356_v26, %v1238_v30  ;;  %1021 = vpow2.f32 %v722_v21 }
 0x20f   :  { %v1309_v42 = vsel %vm451_vm2, 1.0, %v1076_v9  ;;  %v709_v43 = vmul.f32 %v693_v23, %v485_v58  ;;  %v710_v45 = vmul.f32 %v694_v28, %v486_v5  ;;  %1023 = vrcp.f32 %v520_v32 }
 0x210   :  { %v695_v47 = vsub.f32 0.0, %v487_v19  ;;  %1025 = vpow2.f32 %v726_v22  ;;  %v724_v49 = vmul.f32 1.442695, %v707_v29  ;;  %v489_v50 = vand.u32 2147483647, %v1298_v38 }
 0x211   :  { %v712_v54 = vmul.f32 %v696_v36, %v488_v17  ;;  %1027 = vrcp.f32 %v519_v37  ;;  %v1316_v46 = vmul.f32 0.70710677, %v1301_v39  ;;  %v728_v57 = vmul.f32 1.442695, %v709_v43 }
 0x212   :  { %v505_v58 = vmul.f32 0.3275911, %v489_v50  ;;  %v730_v63 = vmul.f32 1.442695, %v710_v45  ;;  %v711_v0 = vmul.f32 %v695_v47, %v487_v19  ;;  %vm453_vm3 = vcmp.ge.f32.partialorder %v1253_v51, 0.0 }
 0x213   :  { %v1322_v2 = vand.u32 2147483647, %v1316_v46  ;;  %1029 = vpow2.f32 %v724_v49  ;;  %v734_v17 = vmul.f32 1.442695, %v712_v54  ;;  %v697_v29 = vsub.f32 0.0, %v489_v50 }
 0x214   :  { %v1295_v33 = vpop.eup %1011  ;;  %v521_v12 = vadd.f32 1.0, %v505_v58  ;;  %v732_v28 = vmul.f32 1.442695, %v711_v0  ;;  %vm454_vm4 = vcmp.ge.f32.partialorder %v1266_v1, 0.0  ;;  %vm455_vm5 = vcmp.ge.f32.partialorder %v1273_v6, 0.0 }
 0x215   :  { %v1303_v40 = vpop.eup %1013  ;;  %v546_v41 = vmul.f32 1.0614054, %v1295_v33  ;;  %v506_v19 = vmul.f32 0.3275911, %v1322_v2  ;;  %vm456_vm6 = vcmp.ge.f32.partialorder %v1269_v3, 0.0  ;;  %v471_v6 = vsel %vm455_vm5, 1.0, %v1076_v9 }
 0x216   :  { %v548_v44 = vmul.f32 1.0614054, %v1303_v40  ;;  %v1313_v52 = vpop.eup %1015  ;;  %1031 = vrcp.f32 %v521_v12  ;;  %v472_v3 = vsel %vm456_vm6, 1.0, %v1076_v9  ;;  %vm457_vm7 = vcmp.ge.f32.partialorder %v1298_v38, 0.0 }
 0x217   :  { %v562_v48 = vadd.f32 -1.4531521, %v546_v41  ;;  %v547_v56 = vmul.f32 1.0614054, %v1313_v52  ;;  %v1324_v4 = vpop.eup %1017  ;;  %1033 = vpow2.f32 %v728_v57  ;;  %v1336_v41 = vadd.f32 %v409_v24, %v1240_v31 }
 0x218   :  { %v564_v53 = vadd.f32 -1.4531521, %v548_v44  ;;  %v549_v16 = vmul.f32 1.0614054, %v1324_v4  ;;  %1035 = vpow2.f32 %v730_v63  ;;  %v522_v47 = vadd.f32 1.0, %v506_v19 }
 0x219   :  { %v578_v55 = vmul.f32 %v1295_v33, %v562_v48  ;;  %v563_v7 = vadd.f32 -1.4531521, %v547_v56  ;;  %1037 = vpow2.f32 %v734_v17  ;;  %v1352_v12 = vmul.f32 0.70710677, %v1336_v41 }
 0x21a   :  { %v580_v59 = vmul.f32 %v1303_v40, %v564_v53  ;;  %v565_v26 = vadd.f32 -1.4531521, %v549_v16  ;;  %v1332_v32 = vpop.eup %1019  ;;  %v1345_v53 = vsel %vm453_vm3, 1.0, %v1076_v9  ;;  %1039 = vpow2.f32 %v732_v28 }
 0x21b   :  { %v594_v5 = vadd.f32 1.4214138, %v578_v55  ;;  %v579_v23 = vmul.f32 %v1313_v52, %v563_v7  ;;  %v550_v45 = vmul.f32 1.0614054, %v1332_v32  ;;  %v1022_v48 = vpop.eup %1021  ;;  %1041 = vrcp.f32 %v522_v47 }
 0x21c   :  { %v596_v13 = vadd.f32 1.4214138, %v580_v59  ;;  %v581_v37 = vmul.f32 %v1324_v4, %v565_v26  ;;  %v1347_v55 = vpop.eup %1023  ;;  %v713_v59 = vmul.f32 %v697_v29, %v489_v50  ;;  %v698_v38 = vsub.f32 0.0, %v1322_v2 }
 0x21d   :  { %v610_v21 = vmul.f32 %v1295_v33, %v594_v5  ;;  %v595_v22 = vadd.f32 1.4214138, %v579_v23  ;;  %v566_v58 = vadd.f32 -1.4531521, %v550_v45  ;;  %v1026_v63 = vpop.eup %1025  ;;  %v552_v7 = vmul.f32 1.0614054, %v1347_v55 }
 0x21e   :  { %v612_v25 = vmul.f32 %v1303_v40, %v596_v13  ;;  %v597_v54 = vadd.f32 1.4214138, %v581_v37  ;;  %v1354_v51 = vpop.eup %1027  ;;  %v736_v28 = vmul.f32 1.442695, %v713_v59  ;;  %vm458_vm8 = vcmp.ge.f32.partialorder %v1316_v46, 0.0 }
 0x21f   :  { %v626_v15 = vadd.f32 -0.28449672, %v610_v21  ;;  %v611_v44 = vmul.f32 %v1313_v52, %v595_v22  ;;  %v582_v17 = vmul.f32 %v1332_v32, %v566_v58  ;;  %v568_v23 = vadd.f32 -1.4531521, %v552_v7 }
 0x220   :  { %v628_v36 = vadd.f32 -0.28449672, %v612_v25  ;;  %v613_v5 = vmul.f32 %v1324_v4, %v597_v54  ;;  %v551_v19 = vmul.f32 1.0614054, %v1354_v51  ;;  %1043 = vpow2.f32 %v736_v28 }
 0x221   :  { %v642_v43 = vmul.f32 %v1295_v33, %v626_v15  ;;  %v627_v57 = vadd.f32 -0.28449672, %v611_v44  ;;  %v598_v26 = vadd.f32 1.4214138, %v582_v17  ;;  %v1366_v44 = vand.u32 2147483647, %v1352_v12 }
 0x222   :  { %v644_v49 = vmul.f32 %v1303_v40, %v628_v36  ;;  %v629_v21 = vadd.f32 -0.28449672, %v613_v5  ;;  %v567_v29 = vadd.f32 -1.4531521, %v551_v19  ;;  %v1030_v36 = vpop.eup %1029  ;;  %vm460_vm9 = vcmp.ge.f32.partialorder %v1352_v12, 0.0 }
 0x223   :  { %v658_v56 = vadd.f32 0.2548296, %v642_v43  ;;  %v643_v16 = vmul.f32 %v1313_v52, %v627_v57  ;;  %v1368_v45 = vpop.eup %1031 }
 0x224   :  { %v660_v0 = vadd.f32 0.2548296, %v644_v49  ;;  %v645_v22 = vmul.f32 %v1324_v4, %v629_v21  ;;  %v583_v54 = vmul.f32 %v1354_v51, %v567_v29  ;;  %v358_v21 = vpop.f32.mrf.mxu0 }
 0x225   :  { %v674_v13 = vmul.f32 %v1295_v33, %v658_v56  ;;  %v659_v25 = vadd.f32 0.2548296, %v643_v16  ;;  %v584_v33 = vmul.f32 %v1347_v55, %v568_v23  ;;  %v1034_v56 = vpop.eup %1033 }
 0x226   :  { %v676_v50 = vmul.f32 %v1303_v40, %v660_v0  ;;  %v614_v40 = vmul.f32 %v1332_v32, %v598_v26  ;;  %v599_v7 = vadd.f32 1.4214138, %v583_v54 }
 0x227   :  { %v754_v24 = vmul.f32 %v1022_v48, %v674_v13  ;;  %v675_v43 = vmul.f32 %v1313_v52, %v659_v25  ;;  %v661_v48 = vadd.f32 0.2548296, %v645_v22  ;;  %v600_v49 = vadd.f32 1.4214138, %v584_v33  ;;  %v1036_v52 = vpop.eup %1035 }
 0x228   :  { %v756_v15 = vmul.f32 %v1026_v63, %v676_v50  ;;  %v630_v59 = vadd.f32 -0.28449672, %v614_v40  ;;  %v553_v63 = vmul.f32 1.0614054, %v1368_v45  ;;  %v1038_v13 = vpop.eup %1037 }
 0x229   :  { %v770_v37 = vsub.f32 1.0, %v754_v24  ;;  %v755_v58 = vmul.f32 %v1030_v36, %v675_v43  ;;  %v677_v0 = vmul.f32 %v1324_v4, %v661_v48  ;;  %v616_v5 = vmul.f32 %v1347_v55, %v600_v49  ;;  %v1040_v25 = vpop.eup %1039 }
 0x22a   :  { %v772_v47 = vsub.f32 1.0, %v756_v15  ;;  %v646_v50 = vmul.f32 %v1332_v32, %v630_v59  ;;  %v615_v24 = vmul.f32 %v1354_v51, %v599_v7  ;;  %v508_v4 = vmul.f32 0.3275911, %v1366_v44  ;;  %v1387_v48 = vpop.eup %1041 }
 0x22b   :  { %v786_v57 = vmul.f32 %v770_v37, %v1278_v10  ;;  %v771_v17 = vsub.f32 1.0, %v755_v58  ;;  %v569_v10 = vadd.f32 -1.4531521, %v553_v63  ;;  %v757_v23 = vmul.f32 %v1034_v56, %v677_v0 }
 0x22c   :  { %v788_v16 = vmul.f32 %v772_v47, %v1284_v14  ;;  %v632_v19 = vadd.f32 -0.28449672, %v616_v5  ;;  %v662_v22 = vadd.f32 0.2548296, %v646_v50  ;;  %v631_v29 = vadd.f32 -0.28449672, %v615_v24 }
 0x22d   :  { %v802_v26 = vadd.f32 1.0, %v786_v57  ;;  %v787_v15 = vmul.f32 %v771_v17, %v1309_v42  ;;  %v585_v28 = vmul.f32 %v1368_v45, %v569_v10  ;;  %v773_v33 = vsub.f32 1.0, %v757_v23 }
 0x22e   :  { %v648_v14 = vmul.f32 %v1347_v55, %v632_v19  ;;  %v1384_v36 = vadd.f32 %v358_v21, %v1242_v34  ;;  %v804_v37 = vadd.f32 1.0, %v788_v16  ;;  %v678_v40 = vmul.f32 %v1332_v32, %v662_v22 }
 0x22f   :  { %v803_v43 = vadd.f32 1.0, %v787_v15  ;;  %v601_v47 = vadd.f32 1.4214138, %v585_v28  ;;  %v789_v49 = vmul.f32 %v773_v33, %v1345_v53  ;;  %v647_v54 = vmul.f32 %v1354_v51, %v631_v29 }
 0x230   :  { %v664_v42 = vadd.f32 0.2548296, %v648_v14  ;;  %v524_v56 = vadd.f32 1.0, %v508_v4  ;;  %v818_v57 = vmul.f32 %v802_v26, %v1275_v8  ;;  %v758_v59 = vmul.f32 %v1036_v52, %v678_v40  ;;  %v411_v52 = vpop.f32.mrf.mxu1 }
 0x231   :  { %v819_v58 = vmul.f32 %v803_v43, %v1286_v18  ;;  %v617_v63 = vmul.f32 %v1368_v45, %v601_v47  ;;  %v805_v0 = vadd.f32 1.0, %v789_v49  ;;  %v663_v32 = vadd.f32 0.2548296, %v647_v54 }
 0x232   :  { %v680_v5 = vmul.f32 %v1347_v55, %v664_v42  ;;  %1045 = vrcp.f32 %v524_v56  ;;  %v820_v7 = vmul.f32 %v804_v37, %v1280_v11  ;;  %v774_v53 = vsub.f32 1.0, %v758_v59  ;;  %v360_v37 = vpop.f32.mrf.mxu0 }
 0x233   :  { %v936_v16 = vpack.c.bf16 %v819_v58, %v818_v57  ;;  %v633_v17 = vadd.f32 -0.28449672, %v617_v63  ;;  %v821_v50 = vmul.f32 %v805_v0, %v1293_v27  ;;  %v679_v8 = vmul.f32 %v1354_v51, %v663_v32 }
 0x234   :  { %v760_v10 = vmul.f32 %v1038_v13, %v680_v5  ;;  %v554_v18 = vmul.f32 1.0614054, %v1387_v48  ;;  %v470_v55 = vsel %vm454_vm4, 1.0, %v1076_v9  ;;  %v1044_v13 = vpop.eup %1043  ;;  %v1409_v24 = vmul.f32 0.70710677, %v1384_v36 }
 0x235   :  { %882 = vst [vmem:[%s1571_s5] sm:$0xff] %v936_v16  ;;  %v649_v11 = vmul.f32 %v1368_v45, %v633_v17  ;;  %v937_v21 = vpack.c.bf16 %v821_v50, %v820_v7  ;;  %v790_v23 = vmul.f32 %v774_v53, %v470_v55  ;;  %v759_v27 = vmul.f32 %v1040_v25, %v679_v8  ;;  %v413_v17 = vpop.f32.mrf.mxu1 }
 0x236   :  { %v776_v51 = vsub.f32 1.0, %v760_v10  ;;  %v570_v4 = vadd.f32 -1.4531521, %v554_v18  ;;  %v1415_v26 = vadd.f32 %v411_v52, %v1244_v35  ;;  %v422_v28 = vmul.f32 0.5, %v1257_v60 }
 0x237   :  { %v665_v19 = vadd.f32 0.2548296, %v649_v11  ;;  %883 = vst [vmem:[%s1571_s5 + $0x8] sm:$0xff] %v937_v21  ;;  %v775_v1 = vsub.f32 1.0, %v759_v27  ;;  %v806_v15 = vadd.f32 1.0, %v790_v23  ;;  %v423_v43 = vmul.f32 0.5, %v1263_v62 }
 0x238   :  { %v792_v33 = vmul.f32 %v776_v51, %v472_v3  ;;  %v491_v29 = vand.u32 2147483647, %v1409_v24  ;;  %v586_v47 = vmul.f32 %v1387_v48, %v570_v4  ;;  %v473_v49 = vsel %vm457_vm7, 1.0, %v1076_v9 }
 0x239   :  { %v681_v25 = vmul.f32 %v1368_v45, %v665_v19  ;;  %v791_v22 = vmul.f32 %v775_v1, %v471_v6  ;;  %v1426_v45 = vmul.f32 0.70710677, %v1415_v26  ;;  %v822_v60 = vmul.f32 %v806_v15, %v422_v28  ;;  %v415_v28 = vpop.f32.mrf.mxu1 }
 0x23a   :  { %v507_v54 = vmul.f32 0.3275911, %v491_v29  ;;  %v1432_v58 = vadd.f32 %v360_v37, %v1238_v30  ;;  %v424_v59 = vmul.f32 0.5, %v1260_v61  ;;  %v808_v63 = vadd.f32 1.0, %v792_v33 }
 0x23b   :  { %v761_v14 = vmul.f32 %v1044_v13, %v681_v25  ;;  %v807_v40 = vadd.f32 1.0, %v791_v22  ;;  %v493_v57 = vand.u32 2147483647, %v1426_v45  ;;  %v602_v7 = vadd.f32 1.4214138, %v586_v47 }
 0x23c   :  { %v523_v5 = vadd.f32 1.0, %v507_v54  ;;  %v425_v50 = vmul.f32 0.5, %v1290_v20  ;;  %v714_v8 = vmul.f32 %v698_v38, %v1322_v2  ;;  %v700_v61 = vsub.f32 0.0, %v1366_v44  ;;  %v362_v20 = vpop.f32.mrf.mxu0 }
 0x23d   :  { %v777_v42 = vsub.f32 1.0, %v761_v14  ;;  %v823_v56 = vmul.f32 %v807_v40, %v423_v43  ;;  %v509_v53 = vmul.f32 0.3275911, %v493_v57  ;;  %v1445_v55 = vmul.f32 0.70710677, %v1432_v58 }
 0x23e   :  { %1047 = vrcp.f32 %v523_v5  ;;  %v824_v11 = vmul.f32 %v808_v63, %v424_v59  ;;  %v1448_v21 = vadd.f32 %v413_v17, %v1240_v31  ;;  %v618_v2 = vmul.f32 %v1387_v48, %v602_v7 }
 0x23f   :  { %v1434_v62 = vpop.eup %1045  ;;  %v793_v0 = vmul.f32 %v777_v42, %v473_v49  ;;  %v938_v32 = vpack.c.bf16 %v823_v56, %v822_v60  ;;  %v525_v18 = vadd.f32 1.0, %v509_v53  ;;  %v738_v13 = vmul.f32 1.442695, %v714_v8 }
 0x240   :  { %v556_v16 = vmul.f32 1.0614054, %v1434_v62  ;;  %v494_v51 = vand.u32 2147483647, %v1445_v55  ;;  %v716_v1 = vmul.f32 %v700_v61, %v1366_v44  ;;  %v699_v4 = vsub.f32 0.0, %v491_v29 }
 0x241   :  { %v809_v10 = vadd.f32 1.0, %v793_v0  ;;  %884 = vst [vmem:[%s1571_s5 + $0x10] sm:$0xff] %v938_v32  ;;  %1049 = vrcp.f32 %v525_v18  ;;  %v1455_v6 = vadd.f32 %v362_v20, %v1242_v34  ;;  %v1461_v25 = vmul.f32 0.70710677, %v1448_v21 }
 0x242   :  { %v572_v30 = vadd.f32 -1.4531521, %v556_v16  ;;  %v510_v31 = vmul.f32 0.3275911, %v494_v51  ;;  %v634_v15 = vadd.f32 -0.28449672, %v618_v2  ;;  %1051 = vpow2.f32 %v738_v13 }
 0x243   :  { %v825_v52 = vmul.f32 %v809_v10, %v425_v50  ;;  %v1465_v22 = vmul.f32 0.70710677, %v1455_v6  ;;  %v742_v33 = vmul.f32 1.442695, %v716_v1  ;;  %v715_v34 = vmul.f32 %v699_v4, %v491_v29 }
 0x244   :  { %v588_v23 = vmul.f32 %v1434_v62, %v572_v30  ;;  %v526_v44 = vadd.f32 1.0, %v510_v31  ;;  %v701_v14 = vsub.f32 0.0, %v493_v57  ;;  %v496_v37 = vand.u32 2147483647, %v1461_v25 }
 0x245   :  { %v939_v27 = vpack.c.bf16 %v825_v52, %v824_v11  ;;  %v495_v43 = vand.u32 2147483647, %v1465_v22  ;;  %v650_v40 = vmul.f32 %v1387_v48, %v634_v15  ;;  %v1471_v42 = vadd.f32 %v415_v28, %v1244_v35 }
 0x246   :  { %v604_v19 = vadd.f32 1.4214138, %v588_v23  ;;  %1053 = vrcp.f32 %v526_v44  ;;  %v512_v49 = vmul.f32 0.3275911, %v496_v37  ;;  %v740_v60 = vmul.f32 1.442695, %v715_v34 }
 0x247   :  { %885 = vst [vmem:[%s1571_s5 + $0x18] sm:$0xff] %v939_v27  ;;  %v511_v38 = vmul.f32 0.3275911, %v495_v43  ;;  %1055 = vpow2.f32 %v742_v33  ;;  %v717_v56 = vmul.f32 %v701_v14, %v493_v57  ;;  %v1477_v0 = vmul.f32 0.70710677, %v1471_v42 }
 0x248   :  { %v620_v3 = vmul.f32 %v1434_v62, %v604_v19  ;;  %v528_v29 = vadd.f32 1.0, %v512_v49  ;;  %v666_v5 = vadd.f32 0.2548296, %v650_v40  ;;  %v702_v16 = vsub.f32 0.0, %v494_v51 }
 0x249   :  { %v527_v63 = vadd.f32 1.0, %v511_v38  ;;  %v744_v17 = vmul.f32 1.442695, %v717_v56  ;;  %v1485_v50 = vand.u32 2147483647, %v1477_v0  ;;  %v1490_v20 = vmul.f32 0.5, %v1301_v39 }
 0x24a   :  { %v636_v47 = vadd.f32 -0.28449672, %v620_v3  ;;  %1057 = vrcp.f32 %v528_v29  ;;  %v682_v10 = vmul.f32 %v1387_v48, %v666_v5  ;;  %v718_v18 = vmul.f32 %v702_v16, %v494_v51 }
 0x24b   :  { %v1473_v54 = vpop.eup %1047  ;;  %1059 = vrcp.f32 %v527_v63  ;;  %v513_v11 = vmul.f32 0.3275911, %v1485_v50  ;;  %v704_v23 = vsub.f32 0.0, %v496_v37  ;;  %v703_v13 = vsub.f32 0.0, %v495_v43 }
 0x24c   :  { %v555_v59 = vmul.f32 1.0614054, %v1473_v54  ;;  %v652_v32 = vmul.f32 %v1434_v62, %v636_v47  ;;  %1061 = vpow2.f32 %v740_v60  ;;  %v746_v15 = vmul.f32 1.442695, %v718_v18 }
 0x24d   :  { %1063 = vpow2.f32 %v744_v17  ;;  %v529_v48 = vadd.f32 1.0, %v513_v11  ;;  %v474_v3 = vsel %vm458_vm8, 1.0, %v1076_v9  ;;  %vm459_vm10 = vcmp.ge.f32.partialorder %v1409_v24, 0.0 }
 0x24e   :  { %v1480_v7 = vpop.eup %1049  ;;  %v571_v35 = vadd.f32 -1.4531521, %v555_v59  ;;  %v668_v8 = vadd.f32 0.2548296, %v652_v32  ;;  %v720_v44 = vmul.f32 %v704_v23, %v496_v37  ;;  %v1504_v33 = vmul.f32 0.5, %v1336_v41 }
 0x24f   :  { %v557_v53 = vmul.f32 1.0614054, %v1480_v7  ;;  %v1052_v52 = vpop.eup %1051  ;;  %1065 = vrcp.f32 %v529_v48  ;;  %v719_v14 = vmul.f32 %v703_v13, %v495_v43  ;;  %v476_v47 = vsel %vm460_vm9, 1.0, %v1076_v9 }
 0x250   :  { %v587_v57 = vmul.f32 %v1473_v54, %v571_v35  ;;  %v762_v1 = vmul.f32 %v1052_v52, %v682_v10  ;;  %v684_v51 = vmul.f32 %v1434_v62, %v668_v8  ;;  %v475_v24 = vsel %vm459_vm10, 1.0, %v1076_v9 }
 0x251   :  { %v573_v30 = vadd.f32 -1.4531521, %v557_v53  ;;  %1067 = vpow2.f32 %v746_v15  ;;  %v750_v59 = vmul.f32 1.442695, %v720_v44  ;;  %v705_v12 = vsub.f32 0.0, %v1485_v50 }
 0x252   :  { %v603_v61 = vadd.f32 1.4214138, %v587_v57  ;;  %v778_v40 = vsub.f32 1.0, %v762_v1  ;;  %v748_v35 = vmul.f32 1.442695, %v719_v14  ;;  %vm461_vm11 = vcmp.ge.f32.partialorder %v1426_v45, 0.0 }
 0x253   :  { %v589_v2 = vmul.f32 %v1480_v7, %v573_v30  ;;  %v1495_v19 = vpop.eup %1053  ;;  %1069 = vpow2.f32 %v750_v59  ;;  %vm462_vm12 = vcmp.ge.f32.partialorder %v1445_v55, 0.0  ;;  %vm463_vm13 = vcmp.ge.f32.partialorder %v1465_v22, 0.0 }
 0x254   :  { %v619_v27 = vmul.f32 %v1473_v54, %v603_v61  ;;  %v558_v31 = vmul.f32 1.0614054, %v1495_v19  ;;  %v1056_v28 = vpop.eup %1055  ;;  %v794_v53 = vmul.f32 %v778_v40, %v474_v3  ;;  %1071 = vpow2.f32 %v748_v35 }
 0x255   :  { %v605_v4 = vadd.f32 1.4214138, %v589_v2  ;;  %v764_v49 = vmul.f32 %v1056_v28, %v684_v51  ;;  %vm464_vm14 = vcmp.ge.f32.partialorder %v1461_v25, 0.0  ;;  %vm465_vm15 = vcmp.ge.f32.partialorder %v1477_v0, 0.0 }
 0x256   :  { %v635_v39 = vadd.f32 -0.28449672, %v619_v27  ;;  %v574_v62 = vadd.f32 -1.4531521, %v558_v31  ;;  %v810_v13 = vadd.f32 1.0, %v794_v53 }
 0x257   :  { %v621_v46 = vmul.f32 %v1480_v7, %v605_v4  ;;  %v1510_v60 = vpop.eup %1057  ;;  %v780_v17 = vsub.f32 1.0, %v764_v49  ;;  %v427_v4 = vmul.f32 0.5, %v1384_v36 }
 0x258   :  { %v651_v34 = vmul.f32 %v1473_v54, %v635_v39  ;;  %v590_v56 = vmul.f32 %v1495_v19, %v574_v62  ;;  %v1514_v41 = vpop.eup %1059  ;;  %v560_v43 = vmul.f32 1.0614054, %v1510_v60  ;;  %v826_v36 = vmul.f32 %v810_v13, %v1490_v20 }
 0x259   :  { %v637_v38 = vadd.f32 -0.28449672, %v621_v46  ;;  %v559_v32 = vmul.f32 1.0614054, %v1514_v41  ;;  %v1062_v16 = vpop.eup %1061  ;;  %v796_v48 = vmul.f32 %v780_v17, %v476_v47 }
 0x25a   :  { %v667_v37 = vadd.f32 0.2548296, %v651_v34  ;;  %v606_v5 = vadd.f32 1.4214138, %v590_v56  ;;  %v576_v10 = vadd.f32 -1.4531521, %v560_v43  ;;  %v1064_v52 = vpop.eup %1063 }
 0x25b   :  { %v653_v29 = vmul.f32 %v1480_v7, %v637_v38  ;;  %v575_v61 = vadd.f32 -1.4531521, %v559_v32  ;;  %v812_v40 = vadd.f32 1.0, %v796_v48 }
 0x25c   :  { %v683_v63 = vmul.f32 %v1473_v54, %v667_v37  ;;  %v622_v30 = vmul.f32 %v1495_v19, %v606_v5  ;;  %v592_v11 = vmul.f32 %v1510_v60, %v576_v10  ;;  %v721_v54 = vmul.f32 %v705_v12, %v1485_v50  ;;  %v1066_v15 = vpop.eup %1065 }
 0x25d   :  { %v669_v57 = vadd.f32 0.2548296, %v653_v29  ;;  %v591_v27 = vmul.f32 %v1514_v41, %v575_v61  ;;  %v477_v50 = vsel %vm461_vm11, 1.0, %v1076_v9  ;;  %v561_v14 = vmul.f32 1.0614054, %v1066_v15 }
 0x25e   :  { %v763_v8 = vmul.f32 %v1062_v16, %v683_v63  ;;  %v638_v23 = vadd.f32 -0.28449672, %v622_v30  ;;  %v608_v51 = vadd.f32 1.4214138, %v592_v11  ;;  %v752_v44 = vmul.f32 1.442695, %v721_v54  ;;  %v1068_v56 = vpop.eup %1067 }
 0x25f   :  { %v685_v18 = vmul.f32 %v1480_v7, %v669_v57  ;;  %v607_v31 = vadd.f32 1.4214138, %v591_v27  ;;  %v577_v45 = vadd.f32 -1.4531521, %v561_v14  ;;  %v429_v29 = vmul.f32 0.5, %v1415_v26 }
 0x260   :  { %v779_v2 = vsub.f32 1.0, %v763_v8  ;;  %v654_v7 = vmul.f32 %v1495_v19, %v638_v23  ;;  %v624_v46 = vmul.f32 %v1510_v60, %v608_v51  ;;  %1073 = vpow2.f32 %v752_v44  ;;  %v1070_v10 = vpop.eup %1069 }
 0x261   :  { %v765_v1 = vmul.f32 %v1064_v52, %v685_v18  ;;  %v623_v62 = vmul.f32 %v1514_v41, %v607_v31  ;;  %v593_v20 = vmul.f32 %v1066_v15, %v577_v45  ;;  %v828_v32 = vmul.f32 %v812_v40, %v1504_v33  ;;  %v1072_v61 = vpop.eup %1071 }
 0x262   :  { %v795_v39 = vmul.f32 %v779_v2, %v475_v24  ;;  %v670_v34 = vadd.f32 0.2548296, %v654_v7  ;;  %v640_v49 = vadd.f32 -0.28449672, %v624_v46  ;;  %v478_v33 = vsel %vm462_vm12, 1.0, %v1076_v9 }
 0x263   :  { %v781_v3 = vsub.f32 1.0, %v765_v1  ;;  %v639_v37 = vadd.f32 -0.28449672, %v623_v62  ;;  %v609_v53 = vadd.f32 1.4214138, %v593_v20  ;;  %v430_v1 = vmul.f32 0.5, %v1432_v58 }
 0x264   :  { %v811_v28 = vadd.f32 1.0, %v795_v39  ;;  %v686_v24 = vmul.f32 %v1495_v19, %v670_v34  ;;  %v656_v59 = vmul.f32 %v1510_v60, %v640_v49  ;;  %v431_v51 = vmul.f32 0.5, %v1455_v6 }
 0x265   :  { %v797_v47 = vmul.f32 %v781_v3, %v477_v50  ;;  %v655_v5 = vmul.f32 %v1514_v41, %v639_v37  ;;  %v625_v30 = vmul.f32 %v1066_v15, %v609_v53  ;;  %v480_v39 = vsel %vm464_vm14, 1.0, %v1076_v9 }
 0x266   :  { %v827_v38 = vmul.f32 %v811_v28, %v427_v4  ;;  %v766_v63 = vmul.f32 %v1068_v56, %v686_v24  ;;  %v672_v16 = vadd.f32 0.2548296, %v656_v59  ;;  %v481_v44 = vsel %vm465_vm15, 1.0, %v1076_v9 }
 0x267   :  { %v813_v43 = vadd.f32 1.0, %v797_v47  ;;  %v671_v19 = vadd.f32 0.2548296, %v655_v5  ;;  %v641_v54 = vadd.f32 -0.28449672, %v625_v30  ;;  %v432_v6 = vmul.f32 0.5, %v1448_v21 }
 0x268   :  { %v940_v12 = vpack.c.bf16 %v827_v38, %v826_v36  ;;  %v782_v26 = vsub.f32 1.0, %v766_v63  ;;  %v688_v57 = vmul.f32 %v1510_v60, %v672_v16  ;;  %v479_v60 = vsel %vm463_vm13, 1.0, %v1076_v9 }
 0x269   :  { %v829_v35 = vmul.f32 %v813_v43, %v429_v29  ;;  %v687_v8 = vmul.f32 %v1514_v41, %v671_v19  ;;  %v657_v2 = vmul.f32 %v1066_v15, %v641_v54 }
 0x26a   :  { %886 = vst [vmem:[%s1571_s5 + $0x20] sm:$0xff] %v940_v12  ;;  %v798_v55 = vmul.f32 %v782_v26, %v478_v33  ;;  %v768_v18 = vmul.f32 %v1070_v10, %v688_v57 }
 0x26b   :  { %v941_v17 = vpack.c.bf16 %v829_v35, %v828_v32  ;;  %v767_v11 = vmul.f32 %v1072_v61, %v687_v8  ;;  %v673_v13 = vadd.f32 0.2548296, %v657_v2 }
 0x26c   :  { %v814_v41 = vadd.f32 1.0, %v798_v55  ;;  %v784_v23 = vsub.f32 1.0, %v768_v18 }
 0x26d   :  { %887 = vst [vmem:[%s1571_s5 + $0x28] sm:$0xff] %v941_v17  ;;  %v783_v52 = vsub.f32 1.0, %v767_v11  ;;  %v1074_v48 = vpop.eup %1073  ;;  %v689_v4 = vmul.f32 %v1066_v15, %v673_v13  ;;  %v433_v15 = vmul.f32 0.5, %v1471_v42 }
 0x26e   :  { %v830_v7 = vmul.f32 %v814_v41, %v430_v1  ;;  %v800_v31 = vmul.f32 %v784_v23, %v480_v39 }
 0x26f   :  { %v799_v27 = vmul.f32 %v783_v52, %v479_v60  ;;  %v769_v50 = vmul.f32 %v1074_v48, %v689_v4 }
 0x270   :  { %v816_v28 = vadd.f32 1.0, %v800_v31 }
 0x271   :  { %v815_v22 = vadd.f32 1.0, %v799_v27  ;;  %v785_v46 = vsub.f32 1.0, %v769_v50 }
 0x272   :  { %v832_v0 = vmul.f32 %v816_v28, %v432_v6 }
 0x273   :  { %v831_v25 = vmul.f32 %v815_v22, %v431_v51  ;;  %v801_v58 = vmul.f32 %v785_v46, %v481_v44 }
 0x275   :  { %v942_v3 = vpack.c.bf16 %v831_v25, %v830_v7  ;;  %v817_v34 = vadd.f32 1.0, %v801_v58 }
 0x277   :  { %888 = vst [vmem:[%s1571_s5 + $0x30] sm:$0xff] %v942_v3  ;;  %v833_v62 = vmul.f32 %v817_v34, %v433_v15 }
 0x279   :  { %v943_v14 = vpack.c.bf16 %v833_v62, %v832_v0 }
 0x27b   :  { %889 = vst [vmem:[%s1571_s5 + $0x38] sm:$0xff] %v943_v14 }

</bundles_post_ra>
